<compile_context>
chip_gen: v6e
topology: v6e:2x2x1
jax: 0.10.0
libtpu: 0.0.40
codegen_flags: <defaults>
</compile_context>

<pallas_src>
import functools

import jax
import jax.numpy as jnp
from jax.experimental import pallas as pl
from jax.experimental.pallas import tpu as pltpu

EMBD = 32            # embedding size (C)
HEADS = 8            # heads_num
HEAD_SIZE = EMBD // HEADS
BLOCK_SIZE = 16      # causal block size (== T here)
LN_EPS = 1e-5
MAX_B_TILE = 256     # batch elements per grid step (v7x-VMEM safe; raise on v6e)
VMEM_LIMIT = 48 * 1024 * 1024   # > v5e 16 MiB scoped default, < v7x 64 MiB physical
NEG_INF = -1e30      # additive causal-mask value (finite -> exp underflows cleanly to 0)


def _layernorm(x, gamma, beta):
    mu = jnp.mean(x, axis=-1, keepdims=True)
    var = jnp.mean((x - mu) ** 2, axis=-1, keepdims=True)
    return (x - mu) * jax.lax.rsqrt(var + LN_EPS) * gamma + beta


def block_kernel(x_ref, wqkv_ref, wp_ref, w1_ref, w2_ref, pvec_ref, bb1_ref,
                 hm_ref, neg_ref, o_ref, *, matmul_dtype):
    xb = x_ref[...].astype(jnp.float32)              # (BT, T, C)
    BT, T, C = xb.shape
    N = BT * T
    x2 = xb.reshape(N, C)                            # flatten batch*seq -> matmul M dim

    pvec = pvec_ref[...]                             # (6, C): bp, g1, be1, g2, be2, bb2
    bp, g1, be1, g2, be2, bb2 = (pvec[i:i + 1, :] for i in range(6))
    bb1 = bb1_ref[...]                               # (1, 4C)

    hm = hm_ref[...]                                 # (8*T, C) head-block mask (matmul_dtype)
    neg = neg_ref[...]                               # (T, 8*T) additive causal mask (f32)
    S = hm.shape[0]                                  # stacked key length = HEADS * T (=128)

    def mm(a, b):
        return jnp.dot(a.astype(matmul_dtype), b.astype(matmul_dtype),
                       preferred_element_type=jnp.float32)

    # ---- self-attention branch: x + proj(multihead_attn(ln1(x))) ----
    h = _layernorm(x2, g1, be1)                      # (N, C), f32
    qkv = mm(h, wqkv_ref[...])                       # (N, 3C) fused QKV, f32 accumulate

    scale = C ** -0.5                                # torch Head scales by embd_size**-0.5
    q = (qkv[:, :C] * scale).reshape(BT, T, C).astype(matmul_dtype)
    k = qkv[:, C:2 * C].reshape(BT, T, C).astype(matmul_dtype)
    v = qkv[:, 2 * C:].reshape(BT, T, C).astype(matmul_dtype)

    # Stack all heads along the key axis: (BT, 8*T, C); head hd's channels are nonzero
    # only in rows hd*T .. hd*T+T-1 (zeroed elsewhere by the head-block mask).
    hm3 = hm.reshape(S // T, T, C)
    k_stk = (k[:, None, :, :] * hm3[None]).reshape(BT, S, C)
    v_stk = (v[:, None, :, :] * hm3[None]).reshape(BT, S, C)

    # One 128-wide score matmul for all 8 heads + one masked softmax pass.
    s = jnp.einsum('btd,bsd->bts', q, k_stk,
                   preferred_element_type=jnp.float32)        # (BT, T, 128)
    s = s + neg[None]                                         # causal mask, tiled per head
    s = s - jnp.max(s, axis=-1, keepdims=True)                # one shared 128-lane row max
    p = jnp.exp(s)
    pm = p.astype(matmul_dtype)

    # Unnormalized per-head outputs land in disjoint 4-channel groups -> single matmul.
    num = jnp.einsum('bts,bsd->btd', pm, v_stk,
                     preferred_element_type=jnp.float32).reshape(N, C)
    # Per-head softmax denominators, broadcast to matching 4-channel groups, via one
    # matmul with the same head-block mask.
    den = jnp.dot(pm.reshape(N, S), hm, preferred_element_type=jnp.float32)   # (N, C)
    r = pl.reciprocal(den, approx=True)              # EUP reciprocal (free slot)
    r = r * (2.0 - den * r)                          # one Newton step -> f32 accuracy
    sa2 = num * r
    # TODO(synk): attention dropout skipped (inference-mode identity).

    x1 = x2 + mm(sa2, wp_ref[...]) + bp              # residual 1 (proj + bias)
    # TODO(synk): proj dropout skipped (inference-mode identity).

    # ---- feed-forward branch: x1 + W2 @ relu(W1 @ ln2(x1)) ----
    h2 = _layernorm(x1, g2, be2)
    ff = jnp.maximum(mm(h2, w1_ref[...]) + bb1, 0.0)
    ff = mm(ff, w2_ref[...]) + bb2
    # TODO(synk): FFN dropout skipped (inference-mode identity).

    o_ref[...] = (x1 + ff).reshape(BT, T, C).astype(o_ref.dtype)   # single slab store


def _round_up(n, m):
    return ((n + m - 1) // m) * m


def _auto_matmul_dtype():
    """bf16 MXU inputs on v6e / v7x (native fast path); f32 elsewhere (v5e & older)."""
    try:
        kind = jax.devices()[0].device_kind.lower()
    except Exception:
        return jnp.float32
    if "v6" in kind or "v7" in kind or "7x" in kind:
        return jnp.bfloat16
    return jnp.float32


def block_forward(x, params, *, b_tile=None, matmul_dtype=None,
                  vmem_limit_bytes=VMEM_LIMIT):
    (wq, wk, wv, wp, bp, g1, be1, g2, be2, w1, bb1, w2, bb2) = params
    B, T, C = x.shape
    if matmul_dtype is None:
        matmul_dtype = _auto_matmul_dtype()

    # Fuse / pack parameters (once, outside the kernel).
    wqkv = jnp.concatenate([wq, wk, wv], axis=1)                    # (C, 3C)
    pvec = jnp.concatenate([bp, g1, be1, g2, be2, bb2], axis=0)     # (6, C)

    # Constant masks built once here (constant-index blocks are fetched once by the
    # pipeline; no per-grid-step iota/compare inside the kernel).
    S = HEADS * T
    lane = jnp.arange(C)[None, :]
    head_of_row = jnp.arange(S)[:, None] // T
    hm = (lane // HEAD_SIZE == head_of_row).astype(matmul_dtype)    # (S, C)
    t_idx = jnp.arange(T)[:, None]
    s_idx = jnp.arange(S)[None, :] % T
    neg = jnp.where(t_idx >= s_idx, 0.0, NEG_INF).astype(jnp.float32)   # (T, S)

    # Batch tile: multiple of 8 (sublane alignment), capped for v7x VMEM, aiming for
    # >= 2 grid steps so ("parallel",) can shard across both v7x TensorCores.
    if b_tile is None:
        b_tile = min(MAX_B_TILE, max(8, _round_up(pl.cdiv(B, 2), 8)))
    else:
        b_tile = max(8, _round_up(int(b_tile), 8))
    b_pad = _round_up(B, b_tile)
    xp = x if b_pad == B else jnp.pad(x, ((0, b_pad - B), (0, 0), (0, 0)))
    grid = (b_pad // b_tile,)

    full = lambda shape: pl.BlockSpec(shape, lambda b: (0, 0))
    in_specs = [
        pl.BlockSpec((b_tile, T, C), lambda b: (b, 0, 0)),   # x (batch-tiled)
        full((C, 3 * C)),                                    # fused Wqkv
        full((C, C)),                                        # Wproj
        full((C, 4 * C)),                                    # ff W1
        full((4 * C, C)),                                    # ff W2
        full((6, C)),                                        # packed per-channel params
        full((1, 4 * C)),                                    # ff b1
        full((S, C)),                                        # head-block mask
        full((T, S)),                                        # additive causal mask
    ]
    out_spec = pl.BlockSpec((b_tile, T, C), lambda b: (b, 0, 0))

    out = pl.pallas_call(
        functools.partial(block_kernel, matmul_dtype=matmul_dtype),
        out_shape=jax.ShapeDtypeStruct((b_pad, T, C), x.dtype),
        grid_spec=pltpu.PrefetchScalarGridSpec(
            num_scalar_prefetch=0,
            grid=grid,
            in_specs=in_specs,
            out_specs=out_spec,
        ),
        compiler_params=pltpu.CompilerParams(
            dimension_semantics=("parallel",),     # shards steps across v7x's 2 TCs
            vmem_limit_bytes=vmem_limit_bytes),
    )(xp, wqkv, wp, w1, w2, pvec, bb1, hm, neg)
    return out[:B]


def init_params(key, C):
    keys = jax.random.split(key, 10)
    s = 0.05
    wq = s * jax.random.normal(keys[0], (C, C), jnp.float32)
    wk = s * jax.random.normal(keys[1], (C, C), jnp.float32)
    wv = s * jax.random.normal(keys[2], (C, C), jnp.float32)
    wp = s * jax.random.normal(keys[3], (C, C), jnp.float32)
    bp = s * jax.random.normal(keys[4], (1, C), jnp.float32)
    g1 = jnp.ones((1, C), jnp.float32)
    be1 = jnp.zeros((1, C), jnp.float32)
    g2 = jnp.ones((1, C), jnp.float32)
    be2 = jnp.zeros((1, C), jnp.float32)
    w1 = s * jax.random.normal(keys[5], (C, 4 * C), jnp.float32)
    bb1 = s * jax.random.normal(keys[6], (1, 4 * C), jnp.float32)
    w2 = s * jax.random.normal(keys[7], (4 * C, C), jnp.float32)
    bb2 = s * jax.random.normal(keys[8], (1, C), jnp.float32)
    return (wq, wk, wv, wp, bp, g1, be1, g2, be2, w1, bb1, w2, bb2)


def block_reference(x, params):
    """Pure-JAX reference mirroring the PyTorch Block semantics."""
    (wq, wk, wv, wp, bp, g1, be1, g2, be2, w1, bb1, w2, bb2) = params
    B, T, C = x.shape

    def ln(z, g, b):
        mu = jnp.mean(z, axis=-1, keepdims=True)
        var = jnp.mean((z - mu) ** 2, axis=-1, keepdims=True)
        return (z - mu) * jax.lax.rsqrt(var + LN_EPS) * g + b

    h = ln(x, g1, be1)
    q = h @ wq
    k = h @ wk
    v = h @ wv
    qh = q.reshape(B, T, HEADS, HEAD_SIZE).transpose(0, 2, 1, 3)
    kh = k.reshape(B, T, HEADS, HEAD_SIZE).transpose(0, 2, 1, 3)
    vh = v.reshape(B, T, HEADS, HEAD_SIZE).transpose(0, 2, 1, 3)
    wei = jnp.einsum('bhtd,bhsd->bhts', qh, kh) * (C ** -0.5)
    mask = jnp.tril(jnp.ones((T, T), bool))
    wei = jnp.where(mask, wei, -jnp.inf)
    wei = jax.nn.softmax(wei, axis=-1)
    sa = jnp.einsum('bhts,bhsd->bhtd', wei, vh).transpose(0, 2, 1, 3).reshape(B, T, C)
    x1 = x + sa @ wp + bp
    h2 = ln(x1, g2, be2)
    ff = jnp.maximum(h2 @ w1 + bb1, 0.0) @ w2 + bb2
    return x1 + ff


if __name__ == "__main__":
    key = jax.random.PRNGKey(0)
    k_x, k_p, k_x2, k_x3 = jax.random.split(key, 4)
    T, C = BLOCK_SIZE, EMBD
    params = init_params(k_p, C)

    # f32 MXU path, single grid step.
    x = jax.random.normal(k_x, (2, T, C), jnp.float32)
    out = jax.block_until_ready(block_forward(x, params, matmul_dtype=jnp.float32))
    ref = block_reference(x, params)
    assert jnp.allclose(out, ref, atol=1e-3, rtol=1e-3), "f32 mismatch (B=2)"

    # f32 path, multi-step grid + batch padding (B=20, b_tile=8 -> grid of 3).
    x2 = jax.random.normal(k_x2, (20, T, C), jnp.float32)
    out2 = jax.block_until_ready(
        block_forward(x2, params, b_tile=8, matmul_dtype=jnp.float32))
    ref2 = block_reference(x2, params)
    assert jnp.allclose(out2, ref2, atol=1e-3, rtol=1e-3), "f32 mismatch (B=20)"

    # bf16 MXU path (v6e/v7x fast path), validated at a looser tolerance.
    x3 = jax.random.normal(k_x3, (4, T, C), jnp.float32)
    out3 = jax.block_until_ready(
        block_forward(x3, params, matmul_dtype=jnp.bfloat16))
    ref3 = block_reference(x3, params)
    assert jnp.allclose(out3, ref3, atol=5e-2, rtol=5e-2), "bf16 mismatch (B=4)"

    # Auto-selected matmul dtype (bf16 on v6e/v7x, f32 otherwise).
    out4 = jax.block_until_ready(block_forward(x3, params))
    assert jnp.allclose(out4, ref3, atol=5e-2, rtol=5e-2), "auto-dtype mismatch (B=4)"

    print("KERNEL_OK")
</pallas_src>

<mosaic_0001>
module attributes {stable_mosaic.version = 11 : i64} {
  func.func @block_kernel(%arg0: i32, %arg1: memref<8x16x32xf32, #tpu.memory_space<vmem>>, %arg2: memref<32x96xf32, #tpu.memory_space<vmem>>, %arg3: memref<32x32xf32, #tpu.memory_space<vmem>>, %arg4: memref<32x128xf32, #tpu.memory_space<vmem>>, %arg5: memref<128x32xf32, #tpu.memory_space<vmem>>, %arg6: memref<6x32xf32, #tpu.memory_space<vmem>>, %arg7: memref<1x128xf32, #tpu.memory_space<vmem>>, %arg8: memref<128x32xf32, #tpu.memory_space<vmem>>, %arg9: memref<16x128xf32, #tpu.memory_space<vmem>>, %arg10: memref<8x16x32xf32, #tpu.memory_space<vmem>>) attributes {dimension_semantics = [#tpu.dimension_semantics<parallel>], iteration_bounds = array<i64: 1>, scalar_prefetch = 0 : i64, scratch_operands = 0 : i64, tpu.core_type = #tpu.core_type<tc>, window_params = [{transform_indices = @transform_0, window_bounds = array<i64: 8, 16, 32>}, {pipeline_mode = #tpu.pipeline_mode<synchronous>, transform_indices = @transform_1, window_bounds = array<i64: 32, 96>}, {pipeline_mode = #tpu.pipeline_mode<synchronous>, transform_indices = @transform_2, window_bounds = array<i64: 32, 32>}, {pipeline_mode = #tpu.pipeline_mode<synchronous>, transform_indices = @transform_3, window_bounds = array<i64: 32, 128>}, {pipeline_mode = #tpu.pipeline_mode<synchronous>, transform_indices = @transform_4, window_bounds = array<i64: 128, 32>}, {pipeline_mode = #tpu.pipeline_mode<synchronous>, transform_indices = @transform_5, window_bounds = array<i64: 6, 32>}, {pipeline_mode = #tpu.pipeline_mode<synchronous>, transform_indices = @transform_6, window_bounds = array<i64: 1, 128>}, {pipeline_mode = #tpu.pipeline_mode<synchronous>, transform_indices = @transform_7, window_bounds = array<i64: 128, 32>}, {pipeline_mode = #tpu.pipeline_mode<synchronous>, transform_indices = @transform_8, window_bounds = array<i64: 16, 128>}, {transform_indices = @transform_9, window_bounds = array<i64: 8, 16, 32>}]} {
    %c0 = arith.constant 0 : index
    %c0_0 = arith.constant 0 : index
    %c0_1 = arith.constant 0 : index
    %0 = vector.load %arg1[%c0, %c0_0, %c0_1] : memref<8x16x32xf32, #tpu.memory_space<vmem>>, vector<8x16x32xf32>
    %1 = vector.shape_cast %0 : vector<8x16x32xf32> to vector<128x32xf32>
    %c0_2 = arith.constant 0 : index
    %c0_3 = arith.constant 0 : index
    %2 = vector.load %arg6[%c0_2, %c0_3] : memref<6x32xf32, #tpu.memory_space<vmem>>, vector<6x32xf32>
    %3 = vector.extract_strided_slice %2 {offsets = [0, 0], sizes = [1, 32], strides = [1, 1]} : vector<6x32xf32> to vector<1x32xf32>
    %4 = vector.extract_strided_slice %2 {offsets = [1, 0], sizes = [1, 32], strides = [1, 1]} : vector<6x32xf32> to vector<1x32xf32>
    %5 = vector.extract_strided_slice %2 {offsets = [2, 0], sizes = [1, 32], strides = [1, 1]} : vector<6x32xf32> to vector<1x32xf32>
    %6 = vector.extract_strided_slice %2 {offsets = [3, 0], sizes = [1, 32], strides = [1, 1]} : vector<6x32xf32> to vector<1x32xf32>
    %7 = vector.extract_strided_slice %2 {offsets = [4, 0], sizes = [1, 32], strides = [1, 1]} : vector<6x32xf32> to vector<1x32xf32>
    %8 = vector.extract_strided_slice %2 {offsets = [5, 0], sizes = [1, 32], strides = [1, 1]} : vector<6x32xf32> to vector<1x32xf32>
    %c0_4 = arith.constant 0 : index
    %c0_5 = arith.constant 0 : index
    %9 = vector.load %arg7[%c0_4, %c0_5] : memref<1x128xf32, #tpu.memory_space<vmem>>, vector<1x128xf32>
    %c0_6 = arith.constant 0 : index
    %c0_7 = arith.constant 0 : index
    %10 = vector.load %arg8[%c0_6, %c0_7] : memref<128x32xf32, #tpu.memory_space<vmem>>, vector<128x32xf32>
    %c0_8 = arith.constant 0 : index
    %c0_9 = arith.constant 0 : index
    %11 = vector.load %arg9[%c0_8, %c0_9] : memref<16x128xf32, #tpu.memory_space<vmem>>, vector<16x128xf32>
    %cst = arith.constant dense<0.000000e+00> : vector<128xf32>
    %12 = vector.multi_reduction <add>, %1, %cst [1] : vector<128x32xf32> to vector<128xf32>
    %13 = vector.shape_cast %12 : vector<128xf32> to vector<128x1xf32>
    %cst_10 = arith.constant 3.200000e+01 : f32
    %14 = vector.broadcast %cst_10 : f32 to vector<128x1xf32>
    %15 = arith.divf %13, %14 : vector<128x1xf32>
    %16 = vector.broadcast %15 : vector<128x1xf32> to vector<128x32xf32>
    %17 = arith.subf %1, %16 : vector<128x32xf32>
    %18 = arith.mulf %17, %17 : vector<128x32xf32>
    %cst_11 = arith.constant dense<0.000000e+00> : vector<128xf32>
    %19 = vector.multi_reduction <add>, %18, %cst_11 [1] : vector<128x32xf32> to vector<128xf32>
    %20 = vector.shape_cast %19 : vector<128xf32> to vector<128x1xf32>
    %cst_12 = arith.constant 3.200000e+01 : f32
    %21 = vector.broadcast %cst_12 : f32 to vector<128x1xf32>
    %22 = arith.divf %20, %21 : vector<128x1xf32>
    %23 = vector.broadcast %15 : vector<128x1xf32> to vector<128x32xf32>
    %24 = arith.subf %1, %23 : vector<128x32xf32>
    %cst_13 = arith.constant 9.99999974E-6 : f32
    %25 = vector.broadcast %cst_13 : f32 to vector<128x1xf32>
    %26 = arith.addf %22, %25 : vector<128x1xf32>
    %27 = math.rsqrt %26 : vector<128x1xf32>
    %28 = vector.broadcast %27 : vector<128x1xf32> to vector<128x32xf32>
    %29 = arith.mulf %24, %28 : vector<128x32xf32>
    %30 = vector.broadcast %4 : vector<1x32xf32> to vector<128x32xf32>
    %31 = arith.mulf %29, %30 : vector<128x32xf32>
    %32 = vector.broadcast %5 : vector<1x32xf32> to vector<128x32xf32>
    %33 = arith.addf %31, %32 : vector<128x32xf32>
    %c0_14 = arith.constant 0 : index
    %c0_15 = arith.constant 0 : index
    %34 = vector.load %arg2[%c0_14, %c0_15] : memref<32x96xf32, #tpu.memory_space<vmem>>, vector<32x96xf32>
    %cst_16 = arith.constant dense<0.000000e+00> : vector<128x96xf32>
    %35 = tpu.matmul %33, %34, %cst_16 {dimension_numbers = #tpu.dot_dimension_numbers<[1], [0], [0], [1], [0, 0, 1, 1], [], []>} : vector<128x32xf32>, vector<32x96xf32>, vector<128x96xf32> -> vector<128x96xf32>
    %36 = vector.extract_strided_slice %35 {offsets = [0, 0], sizes = [128, 32], strides = [1, 1]} : vector<128x96xf32> to vector<128x32xf32>
    %cst_17 = arith.constant 0.176776692 : f32
    %37 = vector.broadcast %cst_17 : f32 to vector<128x32xf32>
    %38 = arith.mulf %36, %37 : vector<128x32xf32>
    %39 = vector.shape_cast %38 : vector<128x32xf32> to vector<8x16x32xf32>
    %40 = vector.extract_strided_slice %35 {offsets = [0, 32], sizes = [128, 32], strides = [1, 1]} : vector<128x96xf32> to vector<128x32xf32>
    %41 = vector.shape_cast %40 : vector<128x32xf32> to vector<8x16x32xf32>
    %42 = vector.extract_strided_slice %35 {offsets = [0, 64], sizes = [128, 32], strides = [1, 1]} : vector<128x96xf32> to vector<128x32xf32>
    %43 = vector.shape_cast %42 : vector<128x32xf32> to vector<8x16x32xf32>
    %44 = vector.shape_cast %10 : vector<128x32xf32> to vector<8x16x32xf32>
    %45 = vector.shape_cast %41 : vector<8x16x32xf32> to vector<8x1x16x32xf32>
    %46 = vector.shape_cast %44 : vector<8x16x32xf32> to vector<1x8x16x32xf32>
    %47 = vector.broadcast %45 : vector<8x1x16x32xf32> to vector<8x8x16x32xf32>
    %48 = vector.broadcast %46 : vector<1x8x16x32xf32> to vector<8x8x16x32xf32>
    %49 = arith.mulf %47, %48 : vector<8x8x16x32xf32>
    %50 = vector.shape_cast %49 : vector<8x8x16x32xf32> to vector<8x128x32xf32>
    %51 = vector.shape_cast %43 : vector<8x16x32xf32> to vector<8x1x16x32xf32>
    %52 = vector.shape_cast %44 : vector<8x16x32xf32> to vector<1x8x16x32xf32>
    %53 = vector.broadcast %51 : vector<8x1x16x32xf32> to vector<8x8x16x32xf32>
    %54 = vector.broadcast %52 : vector<1x8x16x32xf32> to vector<8x8x16x32xf32>
    %55 = arith.mulf %53, %54 : vector<8x8x16x32xf32>
    %56 = vector.shape_cast %55 : vector<8x8x16x32xf32> to vector<8x128x32xf32>
    "tpu.trace_start"() <{level = 10 : i32, message = "btd,bsd->bts"}> : () -> ()
    %cst_18 = arith.constant dense<0.000000e+00> : vector<8x16x128xf32>
    %57 = tpu.matmul %39, %50, %cst_18 {dimension_numbers = #tpu.dot_dimension_numbers<[2], [2], [1], [1], [0, 0, 0, 1, 1, 1], [0], [0]>} : vector<8x16x32xf32>, vector<8x128x32xf32>, vector<8x16x128xf32> -> vector<8x16x128xf32>
    "tpu.trace_stop"() : () -> ()
    %58 = vector.shape_cast %11 : vector<16x128xf32> to vector<1x16x128xf32>
    %59 = vector.broadcast %58 : vector<1x16x128xf32> to vector<8x16x128xf32>
    %60 = arith.addf %57, %59 : vector<8x16x128xf32>
    %cst_19 = arith.constant dense<0xFF800000> : vector<8x16xf32>
    %61 = vector.multi_reduction <maximumf>, %60, %cst_19 [2] : vector<8x16x128xf32> to vector<8x16xf32>
    %62 = vector.shape_cast %61 : vector<8x16xf32> to vector<8x16x1xf32>
    %63 = vector.broadcast %62 : vector<8x16x1xf32> to vector<8x16x128xf32>
    %64 = arith.subf %60, %63 : vector<8x16x128xf32>
    %65 = math.exp %64 : vector<8x16x128xf32>
    "tpu.trace_start"() <{level = 10 : i32, message = "bts,bsd->btd"}> : () -> ()
    %cst_20 = arith.constant dense<0.000000e+00> : vector<8x16x32xf32>
    %66 = tpu.matmul %65, %56, %cst_20 {dimension_numbers = #tpu.dot_dimension_numbers<[2], [1], [1], [2], [0, 0, 0, 1, 1, 2], [0], [0]>} : vector<8x16x128xf32>, vector<8x128x32xf32>, vector<8x16x32xf32> -> vector<8x16x32xf32>
    "tpu.trace_stop"() : () -> ()
    %67 = vector.shape_cast %66 : vector<8x16x32xf32> to vector<128x32xf32>
    %68 = vector.shape_cast %65 : vector<8x16x128xf32> to vector<128x128xf32>
    %cst_21 = arith.constant dense<0.000000e+00> : vector<128x32xf32>
    %69 = tpu.matmul %68, %10, %cst_21 {dimension_numbers = #tpu.dot_dimension_numbers<[1], [0], [0], [1], [0, 0, 1, 1], [], []>} : vector<128x128xf32>, vector<128x32xf32>, vector<128x32xf32> -> vector<128x32xf32>
    %70 = tpu.reciprocal %69 {approx = true} : vector<128x32xf32> -> vector<128x32xf32>
    %71 = arith.mulf %69, %70 : vector<128x32xf32>
    %cst_22 = arith.constant 2.000000e+00 : f32
    %72 = vector.broadcast %cst_22 : f32 to vector<128x32xf32>
    %73 = arith.subf %72, %71 : vector<128x32xf32>
    %74 = arith.mulf %70, %73 : vector<128x32xf32>
    %75 = arith.mulf %67, %74 : vector<128x32xf32>
    %c0_23 = arith.constant 0 : index
    %c0_24 = arith.constant 0 : index
    %76 = vector.load %arg3[%c0_23, %c0_24] : memref<32x32xf32, #tpu.memory_space<vmem>>, vector<32x32xf32>
    %cst_25 = arith.constant dense<0.000000e+00> : vector<128x32xf32>
    %77 = tpu.matmul %75, %76, %cst_25 {dimension_numbers = #tpu.dot_dimension_numbers<[1], [0], [0], [1], [0, 0, 1, 1], [], []>} : vector<128x32xf32>, vector<32x32xf32>, vector<128x32xf32> -> vector<128x32xf32>
    %78 = arith.addf %1, %77 : vector<128x32xf32>
    %79 = vector.broadcast %3 : vector<1x32xf32> to vector<128x32xf32>
    %80 = arith.addf %78, %79 : vector<128x32xf32>
    %cst_26 = arith.constant dense<0.000000e+00> : vector<128xf32>
    %81 = vector.multi_reduction <add>, %80, %cst_26 [1] : vector<128x32xf32> to vector<128xf32>
    %82 = vector.shape_cast %81 : vector<128xf32> to vector<128x1xf32>
    %cst_27 = arith.constant 3.200000e+01 : f32
    %83 = vector.broadcast %cst_27 : f32 to vector<128x1xf32>
    %84 = arith.divf %82, %83 : vector<128x1xf32>
    %85 = vector.broadcast %84 : vector<128x1xf32> to vector<128x32xf32>
    %86 = arith.subf %80, %85 : vector<128x32xf32>
    %87 = arith.mulf %86, %86 : vector<128x32xf32>
    %cst_28 = arith.constant dense<0.000000e+00> : vector<128xf32>
    %88 = vector.multi_reduction <add>, %87, %cst_28 [1] : vector<128x32xf32> to vector<128xf32>
    %89 = vector.shape_cast %88 : vector<128xf32> to vector<128x1xf32>
    %cst_29 = arith.constant 3.200000e+01 : f32
    %90 = vector.broadcast %cst_29 : f32 to vector<128x1xf32>
    %91 = arith.divf %89, %90 : vector<128x1xf32>
    %92 = vector.broadcast %84 : vector<128x1xf32> to vector<128x32xf32>
    %93 = arith.subf %80, %92 : vector<128x32xf32>
    %cst_30 = arith.constant 9.99999974E-6 : f32
    %94 = vector.broadcast %cst_30 : f32 to vector<128x1xf32>
    %95 = arith.addf %91, %94 : vector<128x1xf32>
    %96 = math.rsqrt %95 : vector<128x1xf32>
    %97 = vector.broadcast %96 : vector<128x1xf32> to vector<128x32xf32>
    %98 = arith.mulf %93, %97 : vector<128x32xf32>
    %99 = vector.broadcast %6 : vector<1x32xf32> to vector<128x32xf32>
    %100 = arith.mulf %98, %99 : vector<128x32xf32>
    %101 = vector.broadcast %7 : vector<1x32xf32> to vector<128x32xf32>
    %102 = arith.addf %100, %101 : vector<128x32xf32>
    %c0_31 = arith.constant 0 : index
    %c0_32 = arith.constant 0 : index
    %103 = vector.load %arg4[%c0_31, %c0_32] : memref<32x128xf32, #tpu.memory_space<vmem>>, vector<32x128xf32>
    %cst_33 = arith.constant dense<0.000000e+00> : vector<128x128xf32>
    %104 = tpu.matmul %102, %103, %cst_33 {dimension_numbers = #tpu.dot_dimension_numbers<[1], [0], [0], [1], [0, 0, 1, 1], [], []>} : vector<128x32xf32>, vector<32x128xf32>, vector<128x128xf32> -> vector<128x128xf32>
    %105 = vector.broadcast %9 : vector<1x128xf32> to vector<128x128xf32>
    %106 = arith.addf %104, %105 : vector<128x128xf32>
    %cst_34 = arith.constant 0.000000e+00 : f32
    %107 = vector.broadcast %cst_34 : f32 to vector<128x128xf32>
    %108 = arith.maximumf %106, %107 : vector<128x128xf32>
    %c0_35 = arith.constant 0 : index
    %c0_36 = arith.constant 0 : index
    %109 = vector.load %arg5[%c0_35, %c0_36] : memref<128x32xf32, #tpu.memory_space<vmem>>, vector<128x32xf32>
    %cst_37 = arith.constant dense<0.000000e+00> : vector<128x32xf32>
    %110 = tpu.matmul %108, %109, %cst_37 {dimension_numbers = #tpu.dot_dimension_numbers<[1], [0], [0], [1], [0, 0, 1, 1], [], []>} : vector<128x128xf32>, vector<128x32xf32>, vector<128x32xf32> -> vector<128x32xf32>
    %111 = vector.broadcast %8 : vector<1x32xf32> to vector<128x32xf32>
    %112 = arith.addf %110, %111 : vector<128x32xf32>
    %113 = arith.addf %80, %112 : vector<128x32xf32>
    %114 = vector.shape_cast %113 : vector<128x32xf32> to vector<8x16x32xf32>
    %c0_38 = arith.constant 0 : index
    %c0_39 = arith.constant 0 : index
    %c0_40 = arith.constant 0 : index
    %115 = vector.load %arg10[%c0_38, %c0_39, %c0_40] : memref<8x16x32xf32, #tpu.memory_space<vmem>>, vector<8x16x32xf32>
    tpu.vector_store %arg10[%c0_38, %c0_39, %c0_40], %114 {strides = array<i32>} : memref<8x16x32xf32, #tpu.memory_space<vmem>>, vector<8x16x32xf32>,
    return
  }
  func.func @transform_0(%arg0: i32) -> (i32, i32, i32) {
    %c0_i32 = arith.constant 0 : i32
    %c0_i32_0 = arith.constant 0 : i32
    %c0_i32_1 = arith.constant 0 : i32
    return %arg0, %c0_i32, %c0_i32_0 : i32, i32, i32
  }
  func.func @transform_1(%arg0: i32) -> (i32, i32) {
    %c0_i32 = arith.constant 0 : i32
    %c0_i32_0 = arith.constant 0 : i32
    %c0_i32_1 = arith.constant 0 : i32
    return %c0_i32, %c0_i32_0 : i32, i32
  }
  func.func @transform_2(%arg0: i32) -> (i32, i32) {
    %c0_i32 = arith.constant 0 : i32
    %c0_i32_0 = arith.constant 0 : i32
    %c0_i32_1 = arith.constant 0 : i32
    return %c0_i32, %c0_i32_0 : i32, i32
  }
  func.func @transform_3(%arg0: i32) -> (i32, i32) {
    %c0_i32 = arith.constant 0 : i32
    %c0_i32_0 = arith.constant 0 : i32
    %c0_i32_1 = arith.constant 0 : i32
    return %c0_i32, %c0_i32_0 : i32, i32
  }
  func.func @transform_4(%arg0: i32) -> (i32, i32) {
    %c0_i32 = arith.constant 0 : i32
    %c0_i32_0 = arith.constant 0 : i32
    %c0_i32_1 = arith.constant 0 : i32
    return %c0_i32, %c0_i32_0 : i32, i32
  }
  func.func @transform_5(%arg0: i32) -> (i32, i32) {
    %c0_i32 = arith.constant 0 : i32
    %c0_i32_0 = arith.constant 0 : i32
    %c0_i32_1 = arith.constant 0 : i32
    return %c0_i32, %c0_i32_0 : i32, i32
  }
  func.func @transform_6(%arg0: i32) -> (i32, i32) {
    %c0_i32 = arith.constant 0 : i32
    %c0_i32_0 = arith.constant 0 : i32
    %c0_i32_1 = arith.constant 0 : i32
    return %c0_i32, %c0_i32_0 : i32, i32
  }
  func.func @transform_7(%arg0: i32) -> (i32, i32) {
    %c0_i32 = arith.constant 0 : i32
    %c0_i32_0 = arith.constant 0 : i32
    %c0_i32_1 = arith.constant 0 : i32
    return %c0_i32, %c0_i32_0 : i32, i32
  }
  func.func @transform_8(%arg0: i32) -> (i32, i32) {
    %c0_i32 = arith.constant 0 : i32
    %c0_i32_0 = arith.constant 0 : i32
    %c0_i32_1 = arith.constant 0 : i32
    return %c0_i32, %c0_i32_0 : i32, i32
  }
  func.func @transform_9(%arg0: i32) -> (i32, i32, i32) {
    %c0_i32 = arith.constant 0 : i32
    %c0_i32_0 = arith.constant 0 : i32
    %c0_i32_1 = arith.constant 0 : i32
    return %arg0, %c0_i32, %c0_i32_0 : i32, i32, i32
  }
}

</mosaic_0001>

<bundles_post_ra>
// kernel: tpu_custom_call.1
= control target key start
LH: loop header
LB: loop body
LE: loop exit
PB: predicated region body
PF: predicated region fallthrough
CT: control target
= control target key end

     0   :  { %vm69_vm0 = vcmask 261120   ;;  %s9161_s0 = inlined_call_operand.vmem [shape: f32[8,16,32], index: 0, kind: input, shape index: {}]   ;;  %s9162_s1 = inlined_call_operand.vmem [shape: f32[32,96], index: 1, kind: input, shape index: {}]   ;;  %s9163_s2 = inlined_call_operand.vmem [shape: f32[32,32], index: 2, kind: input, shape index: {}]   ;;  %s9164_s3 = inlined_call_operand.vmem [shape: f32[32,128], index: 3, kind: input, shape index: {}]   ;;  %s9165_s4 = inlined_call_operand.vmem [shape: f32[128,32], index: 4, kind: input, shape index: {}]   ;;  %s9166_s5 = inlined_call_operand.vmem [shape: f32[6,32], index: 5, kind: input, shape index: {}]   ;;  %s9167_s6 = inlined_call_operand.vmem [shape: f32[1,128], index: 6, kind: input, shape index: {}]   ;;  %s9168_s7 = inlined_call_operand.vmem [shape: f32[128,32], index: 7, kind: input, shape index: {}]   ;;  %s9169_s8 = inlined_call_operand.vmem [shape: f32[16,128], index: 8, kind: input, shape index: {}]   ;;  %s9170_s9 = inlined_call_operand.hbm [shape: f32[8,16,32], index: 9, kind: output, shape index: {}]  }
   0x1   :  { %v6171_v0 = vld [vmem:[%s9161_s0] sm:$0xff]  ;;  %v6176_v1 = vld [vmem:[%s9161_s0 + $0x8] sm:$0xff]  ;;  %v6181_v2 = vld [vmem:[%s9161_s0 + $0x10] sm:$0xff] }
   0x2   :  { %v70_v3 = vsel %vm69_vm0, %v6171_v0, 0.0  ;;  %v76_v4 = vsel %vm69_vm0, %v6181_v2, 0.0  ;;  %v6190_v5 = vld [vmem:[%s9161_s0 + $0x18] sm:$0xff]  ;;  %v73_v6 = vsel %vm69_vm0, %v6176_v1, 0.0  ;;  %v6199_v8 = vld [vmem:[%s9161_s0 + $0x28] sm:$0xff]  ;;  %v6204_v9 = vld [vmem:[%s9161_s0 + $0x20] sm:$0xff] }
   0x3   :  { %71 = vadd.xlane.f32.xlu0 %v70_v3  ;;  %77 = vadd.xlane.f32.xlu1 %v76_v4  ;;  %v79_v7 = vsel %vm69_vm0, %v6190_v5, 0.0  ;;  %v85_v10 = vsel %vm69_vm0, %v6199_v8, 0.0  ;;  %v82_v11 = vsel %vm69_vm0, %v6204_v9, 0.0  ;;  %v6213_v12 = vld [vmem:[%s9161_s0 + $0x38] sm:$0xff]  ;;  %v6218_v13 = vld [vmem:[%s9161_s0 + $0x30] sm:$0xff] }
   0x7   :  { %74 = vadd.xlane.f32.xlu0 %v73_v6  ;;  %80 = vadd.xlane.f32.xlu1 %v79_v7 }
   0x8   :  { %14 = vsyncpa [#allocation3], 0  ;;  %v91_v14 = vsel %vm69_vm0, %v6213_v12, 0.0  ;;  %v88_v15 = vsel %vm69_vm0, %v6218_v13, 0.0  ;;  %v6227_v16 = vld [vmem:[%s9161_s0 + $0x48] sm:$0xff]  ;;  %v6232_v17 = vld [vmem:[%s9161_s0 + $0x40] sm:$0xff] }
   0x9   :  { %v97_v18 = vsel %vm69_vm0, %v6227_v16, 0.0  ;;  %v94_v19 = vsel %vm69_vm0, %v6232_v17, 0.0  ;;  %v6241_v20 = vld [vmem:[%s9161_s0 + $0x58] sm:$0xff]  ;;  %v6246_v21 = vld [vmem:[%s9161_s0 + $0x50] sm:$0xff]  ;;  %v6255_v24 = vld [vmem:[%s9161_s0 + $0x68] sm:$0xff]  ;;  %s6112_s22 = smov 32  }
   0xa   :  { %v103_v22 = vsel %vm69_vm0, %v6241_v20, 0.0  ;;  %v100_v23 = vsel %vm69_vm0, %v6246_v21, 0.0  ;;  %v6260_v25 = vld [vmem:[%s9161_s0 + $0x60] sm:$0xff]  ;;  %v109_v26 = vsel %vm69_vm0, %v6255_v24, 0.0  ;;  %v6269_v28 = vld [vmem:[%s9161_s0 + $0x78] sm:$0xff]  ;;  %v6274_v29 = vld [vmem:[%s9161_s0 + $0x70] sm:$0xff] }
   0xb   :  { %86 = vadd.xlane.f32.xlu1 %v85_v10  ;;  %83 = vadd.xlane.f32.xlu0 %v82_v11  ;;  %v106_v27 = vsel %vm69_vm0, %v6260_v25, 0.0  ;;  %v115_v30 = vsel %vm69_vm0, %v6269_v28, 0.0  ;;  %v112_v31 = vsel %vm69_vm0, %v6274_v29, 0.0  ;;  %v6283_v32 = vld [vmem:[%s9168_s7 + $0x70] sm:$0xff]  ;;  %v6290_v33 = vld [vmem:[%s9168_s7 + $0x68] sm:$0xff]  ;;  %v6295_v34 = vld [vmem:[%s9168_s7 + $0x78] sm:$0xff] }
   0xc   :  { %v6304_v35 = vld [vmem:[%s9168_s7 + $0x60] sm:$0xff]  ;;  %v6309_v36 = vld [vmem:[%s9168_s7 + $0x58] sm:$0xff]  ;;  %v6318_v37 = vld [vmem:[%s9168_s7 + $0x50] sm:$0xff]  ;;  %s6113_s21 = smov 64  }
   0xd   :  { %v6323_v38 = vld [vmem:[%s9168_s7 + $0x48] sm:$0xff]  ;;  %v6332_v39 = vld [vmem:[%s9168_s7 + $0x40] sm:$0xff]  ;;  %v6337_v40 = vld [vmem:[%s9168_s7 + $0x38] sm:$0xff] }
   0xe   :  { %v6358_v51 = vld [vmem:[%s9168_s7 + $0x30] sm:$0xff]  ;;  %v322_v52 = vld [vmem:[%s9162_s1 + $0x18] sm:$0xff]  ;;  %v6369_v54 = vld [vmem:[%s9168_s7 + $0x28] sm:$0xff] }
   0xf   :  { %92 = vadd.xlane.f32.xlu1 %v91_v14  ;;  %89 = vadd.xlane.f32.xlu0 %v88_v15  ;;  %v321_v53 = vld [vmem:[%s9162_s1 + $0x10] sm:$0xff]  ;;  %v320_v55 = vld [vmem:[%s9162_s1 + $0x8] sm:$0xff]  ;;  %v319_v57 = vld [vmem:[%s9162_s1] sm:$0xff] }
  0x10   :  { %5123 = vmatprep.subr.mxu0 %v322_v52  ;;  %v6408_v15 = vld [vmem:[%s9168_s7 + $0x20] sm:$0xff] }
  0x11   :  { %5124 = vmatpush3.msra.mxu0 %v322_v52 }
  0x12   :  { %5125 = vmatprep.subr.mxu0 %v321_v53 }
  0x13   :  { %98 = vadd.xlane.f32.xlu1 %v97_v18  ;;  %95 = vadd.xlane.f32.xlu0 %v94_v19  ;;  %v6413_v18 = vld [vmem:[%s9168_s7 + $0x18] sm:$0xff] }
  0x14   :  { %5126 = vmatpush3.msra.mxu0 %v321_v53 }
  0x15   :  { %5127 = vmatprep.subr.mxu0 %v320_v55 }
  0x16   :  { %5128 = vmatpush3.msra.mxu0 %v320_v55 }
  0x17   :  { %104 = vadd.xlane.f32.xlu1 %v103_v22  ;;  %101 = vadd.xlane.f32.xlu0 %v100_v23 }
  0x18   :  { %5129 = vmatprep.subr.mxu0 %v319_v57 }
  0x19   :  { %5130 = vmatpush3.msra.mxu0 %v319_v57 }
  0x1b   :  { %110 = vadd.xlane.f32.xlu1 %v109_v26  ;;  %107 = vadd.xlane.f32.xlu0 %v106_v27 }
  0x1f   :  { %116 = vadd.xlane.f32.xlu1 %v115_v30  ;;  %113 = vadd.xlane.f32.xlu0 %v112_v31 }
  0x30   :  { %576 = vrot.lane.b32.xlu1 %v6283_v32, %s6112_s22 }
  0x34   :  { %574 = vrot.lane.b32.xlu1 %v6290_v33, %s6112_s22 }
  0x35   :  { %578 = vrot.lane.b32.xlu0 %v6295_v34, %s6112_s22 }
  0x38   :  { %572 = vrot.lane.b32.xlu1 %v6304_v35, %s6112_s22 }
  0x39   :  { %570 = vrot.lane.b32.xlu0 %v6309_v36, %s6112_s22 }
  0x3c   :  { %568 = vrot.lane.b32.xlu1 %v6318_v37, %s6112_s22 }
  0x3d   :  { %566 = vrot.lane.b32.xlu0 %v6323_v38, %s6112_s22 }
  0x40   :  { %564 = vrot.lane.b32.xlu1 %v6332_v39, %s6112_s22 }
  0x41   :  { %562 = vrot.lane.b32.xlu0 %v6337_v40, %s6112_s22 }
  0x8c   :  { %v72_v41 = vpop.xlane.xlu0 %71  ;;  %v78_v56 = vpop.xlane.xlu1 %77 }
  0x8d   :  { %v119_v42 = vmul.f32 0.03125, %v72_v41  ;;  %v121_v58 = vmul.f32 0.03125, %v78_v56 }
  0x8f   :  { %v6344_v43 = vsub.f32 %v6171_v0, %v119_v42  ;;  %v6382_v61 = vsub.f32 %v6181_v2, %v121_v58 }
  0x90   :  { %v75_v44 = vpop.xlane.xlu0 %74  ;;  %v81_v59 = vpop.xlane.xlu1 %80 }
  0x91   :  { %v120_v45 = vmul.f32 0.03125, %v75_v44  ;;  %v151_v46 = vmul.f32 %v6344_v43, %v6344_v43  ;;  %v122_v62 = vmul.f32 0.03125, %v81_v59  ;;  %v153_v6 = vmul.f32 %v6382_v61, %v6382_v61 }
  0x93   :  { %v6349_v47 = vsub.f32 %v6176_v1, %v120_v45  ;;  %v167_v48 = vsel %vm69_vm0, %v151_v46, 0.0  ;;  %v6385_v1 = vsub.f32 %v6190_v5, %v122_v62  ;;  %v173_v10 = vsel %vm69_vm0, %v153_v6, 0.0 }
  0x94   :  { %168 = vadd.xlane.f32.xlu0 %v167_v48  ;;  %v84_v60 = vpop.xlane.xlu0 %83  ;;  %v87_v0 = vpop.xlane.xlu1 %86 }
  0x95   :  { %v152_v49 = vmul.f32 %v6349_v47, %v6349_v47  ;;  %v123_v63 = vmul.f32 0.03125, %v84_v60  ;;  %v124_v3 = vmul.f32 0.03125, %v87_v0  ;;  %v154_v2 = vmul.f32 %v6385_v1, %v6385_v1 }
  0x97   :  { %v170_v50 = vsel %vm69_vm0, %v152_v49, 0.0  ;;  %v6388_v4 = vsub.f32 %v6204_v9, %v123_v63  ;;  %v6393_v7 = vsub.f32 %v6199_v8, %v124_v3  ;;  %v176_v5 = vsel %vm69_vm0, %v154_v2, 0.0 }
  0x98   :  { %171 = vadd.xlane.f32.xlu1 %v170_v50  ;;  %v93_v19 = vpop.xlane.xlu1 %92  ;;  %v90_v22 = vpop.xlane.xlu0 %89 }
  0x99   :  { %v155_v11 = vmul.f32 %v6388_v4, %v6388_v4  ;;  %v156_v14 = vmul.f32 %v6393_v7, %v6393_v7  ;;  %v125_v30 = vmul.f32 0.03125, %v90_v22  ;;  %v126_v41 = vmul.f32 0.03125, %v93_v19 }
  0x9b   :  { %v179_v9 = vsel %vm69_vm0, %v155_v11, 0.0  ;;  %v182_v8 = vsel %vm69_vm0, %v156_v14, 0.0  ;;  %v6420_v42 = vsub.f32 %v6218_v13, %v125_v30  ;;  %v6423_v48 = vsub.f32 %v6213_v12, %v126_v41 }
  0x9c   :  { %v99_v23 = vpop.xlane.xlu1 %98  ;;  %v96_v26 = vpop.xlane.xlu0 %95 }
  0x9d   :  { %v127_v45 = vmul.f32 0.03125, %v96_v26  ;;  %v128_v49 = vmul.f32 0.03125, %v99_v23  ;;  %v157_v53 = vmul.f32 %v6420_v42, %v6420_v42  ;;  %v158_v57 = vmul.f32 %v6423_v48, %v6423_v48 }
  0x9f   :  { %v6426_v50 = vsub.f32 %v6232_v17, %v127_v45  ;;  %v6431_v56 = vsub.f32 %v6227_v16, %v128_v49  ;;  %v185_v17 = vsel %vm69_vm0, %v157_v53, 0.0  ;;  %v188_v63 = vsel %vm69_vm0, %v158_v57, 0.0 }
  0xa0   :  { %v105_v27 = vpop.xlane.xlu1 %104  ;;  %v102_v31 = vpop.xlane.xlu0 %101 }
  0xa1   :  { %v129_v52 = vmul.f32 0.03125, %v102_v31  ;;  %v130_v13 = vmul.f32 0.03125, %v105_v27  ;;  %v159_v60 = vmul.f32 %v6426_v50, %v6426_v50  ;;  %v160_v0 = vmul.f32 %v6431_v56, %v6431_v56 }
  0xa3   :  { %v6436_v58 = vsub.f32 %v6246_v21, %v129_v52  ;;  %v6442_v62 = vsub.f32 %v6241_v20, %v130_v13 }
  0xa4   :  { %v111_v44 = vpop.xlane.xlu1 %110  ;;  %v108_v46 = vpop.xlane.xlu0 %107 }
  0xa5   :  { %v131_v12 = vmul.f32 0.03125, %v108_v46  ;;  %v132_v16 = vmul.f32 0.03125, %v111_v44  ;;  %v161_v2 = vmul.f32 %v6436_v58, %v6436_v58 }
  0xa7   :  { %v6450_v21 = vsub.f32 %v6260_v25, %v131_v12  ;;  %v6458_v11 = vsub.f32 %v6255_v24, %v132_v16  ;;  %v53_v16 = vld [vmem:[%s9168_s7 + $0x10] sm:$0xff] }
  0xa8   :  { %v117_v55 = vpop.xlane.xlu1 %116  ;;  %v114_v59 = vpop.xlane.xlu0 %113 }
  0xa9   :  { %560 = vrot.lane.b32.xlu1 %v6358_v51, %s6112_s22  ;;  %v133_v6 = vmul.f32 0.03125, %v114_v59  ;;  %v134_v25 = vmul.f32 0.03125, %v117_v55  ;;  %v163_v19 = vmul.f32 %v6450_v21, %v6450_v21 }
  0xaa   :  { %558 = vrot.lane.b32.xlu0 %v6369_v54, %s6112_s22 }
  0xab   :  { %v6464_v14 = vsub.f32 %v6274_v29, %v133_v6  ;;  %v6473_v23 = vsub.f32 %v6269_v28, %v134_v25  ;;  %v203_v27 = vsel %vm69_vm0, %v163_v19, 0.0  ;;  %v164_v29 = vmul.f32 %v6458_v11, %v6458_v11  ;;  %v51_v6 = vld [vmem:[%s9168_s7] sm:$0xff] }
  0xac   :  { %v6447_v3 = vpop.permute.xlu1 %576  ;;  %v6455_v20 = vpop.permute.xlu0 %578 }
  0xad   :  { %v165_v30 = vmul.f32 %v6464_v14, %v6464_v14  ;;  %v206_v41 = vsel %vm69_vm0, %v164_v29, 0.0  ;;  %v166_v28 = vmul.f32 %v6473_v23, %v6473_v23 }
  0xaf   :  { %v209_v44 = vsel %vm69_vm0, %v165_v30, 0.0  ;;  %v212_v46 = vsel %vm69_vm0, %v166_v28, 0.0 }
  0xb0   :  { %v6469_v22 = vpop.permute.xlu1 %574  ;;  %v6475_v26 = vpop.permute.xlu0 %570 }
  0xb4   :  { %v6482_v31 = vpop.permute.xlu1 %572  ;;  %v6488_v45 = vpop.permute.xlu0 %566 }
  0xb8   :  { %v6491_v49 = vpop.permute.xlu1 %568  ;;  %v6493_v52 = vpop.permute.xlu0 %562 }
  0xbc   :  { %v6495_v53 = vpop.permute.xlu1 %564 }
  0xc9   :  { %174 = vadd.xlane.f32.xlu0 %v173_v10  ;;  %v191_v10 = vsel %vm69_vm0, %v159_v60, 0.0 }
  0xcd   :  { %177 = vadd.xlane.f32.xlu1 %v176_v5  ;;  %180 = vadd.xlane.f32.xlu0 %v179_v9  ;;  %v194_v5 = vsel %vm69_vm0, %v160_v0, 0.0  ;;  %v162_v9 = vmul.f32 %v6442_v62, %v6442_v62 }
  0xcf   :  { %v200_v24 = vsel %vm69_vm0, %v162_v9, 0.0 }
  0xd1   :  { %183 = vadd.xlane.f32.xlu1 %v182_v8  ;;  %v197_v8 = vsel %vm69_vm0, %v161_v2, 0.0  ;;  %v49_v2 = vld [vmem:[%s9166_s5] sm:$0x3f] }
  0xe2   :  { %556 = vrot.lane.b32.xlu1 %v6408_v15, %s6112_s22 }
  0xe3   :  { %554 = vrot.lane.b32.xlu0 %v6413_v18, %s6112_s22 }
 0x102   :  { %186 = vadd.xlane.f32.xlu0 %v185_v17  ;;  %v279_v17 = vlaneseq }
 0x104   :  { %v6503_v0 = vshrl.u32 %v279_v17, 7 }
 0x106   :  { %189 = vadd.xlane.f32.xlu1 %v188_v63  ;;  %192 = vadd.xlane.f32.xlu0 %v191_v10  ;;  %v52_v63 = vld [vmem:[%s9168_s7 + $0x8] sm:$0xff]  ;;  %9247 = vst [vmem:[#allocation5_spill] sm:$0xff] %v6503_v0  ;;  %v281_v10 = vsub.s32 1, %v6503_v0 }
 0x108   :  { %v6518_v9 = vrot.slane %v49_v2, %v281_v10 }
 0x10a   :  { %195 = vadd.xlane.f32.xlu1 %v194_v5  ;;  %198 = vadd.xlane.f32.xlu0 %v197_v8  ;;  %v301_v5 = vsub.s32 2, %v6503_v0 }
 0x10c   :  { %v6523_v19 = vrot.slane %v49_v2, %v301_v5 }
 0x10e   :  { %201 = vadd.xlane.f32.xlu1 %v200_v24  ;;  %204 = vadd.xlane.f32.xlu0 %v203_v27 }
 0x112   :  { %207 = vadd.xlane.f32.xlu1 %v206_v41  ;;  %210 = vadd.xlane.f32.xlu0 %v209_v44 }
 0x116   :  { %213 = vadd.xlane.f32.xlu1 %v212_v46 }
 0x11d   :  { %v169_v55 = vpop.xlane.xlu0 %168 }
 0x11e   :  { %v215_v13 = vmul.f32 0.03125, %v169_v55 }
 0x120   :  { %v231_v57 = vadd.f32 1e-05, %v215_v13 }
 0x121   :  { %v172_v12 = vpop.xlane.xlu1 %171 }
 0x122   :  { %5929 = vrsqrt.f32 %v231_v57  ;;  %v216_v59 = vmul.f32 0.03125, %v172_v12 }
 0x124   :  { %v232_v60 = vadd.f32 1e-05, %v216_v59 }
 0x126   :  { %5931 = vrsqrt.f32 %v232_v60 }
 0x127   :  { %552 = vrot.lane.b32.xlu1 %v53_v16, %s6112_s22 }
 0x128   :  { %550 = vrot.lane.b32.xlu0 %v52_v63, %s6112_s22 }
 0x12b   :  { %548 = vrot.lane.b32.xlu1 %v51_v6, %s6112_s22  ;;  %s6114_s22 = smov 96  }
 0x12c   :  { %754 = vrot.lane.b32.xlu0 %v6295_v34, %s6113_s21 }
 0x12f   :  { %v5930_v25 = vpop.eup %5929  ;;  %752 = vrot.lane.b32.xlu1 %v6283_v32, %s6113_s21 }
 0x130   :  { %v263_v8 = vmul.f32 %v5930_v25, %v6344_v43  ;;  %750 = vrot.lane.b32.xlu0 %v6290_v33, %s6113_s21 }
 0x132   :  { %v283_v24 = vmul.f32 %v6518_v9, %v263_v8 }
 0x133   :  { %v5932_v27 = vpop.eup %5931  ;;  %748 = vrot.lane.b32.xlu1 %v6304_v35, %s6113_s21  ;;  %v6557_v35 = vpop.permute.xlu0 %558 }
 0x134   :  { %v303_v34 = vadd.f32 %v6523_v19, %v283_v24  ;;  %v264_v29 = vmul.f32 %v5932_v27, %v6349_v47  ;;  %746 = vrot.lane.b32.xlu0 %v6309_v36, %s6113_s21  ;;  %v6559_v36 = vpop.permute.xlu1 %560 }
 0x136   :  { %5131 = vmatprep.mubr.msk.f32.mxu0 %vm69_vm0, %v303_v34  ;;  %v284_v32 = vmul.f32 %v6518_v9, %v264_v29 }
 0x137   :  { %744 = vrot.lane.b32.xlu1 %v6318_v37, %s6113_s21 }
 0x138   :  { %v304_v33 = vadd.f32 %v6523_v19, %v284_v32  ;;  %742 = vrot.lane.b32.xlu0 %v6323_v38, %s6113_s21 }
 0x13a   :  { %5132 = vmatmul.mubr.msk.f32.vlgmr.msra.gmra.mxu0 %vm69_vm0, %v304_v33 }
 0x13b   :  { %740 = vrot.lane.b32.xlu1 %v6332_v39, %s6113_s21 }
 0x13c   :  { %738 = vrot.lane.b32.xlu0 %v6337_v40, %s6113_s21 }
 0x13f   :  { %736 = vrot.lane.b32.xlu1 %v6358_v51, %s6113_s21 }
 0x140   :  { %734 = vrot.lane.b32.xlu0 %v6369_v54, %s6113_s21 }
 0x143   :  { %732 = vrot.lane.b32.xlu1 %v6408_v15, %s6113_s21 }
 0x144   :  { %730 = vrot.lane.b32.xlu0 %v6413_v18, %s6113_s21 }
 0x147   :  { %728 = vrot.lane.b32.xlu1 %v53_v16, %s6113_s21 }
 0x148   :  { %726 = vrot.lane.b32.xlu0 %v52_v63, %s6113_s21 }
 0x14b   :  { %724 = vrot.lane.b32.xlu1 %v51_v6, %s6113_s21 }
 0x152   :  { %v175_v37 = vpop.xlane.xlu0 %174 }
 0x153   :  { %v217_v38 = vmul.f32 0.03125, %v175_v37 }
 0x155   :  { %v233_v39 = vadd.f32 1e-05, %v217_v38 }
 0x156   :  { %v178_v40 = vpop.xlane.xlu1 %177  ;;  %v181_v43 = vpop.xlane.xlu0 %180 }
 0x157   :  { %5933 = vrsqrt.f32 %v233_v39  ;;  %v218_v47 = vmul.f32 0.03125, %v178_v40  ;;  %v219_v51 = vmul.f32 0.03125, %v181_v43 }
 0x159   :  { %v234_v54 = vadd.f32 1e-05, %v218_v47  ;;  %v235_v15 = vadd.f32 1e-05, %v219_v51 }
 0x15a   :  { %v184_v18 = vpop.xlane.xlu1 %183 }
 0x15b   :  { %5935 = vrsqrt.f32 %v234_v54  ;;  %v220_v30 = vmul.f32 0.03125, %v184_v18 }
 0x15c   :  { %5937 = vrsqrt.f32 %v235_v15 }
 0x15d   :  { %v236_v41 = vadd.f32 1e-05, %v220_v30 }
 0x15e   :  { %v6579_v2 = vpop.permute.xlu1 %556 }
 0x15f   :  { %5939 = vrsqrt.f32 %v236_v41 }
 0x164   :  { %v5934_v44 = vpop.eup %5933 }
 0x165   :  { %v265_v28 = vmul.f32 %v5934_v44, %v6382_v61 }
 0x167   :  { %v285_v46 = vmul.f32 %v6518_v9, %v265_v28 }
 0x168   :  { %v5936_v55 = vpop.eup %5935 }
 0x169   :  { %v5938_v13 = vpop.eup %5937  ;;  %v305_v57 = vadd.f32 %v6523_v19, %v285_v46  ;;  %v266_v12 = vmul.f32 %v5936_v55, %v6385_v1 }
 0x16a   :  { %v267_v59 = vmul.f32 %v5938_v13, %v6388_v4  ;;  %v6577_v4 = vpop.permute.xlu0 %554 }
 0x16b   :  { %5134 = vmatprep.mubr.msk.f32.mxu0 %vm69_vm0, %v305_v57  ;;  %v286_v17 = vmul.f32 %v6518_v9, %v266_v12 }
 0x16c   :  { %v5940_v60 = vpop.eup %5939  ;;  %v287_v16 = vmul.f32 %v6518_v9, %v267_v59 }
 0x16d   :  { %v306_v63 = vadd.f32 %v6523_v19, %v286_v17  ;;  %v268_v61 = vmul.f32 %v5940_v60, %v6393_v7 }
 0x16e   :  { %v307_v6 = vadd.f32 %v6523_v19, %v287_v16 }
 0x16f   :  { %5135 = vmatmul.mubr.msk.f32.gmra.mxu0 %vm69_vm0, %v306_v63  ;;  %v288_v10 = vmul.f32 %v6518_v9, %v268_v61 }
 0x170   :  { %5137 = vmatprep.mubr.msk.f32.mxu0 %vm69_vm0, %v307_v6 }
 0x171   :  { %v308_v1 = vadd.f32 %v6523_v19, %v288_v10 }
 0x173   :  { %5138 = vmatmul.mubr.msk.f32.gmra.mxu0 %vm69_vm0, %v308_v1 }
 0x18b   :  { %v187_v5 = vpop.xlane.xlu0 %186 }
 0x18c   :  { %v221_v25 = vmul.f32 0.03125, %v187_v5 }
 0x18e   :  { %v237_v8 = vadd.f32 1e-05, %v221_v25 }
 0x18f   :  { %v190_v7 = vpop.xlane.xlu1 %189  ;;  %v193_v24 = vpop.xlane.xlu0 %192 }
 0x190   :  { %5941 = vrsqrt.f32 %v237_v8  ;;  %v222_v27 = vmul.f32 0.03125, %v190_v7  ;;  %v223_v34 = vmul.f32 0.03125, %v193_v24 }
 0x192   :  { %v238_v29 = vadd.f32 1e-05, %v222_v27  ;;  %v239_v32 = vadd.f32 1e-05, %v223_v34 }
 0x193   :  { %v196_v33 = vpop.xlane.xlu1 %195  ;;  %v199_v37 = vpop.xlane.xlu0 %198 }
 0x194   :  { %5943 = vrsqrt.f32 %v238_v29  ;;  %v224_v38 = vmul.f32 0.03125, %v196_v33  ;;  %v225_v39 = vmul.f32 0.03125, %v199_v37 }
 0x195   :  { %5945 = vrsqrt.f32 %v239_v32 }
 0x196   :  { %v240_v40 = vadd.f32 1e-05, %v224_v38  ;;  %v241_v43 = vadd.f32 1e-05, %v225_v39 }
 0x197   :  { %v202_v47 = vpop.xlane.xlu1 %201  ;;  %v205_v51 = vpop.xlane.xlu0 %204 }
 0x198   :  { %5947 = vrsqrt.f32 %v240_v40  ;;  %v226_v54 = vmul.f32 0.03125, %v202_v47  ;;  %v227_v15 = vmul.f32 0.03125, %v205_v51 }
 0x199   :  { %5949 = vrsqrt.f32 %v241_v43 }
 0x19a   :  { %v242_v18 = vadd.f32 1e-05, %v226_v54  ;;  %v243_v30 = vadd.f32 1e-05, %v227_v15 }
 0x19b   :  { %v208_v41 = vpop.xlane.xlu1 %207  ;;  %v211_v44 = vpop.xlane.xlu0 %210 }
 0x19c   :  { %5951 = vrsqrt.f32 %v242_v18  ;;  %v228_v28 = vmul.f32 0.03125, %v208_v41  ;;  %v229_v46 = vmul.f32 0.03125, %v211_v44 }
 0x19d   :  { %v5942_v55 = vpop.eup %5941  ;;  %5953 = vrsqrt.f32 %v243_v30 }
 0x19e   :  { %v244_v13 = vadd.f32 1e-05, %v228_v28  ;;  %v245_v57 = vadd.f32 1e-05, %v229_v46  ;;  %v269_v12 = vmul.f32 %v5942_v55, %v6420_v42 }
 0x19f   :  { %v214_v59 = vpop.xlane.xlu1 %213  ;;  %v6621_v28 = vpop.permute.xlu0 %550 }
 0x1a0   :  { %5955 = vrsqrt.f32 %v244_v13  ;;  %v230_v17 = vmul.f32 0.03125, %v214_v59  ;;  %v289_v60 = vmul.f32 %v6518_v9, %v269_v12 }
 0x1a1   :  { %v5944_v16 = vpop.eup %5943  ;;  %5957 = vrsqrt.f32 %v245_v57 }
 0x1a2   :  { %v5946_v63 = vpop.eup %5945  ;;  %v246_v61 = vadd.f32 1e-05, %v230_v17  ;;  %v309_v6 = vadd.f32 %v6523_v19, %v289_v60  ;;  %v270_v10 = vmul.f32 %v5944_v16, %v6423_v48 }
 0x1a3   :  { %v271_v1 = vmul.f32 %v5946_v63, %v6426_v50  ;;  %v6623_v46 = vpop.permute.xlu0 %754  ;;  %v6627_v13 = vpop.permute.xlu1 %552 }
 0x1a4   :  { %5959 = vrsqrt.f32 %v246_v61  ;;  %5140 = vmatprep.mubr.msk.f32.mxu0 %vm69_vm0, %v309_v6  ;;  %v290_v42 = vmul.f32 %v6518_v9, %v270_v10 }
 0x1a5   :  { %v5948_v5 = vpop.eup %5947  ;;  %v291_v25 = vmul.f32 %v6518_v9, %v271_v1 }
 0x1a6   :  { %v5950_v8 = vpop.eup %5949  ;;  %v310_v7 = vadd.f32 %v6523_v19, %v290_v42  ;;  %v272_v24 = vmul.f32 %v5948_v5, %v6431_v56 }
 0x1a7   :  { %v311_v27 = vadd.f32 %v6523_v19, %v291_v25  ;;  %v273_v34 = vmul.f32 %v5950_v8, %v6436_v58  ;;  %v6625_v55 = vpop.permute.xlu0 %750  ;;  %v6647_v16 = vpop.permute.xlu1 %548 }
 0x1a8   :  { %5141 = vmatmul.mubr.msk.f32.gmra.mxu0 %vm69_vm0, %v310_v7  ;;  %v292_v48 = vmul.f32 %v6518_v9, %v272_v24 }
 0x1a9   :  { %v5952_v50 = vpop.eup %5951  ;;  %5143 = vmatprep.mubr.msk.f32.mxu0 %vm69_vm0, %v311_v27  ;;  %v293_v29 = vmul.f32 %v6518_v9, %v273_v34 }
 0x1aa   :  { %v5954_v32 = vpop.eup %5953  ;;  %v312_v33 = vadd.f32 %v6523_v19, %v292_v48  ;;  %v274_v37 = vmul.f32 %v5952_v50, %v6442_v62 }
 0x1ab   :  { %v313_v56 = vadd.f32 %v6523_v19, %v293_v29  ;;  %v275_v38 = vmul.f32 %v5954_v32, %v6450_v21  ;;  %v6657_v6 = vpop.permute.xlu1 %752 }
 0x1ac   :  { %5144 = vmatmul.mubr.msk.f32.gmra.mxu0 %vm69_vm0, %v312_v33  ;;  %v294_v58 = vmul.f32 %v6518_v9, %v274_v37 }
 0x1ad   :  { %v5956_v39 = vpop.eup %5955  ;;  %5146 = vmatprep.mubr.msk.f32.mxu0 %vm69_vm0, %v313_v56  ;;  %v295_v40 = vmul.f32 %v6518_v9, %v275_v38 }
 0x1ae   :  { %v5958_v43 = vpop.eup %5957  ;;  %v314_v47 = vadd.f32 %v6523_v19, %v294_v58  ;;  %v276_v51 = vmul.f32 %v5956_v39, %v6458_v11 }
 0x1af   :  { %v315_v62 = vadd.f32 %v6523_v19, %v295_v40  ;;  %v277_v54 = vmul.f32 %v5958_v43, %v6464_v14  ;;  %v6669_v25 = vpop.permute.xlu1 %748 }
 0x1b0   :  { %5147 = vmatmul.mubr.msk.f32.gmra.mxu0 %vm69_vm0, %v314_v47  ;;  %v296_v21 = vmul.f32 %v6518_v9, %v276_v51 }
 0x1b1   :  { %v5960_v15 = vpop.eup %5959  ;;  %5149 = vmatprep.mubr.msk.f32.mxu0 %vm69_vm0, %v315_v62  ;;  %v297_v18 = vmul.f32 %v6518_v9, %v277_v54 }
 0x1b2   :  { %v316_v30 = vadd.f32 %v6523_v19, %v296_v21  ;;  %v278_v41 = vmul.f32 %v5960_v15, %v6473_v23  ;;  %v6629_v23 = vpop.permute.xlu0 %746 }
 0x1b3   :  { %v317_v44 = vadd.f32 %v6523_v19, %v297_v18  ;;  %v6679_v24 = vpop.permute.xlu1 %744 }
 0x1b4   :  { %5150 = vmatmul.mubr.msk.f32.gmra.mxu0 %vm69_vm0, %v316_v30  ;;  %v298_v11 = vmul.f32 %v6518_v9, %v278_v41 }
 0x1b5   :  { %5152 = vmatprep.mubr.msk.f32.mxu0 %vm69_vm0, %v317_v44 }
 0x1b6   :  { %v318_v14 = vadd.f32 %v6523_v19, %v298_v11  ;;  %v6691_v29 = vpop.permute.xlu0 %742 }
 0x1b7   :  { %v6693_v32 = vpop.permute.xlu1 %740 }
 0x1b8   :  { %5153 = vmatmul.mubr.msk.f32.gmra.mxu0 %vm69_vm0, %v318_v14 }
 0x1ba   :  { %v6703_v56 = vpop.permute.xlu0 %738 }
 0x1bb   :  { %v6705_v38 = vpop.permute.xlu1 %736 }
 0x1be   :  { %v6717_v47 = vpop.permute.xlu0 %734 }
 0x1bf   :  { %v6719_v51 = vpop.permute.xlu1 %732 }
 0x1c2   :  { %v6729_v21 = vpop.permute.xlu0 %730 }
 0x1c3   :  { %v6731_v15 = vpop.permute.xlu1 %728 }
 0x1c6   :  { %v6745_v14 = vpop.permute.xlu0 %726 }
 0x1fa   :  { %v6631_v57 = vpop.f32.mrf.mxu0 }
 0x1fb   :  { %v611_v9 = vmul.f32 %v6631_v57, %v6455_v20  ;;  %v783_v19 = vmul.f32 %v6631_v57, %v6629_v23  ;;  %v609_v17 = vmul.f32 %v6631_v57, %v6469_v22  ;;  %v607_v63 = vmul.f32 %v6631_v57, %v6475_v26 }
 0x1fc   :  { %v6637_v12 = vpop.f32.mrf.mxu0  ;;  %v605_v10 = vmul.f32 %v6631_v57, %v6488_v45  ;;  %v603_v42 = vmul.f32 %v6631_v57, %v6493_v52  ;;  %v601_v8 = vmul.f32 %v6631_v57, %v6557_v35  ;;  %v599_v27 = vmul.f32 %v6631_v57, %v6577_v4 }
 0x1fd   :  { %946 = vrot.lane.b32.xlu0 %v611_v9, %s6114_s22  ;;  %2306 = vrot.lane.b32.xlu1 %v783_v19, %s6113_s21  ;;  %v516_v59 = vmul.f32 0.17677669, %v6637_v12  ;;  %v610_v60 = vmul.f32 %v6447_v3, %v6637_v12  ;;  %v608_v61 = vmul.f32 %v6482_v31, %v6637_v12  ;;  %v606_v1 = vmul.f32 %v6491_v49, %v6637_v12  ;;  %v6747_v9 = vpop.permute.xlu1 %724 }
 0x1fe   :  { %v604_v5 = vmul.f32 %v6495_v53, %v6637_v12  ;;  %v602_v7 = vmul.f32 %v6559_v36, %v6637_v12  ;;  %v600_v34 = vmul.f32 %v6579_v2, %v6637_v12  ;;  %v597_v48 = vmul.f32 %v6631_v57, %v6621_v28 }
 0x1ff   :  { %5187 = vmatprep.mubr.msk.f32.mxu1 %vm69_vm0, %v516_v59  ;;  %v598_v50 = vmul.f32 %v6627_v13, %v6637_v12  ;;  %v787_v33 = vmul.f32 %v6631_v57, %v6623_v46  ;;  %v784_v37 = vmul.f32 %v6669_v25, %v6637_v12  ;;  %v785_v58 = vmul.f32 %v6631_v57, %v6625_v55 }
 0x200   :  { %v782_v39 = vmul.f32 %v6679_v24, %v6637_v12  ;;  %v780_v40 = vmul.f32 %v6693_v32, %v6637_v12  ;;  %v781_v43 = vmul.f32 %v6631_v57, %v6691_v29  ;;  %v778_v62 = vmul.f32 %v6705_v38, %v6637_v12 }
 0x201   :  { %942 = vrot.lane.b32.xlu0 %v609_v17, %s6114_s22  ;;  %944 = vrot.lane.b32.xlu1 %v610_v60, %s6114_s22  ;;  %v779_v54 = vmul.f32 %v6631_v57, %v6703_v56  ;;  %v776_v18 = vmul.f32 %v6719_v51, %v6637_v12  ;;  %v777_v30 = vmul.f32 %v6631_v57, %v6717_v47 }
 0x202   :  { %v774_v44 = vmul.f32 %v6731_v15, %v6637_v12  ;;  %v775_v11 = vmul.f32 %v6631_v57, %v6729_v21  ;;  %v772_v17 = vmul.f32 %v6747_v9, %v6637_v12  ;;  %v773_v60 = vmul.f32 %v6631_v57, %v6745_v14 }
 0x205   :  { %938 = vrot.lane.b32.xlu0 %v607_v63, %s6114_s22  ;;  %940 = vrot.lane.b32.xlu1 %v608_v61, %s6114_s22  ;;  %v596_v61 = vmul.f32 %v6647_v16, %v6637_v12 }
 0x209   :  { %934 = vrot.lane.b32.xlu0 %v605_v10, %s6114_s22  ;;  %936 = vrot.lane.b32.xlu1 %v606_v1, %s6114_s22  ;;  %v786_v1 = vmul.f32 %v6657_v6, %v6637_v12 }
 0x20d   :  { %930 = vrot.lane.b32.xlu0 %v603_v42, %s6114_s22  ;;  %932 = vrot.lane.b32.xlu1 %v604_v5, %s6114_s22 }
 0x211   :  { %926 = vrot.lane.b32.xlu0 %v601_v8, %s6114_s22  ;;  %928 = vrot.lane.b32.xlu1 %v602_v7, %s6114_s22 }
 0x215   :  { %922 = vrot.lane.b32.xlu0 %v599_v27, %s6114_s22  ;;  %924 = vrot.lane.b32.xlu1 %v600_v34, %s6114_s22 }
 0x219   :  { %918 = vrot.lane.b32.xlu0 %v597_v48, %s6114_s22  ;;  %920 = vrot.lane.b32.xlu1 %v598_v50, %s6114_s22 }
 0x21d   :  { %2314 = vrot.lane.b32.xlu0 %v787_v33, %s6113_s21  ;;  %2308 = vrot.lane.b32.xlu1 %v784_v37, %s6113_s21 }
 0x221   :  { %2310 = vrot.lane.b32.xlu0 %v785_v58, %s6113_s21  ;;  %2304 = vrot.lane.b32.xlu1 %v782_v39, %s6113_s21 }
 0x225   :  { %2300 = vrot.lane.b32.xlu1 %v780_v40, %s6113_s21  ;;  %2302 = vrot.lane.b32.xlu0 %v781_v43, %s6113_s21 }
 0x229   :  { %2296 = vrot.lane.b32.xlu1 %v778_v62, %s6113_s21  ;;  %2298 = vrot.lane.b32.xlu0 %v779_v54, %s6113_s21 }
 0x22d   :  { %2292 = vrot.lane.b32.xlu1 %v776_v18, %s6113_s21  ;;  %2294 = vrot.lane.b32.xlu0 %v777_v30, %s6113_s21 }
 0x22f   :  { %v6739_v41 = vpop.f32.mrf.mxu0 }
 0x230   :  { %v627_v63 = vmul.f32 %v6739_v41, %v6455_v20  ;;  %v625_v10 = vmul.f32 %v6739_v41, %v6469_v22  ;;  %v623_v5 = vmul.f32 %v6739_v41, %v6475_v26  ;;  %v621_v7 = vmul.f32 %v6739_v41, %v6488_v45 }
 0x231   :  { %v6749_v19 = vpop.f32.mrf.mxu0  ;;  %2288 = vrot.lane.b32.xlu1 %v774_v44, %s6113_s21  ;;  %2290 = vrot.lane.b32.xlu0 %v775_v11, %s6113_s21  ;;  %v619_v27 = vmul.f32 %v6739_v41, %v6493_v52  ;;  %v617_v48 = vmul.f32 %v6739_v41, %v6557_v35  ;;  %v615_v33 = vmul.f32 %v6739_v41, %v6577_v4 }
 0x232   :  { %v518_v59 = vmul.f32 0.17677669, %v6749_v19  ;;  %v613_v58 = vmul.f32 %v6739_v41, %v6621_v28  ;;  %v626_v40 = vmul.f32 %v6447_v3, %v6749_v19  ;;  %v624_v62 = vmul.f32 %v6482_v31, %v6749_v19 }
 0x233   :  { %v6771_v42 = vpop.f32.mrf.mxu0  ;;  %v622_v18 = vmul.f32 %v6491_v49, %v6749_v19  ;;  %v620_v44 = vmul.f32 %v6495_v53, %v6749_v19 }
 0x234   :  { %5222 = vmatprep.mubr.msk.f32.mxu0 %vm69_vm0, %v518_v59  ;;  %v643_v8 = vmul.f32 %v6771_v42, %v6455_v20  ;;  %v641_v12 = vmul.f32 %v6771_v42, %v6469_v22  ;;  %v639_v34 = vmul.f32 %v6771_v42, %v6475_v26  ;;  %v637_v50 = vmul.f32 %v6771_v42, %v6488_v45 }
 0x235   :  { %2284 = vrot.lane.b32.xlu1 %v772_v17, %s6113_s21  ;;  %2286 = vrot.lane.b32.xlu0 %v773_v60, %s6113_s21  ;;  %v635_v37 = vmul.f32 %v6771_v42, %v6493_v52  ;;  %v633_v39 = vmul.f32 %v6771_v42, %v6557_v35  ;;  %v631_v43 = vmul.f32 %v6771_v42, %v6577_v4 }
 0x236   :  { %v629_v54 = vmul.f32 %v6771_v42, %v6621_v28  ;;  %v819_v30 = vmul.f32 %v6771_v42, %v6623_v46  ;;  %v817_v11 = vmul.f32 %v6771_v42, %v6625_v55  ;;  %v618_v59 = vmul.f32 %v6559_v36, %v6749_v19 }
 0x237   :  { %v813_v17 = vmul.f32 %v6771_v42, %v6691_v29  ;;  %v616_v60 = vmul.f32 %v6579_v2, %v6749_v19 }
 0x239   :  { %1107 = vrot.lane.b32.xlu1 %v627_v63, %s6114_s22  ;;  %916 = vrot.lane.b32.xlu0 %v596_v61, %s6114_s22  ;;  %v811_v63 = vmul.f32 %v6771_v42, %v6703_v56 }
 0x23d   :  { %1103 = vrot.lane.b32.xlu1 %v625_v10, %s6114_s22  ;;  %2312 = vrot.lane.b32.xlu0 %v786_v1, %s6113_s21  ;;  %v614_v1 = vmul.f32 %v6627_v13, %v6749_v19 }
 0x241   :  { %1099 = vrot.lane.b32.xlu1 %v623_v5, %s6114_s22  ;;  %1268 = vrot.lane.b32.xlu0 %v643_v8, %s6114_s22  ;;  %v809_v5 = vmul.f32 %v6771_v42, %v6717_v47  ;;  %v6853_v8 = vpop.f32.mrf.mxu0 }
 0x245   :  { %1095 = vrot.lane.b32.xlu1 %v621_v7, %s6114_s22  ;;  %1264 = vrot.lane.b32.xlu0 %v641_v12, %s6114_s22 }
 0x249   :  { %1091 = vrot.lane.b32.xlu1 %v619_v27, %s6114_s22  ;;  %1260 = vrot.lane.b32.xlu0 %v639_v34, %s6114_s22  ;;  %v612_v27 = vmul.f32 %v6647_v16, %v6749_v19  ;;  %v642_v34 = vmul.f32 %v6447_v3, %v6853_v8 }
 0x24d   :  { %1087 = vrot.lane.b32.xlu1 %v617_v48, %s6114_s22  ;;  %1256 = vrot.lane.b32.xlu0 %v637_v50, %s6114_s22 }
 0x251   :  { %1083 = vrot.lane.b32.xlu1 %v615_v33, %s6114_s22  ;;  %1252 = vrot.lane.b32.xlu0 %v635_v37, %s6114_s22  ;;  %v815_v33 = vmul.f32 %v6771_v42, %v6629_v23  ;;  %v640_v37 = vmul.f32 %v6482_v31, %v6853_v8 }
 0x255   :  { %1079 = vrot.lane.b32.xlu1 %v613_v58, %s6114_s22  ;;  %1248 = vrot.lane.b32.xlu0 %v633_v39, %s6114_s22 }
 0x259   :  { %1105 = vrot.lane.b32.xlu1 %v626_v40, %s6114_s22  ;;  %1244 = vrot.lane.b32.xlu0 %v631_v43, %s6114_s22  ;;  %v816_v40 = vmul.f32 %v6669_v25, %v6853_v8  ;;  %v638_v43 = vmul.f32 %v6491_v49, %v6853_v8 }
 0x25d   :  { %1101 = vrot.lane.b32.xlu1 %v624_v62, %s6114_s22  ;;  %1240 = vrot.lane.b32.xlu0 %v629_v54, %s6114_s22 }
 0x261   :  { %1097 = vrot.lane.b32.xlu1 %v622_v18, %s6114_s22  ;;  %2592 = vrot.lane.b32.xlu0 %v819_v30, %s6113_s21  ;;  %v814_v18 = vmul.f32 %v6679_v24, %v6853_v8  ;;  %v636_v30 = vmul.f32 %v6495_v53, %v6853_v8 }
 0x265   :  { %1093 = vrot.lane.b32.xlu1 %v620_v44, %s6114_s22  ;;  %2588 = vrot.lane.b32.xlu0 %v817_v11, %s6113_s21 }
 0x269   :  { %1089 = vrot.lane.b32.xlu1 %v618_v59, %s6114_s22  ;;  %2580 = vrot.lane.b32.xlu0 %v813_v17, %s6113_s21  ;;  %v812_v59 = vmul.f32 %v6693_v32, %v6853_v8  ;;  %v634_v17 = vmul.f32 %v6559_v36, %v6853_v8 }
 0x26d   :  { %1085 = vrot.lane.b32.xlu1 %v616_v60, %s6114_s22  ;;  %2576 = vrot.lane.b32.xlu0 %v811_v63, %s6113_s21 }
 0x26f   :  { %v6847_v61 = vpop.permute.xlu1 %2306  ;;  %v947_v10 = vpop.permute.xlu0 %946 }
 0x270   :  { %9248 = vst [vmem:[#allocation6_spill] sm:$0xff] %v6847_v61  ;;  %5155 = vmatprep.subr.msk.mxu1 %vm69_vm0, %v947_v10 }
 0x271   :  { %1081 = vrot.lane.b32.xlu1 %v614_v1, %s6114_s22  ;;  %2572 = vrot.lane.b32.xlu0 %v809_v5, %s6113_s21  ;;  %v632_v1 = vmul.f32 %v6579_v2, %v6853_v8 }
 0x272   :  { %5156 = vmatpush3.xpose.msk.msra.mxu1 %vm69_vm0, %v947_v10  ;;  %v810_v10 = vmul.f32 %v6705_v38, %v6853_v8 }
 0x273   :  { %v945_v7 = vpop.permute.xlu1 %944  ;;  %v943_v12 = vpop.permute.xlu0 %942 }
 0x274   :  { %5157 = vmatprep.subr.msk.mxu1 %vm69_vm0, %v945_v7 }
 0x275   :  { %1077 = vrot.lane.b32.xlu1 %v612_v27, %s6114_s22  ;;  %1266 = vrot.lane.b32.xlu0 %v642_v34, %s6114_s22  ;;  %v630_v27 = vmul.f32 %v6627_v13, %v6853_v8  ;;  %v6914_v34 = vpop.f32.mrf.mxu0 }
 0x276   :  { %5158 = vmatpush3.xpose.msk.msra.mxu1 %vm69_vm0, %v945_v7 }
 0x277   :  { %5159 = vmatprep.subr.msk.mxu1 %vm69_vm0, %v943_v12  ;;  %v941_v48 = vpop.permute.xlu1 %940  ;;  %v939_v50 = vpop.permute.xlu0 %938 }
 0x279   :  { %2584 = vrot.lane.b32.xlu1 %v815_v33, %s6113_s21  ;;  %1262 = vrot.lane.b32.xlu0 %v640_v37, %s6114_s22  ;;  %v659_v33 = vmul.f32 %v6914_v34, %v6455_v20  ;;  %v628_v37 = vmul.f32 %v6647_v16, %v6853_v8 }
 0x27a   :  { %5160 = vmatpush3.xpose.msk.msra.mxu1 %vm69_vm0, %v943_v12  ;;  %v808_v12 = vmul.f32 %v6719_v51, %v6853_v8 }
 0x27b   :  { %5161 = vmatprep.subr.msk.mxu1 %vm69_vm0, %v941_v48  ;;  %v937_v58 = vpop.permute.xlu1 %936  ;;  %v935_v39 = vpop.permute.xlu0 %934 }
 0x27d   :  { %2586 = vrot.lane.b32.xlu1 %v816_v40, %s6113_s21  ;;  %1258 = vrot.lane.b32.xlu0 %v638_v43, %s6114_s22  ;;  %v657_v43 = vmul.f32 %v6914_v34, %v6469_v22 }
 0x27e   :  { %5162 = vmatpush3.xpose.msk.msra.mxu1 %vm69_vm0, %v941_v48 }
 0x27f   :  { %5163 = vmatprep.subr.msk.mxu1 %vm69_vm0, %v939_v50  ;;  %v933_v62 = vpop.permute.xlu1 %932  ;;  %v931_v54 = vpop.permute.xlu0 %930 }
 0x281   :  { %2582 = vrot.lane.b32.xlu1 %v814_v18, %s6113_s21  ;;  %1254 = vrot.lane.b32.xlu0 %v636_v30, %s6114_s22 }
 0x282   :  { %5164 = vmatpush3.xpose.msk.msra.mxu1 %vm69_vm0, %v939_v50 }
 0x283   :  { %5165 = vmatprep.subr.msk.mxu1 %vm69_vm0, %v937_v58  ;;  %v929_v44 = vpop.permute.xlu1 %928  ;;  %v927_v11 = vpop.permute.xlu0 %926 }
 0x285   :  { %2578 = vrot.lane.b32.xlu1 %v812_v59, %s6113_s21  ;;  %1250 = vrot.lane.b32.xlu0 %v634_v17, %s6114_s22  ;;  %v655_v59 = vmul.f32 %v6914_v34, %v6475_v26 }
 0x286   :  { %5166 = vmatpush3.xpose.msk.msra.mxu1 %vm69_vm0, %v937_v58  ;;  %v6928_v58 = vpop.f32.mrf.mxu0 }
 0x287   :  { %5167 = vmatprep.subr.msk.mxu1 %vm69_vm0, %v935_v39  ;;  %v925_v60 = vpop.permute.xlu1 %924  ;;  %v923_v63 = vpop.permute.xlu0 %922 }
 0x288   :  { %v6942_v18 = vpop.f32.mrf.mxu0 }
 0x289   :  { %2574 = vrot.lane.b32.xlu1 %v810_v10, %s6113_s21  ;;  %1246 = vrot.lane.b32.xlu0 %v632_v1, %s6114_s22  ;;  %v675_v17 = vmul.f32 %v6942_v18, %v6455_v20  ;;  %v653_v1 = vmul.f32 %v6914_v34, %v6488_v45  ;;  %v663_v0 = vmul.f32 %v6942_v18, %v6577_v4 }
 0x28a   :  { %5168 = vmatpush3.xpose.msk.msra.mxu1 %vm69_vm0, %v935_v39 }
 0x28b   :  { %5169 = vmatprep.subr.msk.mxu1 %vm69_vm0, %v933_v62  ;;  %v921_v5 = vpop.permute.xlu1 %920  ;;  %v6908_v7 = vpop.permute.xlu0 %918 }
 0x28d   :  { %2570 = vrot.lane.b32.xlu1 %v808_v12, %s6113_s21  ;;  %1242 = vrot.lane.b32.xlu0 %v630_v27, %s6114_s22  ;;  %v673_v12 = vmul.f32 %v6942_v18, %v6469_v22 }
 0x28e   :  { %5170 = vmatpush3.xpose.msk.msra.mxu1 %vm69_vm0, %v933_v62  ;;  %v818_v62 = vmul.f32 %v6657_v6, %v6853_v8 }
 0x28f   :  { %5171 = vmatprep.subr.msk.mxu1 %vm69_vm0, %v931_v54  ;;  %v6920_v48 = vpop.permute.xlu1 %2308  ;;  %v6922_v50 = vpop.permute.xlu0 %2314 }
 0x290   :  { %9249 = vst [vmem:[#allocation7_spill] sm:$0xff] %v6920_v48  ;;  %9250 = vst [vmem:[#allocation8_spill] sm:$0xff] %v6922_v50 }
 0x291   :  { %1429 = vrot.lane.b32.xlu1 %v659_v33, %s6114_s22  ;;  %1238 = vrot.lane.b32.xlu0 %v628_v37, %s6114_s22  ;;  %v651_v33 = vmul.f32 %v6914_v34, %v6493_v52  ;;  %v671_v37 = vmul.f32 %v6942_v18, %v6475_v26 }
 0x292   :  { %5172 = vmatpush3.xpose.msk.msra.mxu1 %vm69_vm0, %v931_v54 }
 0x293   :  { %5173 = vmatprep.subr.msk.mxu1 %vm69_vm0, %v929_v44  ;;  %v6934_v39 = vpop.permute.xlu1 %2304  ;;  %v6936_v40 = vpop.permute.xlu0 %2310 }
 0x294   :  { %9251 = vst [vmem:[#allocation9_spill] sm:$0xff] %v6934_v39  ;;  %9252 = vst [vmem:[#allocation10_spill] sm:$0xff] %v6936_v40 }
 0x295   :  { %1425 = vrot.lane.b32.xlu1 %v657_v43, %s6114_s22  ;;  %2590 = vrot.lane.b32.xlu0 %v818_v62, %s6113_s21  ;;  %v649_v62 = vmul.f32 %v6914_v34, %v6557_v35 }
 0x296   :  { %5174 = vmatpush3.xpose.msk.msra.mxu1 %vm69_vm0, %v929_v44 }
 0x297   :  { %5175 = vmatprep.subr.msk.mxu1 %vm69_vm0, %v927_v11  ;;  %v6948_v54 = vpop.permute.xlu1 %2300  ;;  %v6950_v30 = vpop.permute.xlu0 %2302 }
 0x298   :  { %9253 = vst [vmem:[#allocation11_spill] sm:$0xff] %v6948_v54  ;;  %9254 = vst [vmem:[#allocation12_spill] sm:$0xff] %v6950_v30 }
 0x299   :  { %1421 = vrot.lane.b32.xlu1 %v655_v59, %s6114_s22  ;;  %1590 = vrot.lane.b32.xlu0 %v675_v17, %s6114_s22  ;;  %v669_v59 = vmul.f32 %v6942_v18, %v6488_v45 }
 0x29a   :  { %5176 = vmatpush3.xpose.msk.msra.mxu1 %vm69_vm0, %v927_v11 }
 0x29b   :  { %5177 = vmatprep.subr.msk.mxu1 %vm69_vm0, %v925_v60  ;;  %v6960_v44 = vpop.permute.xlu1 %2296  ;;  %v6962_v10 = vpop.permute.xlu0 %2298 }
 0x29c   :  { %9255 = vst [vmem:[#allocation13_spill] sm:$0xff] %v6960_v44  ;;  %9256 = vst [vmem:[#allocation14_spill] sm:$0xff] %v6962_v10 }
 0x29d   :  { %1417 = vrot.lane.b32.xlu1 %v653_v1, %s6114_s22  ;;  %1586 = vrot.lane.b32.xlu0 %v673_v12, %s6114_s22  ;;  %v647_v1 = vmul.f32 %v6914_v34, %v6577_v4  ;;  %v667_v12 = vmul.f32 %v6942_v18, %v6493_v52 }
 0x29e   :  { %5178 = vmatpush3.xpose.msk.msra.mxu1 %vm69_vm0, %v925_v60 }
 0x29f   :  { %5179 = vmatprep.subr.msk.mxu1 %vm69_vm0, %v923_v63  ;;  %v6972_v11 = vpop.permute.xlu1 %2292  ;;  %v6974_v27 = vpop.permute.xlu0 %2294 }
 0x2a0   :  { %9257 = vst [vmem:[#allocation15_spill] sm:$0xff] %v6972_v11  ;;  %9258 = vst [vmem:[#allocation16_spill] sm:$0xff] %v6974_v27 }
 0x2a1   :  { %1413 = vrot.lane.b32.xlu1 %v651_v33, %s6114_s22  ;;  %1582 = vrot.lane.b32.xlu0 %v671_v37, %s6114_s22  ;;  %v645_v37 = vmul.f32 %v6914_v34, %v6621_v28 }
 0x2a2   :  { %5180 = vmatpush3.xpose.msk.msra.mxu1 %vm69_vm0, %v923_v63 }
 0x2a3   :  { %5181 = vmatprep.subr.msk.mxu1 %vm69_vm0, %v921_v5  ;;  %v6984_v60 = vpop.permute.xlu1 %2288  ;;  %v6986_v43 = vpop.permute.xlu0 %2290 }
 0x2a4   :  { %9259 = vst [vmem:[#allocation17_spill] sm:$0xff] %v6984_v60  ;;  %9260 = vst [vmem:[#allocation18_spill] sm:$0xff] %v6986_v43 }
 0x2a5   :  { %1409 = vrot.lane.b32.xlu1 %v649_v62, %s6114_s22  ;;  %1578 = vrot.lane.b32.xlu0 %v669_v59, %s6114_s22  ;;  %v665_v62 = vmul.f32 %v6942_v18, %v6557_v35 }
 0x2a6   :  { %5182 = vmatpush3.xpose.msk.msra.mxu1 %vm69_vm0, %v921_v5 }
 0x2a7   :  { %5183 = vmatprep.subr.msk.mxu1 %vm69_vm0, %v6908_v7  ;;  %v6997_v63 = vpop.permute.xlu1 %2284  ;;  %v6999_v17 = vpop.permute.xlu0 %2286 }
 0x2a8   :  { %9261 = vst [vmem:[#allocation19_spill] sm:$0xff] %v6997_v63  ;;  %9262 = vst [vmem:[#allocation20_spill] sm:$0xff] %v6999_v17  ;;  %v7040_v63 = vpop.f32.mrf.mxu0 }
 0x2a9   :  { %1405 = vrot.lane.b32.xlu1 %v647_v1, %s6114_s22  ;;  %1574 = vrot.lane.b32.xlu0 %v667_v12, %s6114_s22  ;;  %v517_v1 = vmul.f32 0.17677669, %v6631_v57  ;;  %v658_v12 = vmul.f32 %v6447_v3, %v6928_v58  ;;  %v656_v57 = vmul.f32 %v6482_v31, %v6928_v58  ;;  %v664_v39 = vmul.f32 %v6579_v2, %v7040_v63 }
 0x2aa   :  { %5184 = vmatpush3.xpose.msk.msra.mxu1 %vm69_vm0, %v6908_v7  ;;  %v662_v48 = vmul.f32 %v6627_v13, %v7040_v63 }
 0x2ab   :  { %v1108_v5 = vpop.permute.xlu1 %1107  ;;  %v917_v33 = vpop.permute.xlu0 %916 }
 0x2ac   :  { %5185 = vmatprep.subr.msk.mxu1 %vm69_vm0, %v917_v33  ;;  %5190 = vmatprep.subr.msk.mxu0 %vm69_vm0, %v1108_v5 }
 0x2ad   :  { %1401 = vrot.lane.b32.xlu1 %v645_v37, %s6114_s22  ;;  %5191 = vmatpush3.xpose.msk.msra.mxu0 %vm69_vm0, %v1108_v5  ;;  %v520_v37 = vmul.f32 0.17677669, %v6853_v8 }
 0x2ae   :  { %1570 = vrot.lane.b32.xlu0 %v665_v62, %s6114_s22  ;;  %5186 = vmatpush3.xpose.msk.msra.mxu1 %vm69_vm0, %v917_v33  ;;  %v661_v62 = vmul.f32 %v6942_v18, %v6621_v28 }
 0x2af   :  { %v7019_v7 = vpop.permute.xlu1 %1103  ;;  %v7021_v59 = vpop.permute.xlu0 %2312 }
 0x2b0   :  { %9263 = vst [vmem:[#allocation21_spill] sm:$0xff] %v7021_v59  ;;  %v660_v59 = vmul.f32 %v6647_v16, %v7040_v63 }
 0x2b1   :  { %5188 = vmatmul.mubr.msk.f32.vlgmr.msra.gmra.mxu1 %vm69_vm0, %v517_v1  ;;  %1427 = vrot.lane.b32.xlu1 %v658_v12, %s6114_s22  ;;  %v654_v12 = vmul.f32 %v6491_v49, %v6928_v58 }
 0x2b2   :  { %1566 = vrot.lane.b32.xlu0 %v663_v0, %s6114_s22  ;;  %5257 = vmatprep.mubr.msk.f32.mxu1 %vm69_vm0, %v520_v37  ;;  %v674_v37 = vmul.f32 %v6447_v3, %v7040_v63 }
 0x2b3   :  { %v7033_v5 = vpop.permute.xlu1 %1099  ;;  %v1269_v33 = vpop.permute.xlu0 %1268 }
 0x2b4   :  { %5225 = vmatprep.subr.msk.mxu1 %vm69_vm0, %v1269_v33 }
 0x2b5   :  { %1423 = vrot.lane.b32.xlu1 %v656_v57, %s6114_s22  ;;  %5226 = vmatpush3.xpose.msk.msra.mxu1 %vm69_vm0, %v1269_v33  ;;  %v652_v33 = vmul.f32 %v6495_v53, %v6928_v58 }
 0x2b6   :  { %1562 = vrot.lane.b32.xlu0 %v661_v62, %s6114_s22  ;;  %v672_v62 = vmul.f32 %v6482_v31, %v7040_v63 }
 0x2b7   :  { %v7045_v0 = vpop.permute.xlu1 %1095  ;;  %v7047_v1 = vpop.permute.xlu0 %1264 }
 0x2b9   :  { %1419 = vrot.lane.b32.xlu1 %v654_v12, %s6114_s22  ;;  %v650_v12 = vmul.f32 %v6559_v36, %v6928_v58 }
 0x2ba   :  { %1588 = vrot.lane.b32.xlu0 %v674_v37, %s6114_s22  ;;  %v670_v37 = vmul.f32 %v6491_v49, %v7040_v63 }
 0x2bb   :  { %v7055_v17 = vpop.permute.xlu1 %1091  ;;  %v7057_v57 = vpop.permute.xlu0 %1260 }
 0x2bd   :  { %1415 = vrot.lane.b32.xlu1 %v652_v33, %s6114_s22  ;;  %v648_v33 = vmul.f32 %v6579_v2, %v6928_v58 }
 0x2be   :  { %1584 = vrot.lane.b32.xlu0 %v672_v62, %s6114_s22  ;;  %v668_v62 = vmul.f32 %v6495_v53, %v7040_v63 }
 0x2bf   :  { %v7065_v60 = vpop.permute.xlu1 %1087  ;;  %v7067_v43 = vpop.permute.xlu0 %1256 }
 0x2c1   :  { %1411 = vrot.lane.b32.xlu1 %v650_v12, %s6114_s22  ;;  %v646_v12 = vmul.f32 %v6627_v13, %v6928_v58 }
 0x2c2   :  { %1580 = vrot.lane.b32.xlu0 %v670_v37, %s6114_s22  ;;  %v666_v37 = vmul.f32 %v6559_v36, %v7040_v63 }
 0x2c3   :  { %v7075_v11 = vpop.permute.xlu1 %1083  ;;  %v7077_v27 = vpop.permute.xlu0 %1252 }
 0x2c5   :  { %1407 = vrot.lane.b32.xlu1 %v648_v33, %s6114_s22  ;;  %v644_v33 = vmul.f32 %v6647_v16, %v6928_v58 }
 0x2c6   :  { %1576 = vrot.lane.b32.xlu0 %v668_v62, %s6114_s22  ;;  %v7099_v62 = vpop.f32.mrf.mxu0 }
 0x2c7   :  { %v7085_v44 = vpop.permute.xlu1 %1079  ;;  %v7087_v10 = vpop.permute.xlu0 %1248  ;;  %v691_v61 = vmul.f32 %v7099_v62, %v6455_v20 }
 0x2c8   :  { %v7115_v40 = vpop.f32.mrf.mxu0 }
 0x2c9   :  { %1403 = vrot.lane.b32.xlu1 %v646_v12, %s6114_s22 }
 0x2ca   :  { %1572 = vrot.lane.b32.xlu0 %v666_v37, %s6114_s22  ;;  %v7128_v50 = vpop.f32.mrf.mxu0 }
 0x2cb   :  { %v1106_v54 = vpop.permute.xlu1 %1105  ;;  %v7095_v30 = vpop.permute.xlu0 %1244 }
 0x2cc   :  { %5192 = vmatprep.subr.msk.mxu0 %vm69_vm0, %v1106_v54 }
 0x2cd   :  { %1399 = vrot.lane.b32.xlu1 %v644_v33, %s6114_s22  ;;  %5193 = vmatpush3.xpose.msk.msra.mxu0 %vm69_vm0, %v1106_v54  ;;  %v689_v33 = vmul.f32 %v7099_v62, %v6469_v22 }
 0x2ce   :  { %1568 = vrot.lane.b32.xlu0 %v664_v39, %s6114_s22  ;;  %5194 = vmatprep.subr.msk.mxu0 %vm69_vm0, %v7019_v7 }
 0x2cf   :  { %v1102_v12 = vpop.permute.xlu1 %1101  ;;  %v7109_v37 = vpop.permute.xlu0 %1240 }
 0x2d1   :  { %1751 = vrot.lane.b32.xlu1 %v691_v61, %s6114_s22  ;;  %5195 = vmatpush3.xpose.msk.msra.mxu0 %vm69_vm0, %v7019_v7  ;;  %v687_v7 = vmul.f32 %v7099_v62, %v6475_v26 }
 0x2d2   :  { %1564 = vrot.lane.b32.xlu0 %v662_v48, %s6114_s22  ;;  %5196 = vmatprep.subr.msk.mxu0 %vm69_vm0, %v1102_v12 }
 0x2d3   :  { %v1098_v39 = vpop.permute.xlu1 %1097  ;;  %v7122_v54 = vpop.permute.xlu0 %2592 }
 0x2d4   :  { %9264 = vst [vmem:[#allocation22_spill] sm:$0xff] %v7122_v54  ;;  %v707_v54 = vmul.f32 %v7128_v50, %v6455_v20 }
 0x2d5   :  { %1747 = vrot.lane.b32.xlu1 %v689_v33, %s6114_s22  ;;  %5197 = vmatpush3.xpose.msk.msra.mxu0 %vm69_vm0, %v1102_v12  ;;  %v685_v33 = vmul.f32 %v7099_v62, %v6488_v45 }
 0x2d6   :  { %1560 = vrot.lane.b32.xlu0 %v660_v59, %s6114_s22  ;;  %5198 = vmatprep.subr.msk.mxu0 %vm69_vm0, %v7033_v5 }
 0x2d7   :  { %v1094_v61 = vpop.permute.xlu1 %1093  ;;  %v7135_v48 = vpop.permute.xlu0 %2588 }
 0x2d8   :  { %9265 = vst [vmem:[#allocation23_spill] sm:$0xff] %v7135_v48  ;;  %v705_v48 = vmul.f32 %v7128_v50, %v6469_v22 }
 0x2d9   :  { %1743 = vrot.lane.b32.xlu1 %v687_v7, %s6114_s22  ;;  %5199 = vmatpush3.xpose.msk.msra.mxu0 %vm69_vm0, %v7033_v5  ;;  %v683_v7 = vmul.f32 %v7099_v62, %v6493_v52 }
 0x2da   :  { %1912 = vrot.lane.b32.xlu0 %v707_v54, %s6114_s22  ;;  %5200 = vmatprep.subr.msk.mxu0 %vm69_vm0, %v1098_v39 }
 0x2db   :  { %v1090_v59 = vpop.permute.xlu1 %1089  ;;  %v7146_v12 = vpop.permute.xlu0 %2580 }
 0x2dc   :  { %9266 = vst [vmem:[#allocation24_spill] sm:$0xff] %v7146_v12  ;;  %v703_v12 = vmul.f32 %v7128_v50, %v6475_v26 }
 0x2dd   :  { %1739 = vrot.lane.b32.xlu1 %v685_v33, %s6114_s22  ;;  %5201 = vmatpush3.xpose.msk.msra.mxu0 %vm69_vm0, %v1098_v39  ;;  %v681_v33 = vmul.f32 %v7099_v62, %v6557_v35 }
 0x2de   :  { %1908 = vrot.lane.b32.xlu0 %v705_v48, %s6114_s22  ;;  %5202 = vmatprep.subr.msk.mxu0 %vm69_vm0, %v7045_v0 }
 0x2df   :  { %v1086_v5 = vpop.permute.xlu1 %1085  ;;  %v7157_v54 = vpop.permute.xlu0 %2576 }
 0x2e0   :  { %9267 = vst [vmem:[#allocation25_spill] sm:$0xff] %v7157_v54  ;;  %v701_v54 = vmul.f32 %v7128_v50, %v6488_v45 }
 0x2e1   :  { %1735 = vrot.lane.b32.xlu1 %v683_v7, %s6114_s22  ;;  %5203 = vmatpush3.xpose.msk.msra.mxu0 %vm69_vm0, %v7045_v0  ;;  %v679_v7 = vmul.f32 %v7099_v62, %v6577_v4 }
 0x2e2   :  { %1904 = vrot.lane.b32.xlu0 %v703_v12, %s6114_s22  ;;  %5204 = vmatprep.subr.msk.mxu0 %vm69_vm0, %v1094_v61 }
 0x2e3   :  { %v7168_v39 = vpop.permute.xlu1 %1081  ;;  %v7170_v48 = vpop.permute.xlu0 %2572 }
 0x2e4   :  { %9268 = vst [vmem:[#allocation26_spill] sm:$0xff] %v7170_v48  ;;  %v699_v48 = vmul.f32 %v7128_v50, %v6493_v52 }
 0x2e5   :  { %1731 = vrot.lane.b32.xlu1 %v681_v33, %s6114_s22  ;;  %5205 = vmatpush3.xpose.msk.msra.mxu0 %vm69_vm0, %v1094_v61  ;;  %v677_v33 = vmul.f32 %v7099_v62, %v6621_v28 }
 0x2e6   :  { %1900 = vrot.lane.b32.xlu0 %v701_v54, %s6114_s22  ;;  %5206 = vmatprep.subr.msk.mxu0 %vm69_vm0, %v7055_v17 }
 0x2e7   :  { %v7181_v0 = vpop.permute.xlu1 %1077  ;;  %v1267_v12 = vpop.permute.xlu0 %1266 }
 0x2e8   :  { %5227 = vmatprep.subr.msk.mxu1 %vm69_vm0, %v1267_v12 }
 0x2e9   :  { %1727 = vrot.lane.b32.xlu1 %v679_v7, %s6114_s22  ;;  %5207 = vmatpush3.xpose.msk.msra.mxu0 %vm69_vm0, %v7055_v17  ;;  %v697_v7 = vmul.f32 %v7128_v50, %v6557_v35 }
 0x2ea   :  { %1896 = vrot.lane.b32.xlu0 %v699_v48, %s6114_s22  ;;  %5228 = vmatpush3.xpose.msk.msra.mxu1 %vm69_vm0, %v1267_v12  ;;  %v690_v12 = vmul.f32 %v6447_v3, %v7115_v40 }
 0x2eb   :  { %5208 = vmatprep.subr.msk.mxu0 %vm69_vm0, %v1090_v59  ;;  %5229 = vmatprep.subr.msk.mxu1 %vm69_vm0, %v7047_v1  ;;  %v7196_v61 = vpop.permute.xlu1 %2584  ;;  %v1263_v54 = vpop.permute.xlu0 %1262 }
 0x2ec   :  { %9269 = vst [vmem:[#allocation27_spill] sm:$0xff] %v7196_v61  ;;  %v7230_v61 = vpop.f32.mrf.mxu0 }
 0x2ed   :  { %1723 = vrot.lane.b32.xlu1 %v677_v33, %s6114_s22  ;;  %5209 = vmatpush3.xpose.msk.msra.mxu0 %vm69_vm0, %v1090_v59  ;;  %v695_v33 = vmul.f32 %v7128_v50, %v6577_v4 }
 0x2ee   :  { %1892 = vrot.lane.b32.xlu0 %v697_v7, %s6114_s22  ;;  %5230 = vmatpush3.xpose.msk.msra.mxu1 %vm69_vm0, %v7047_v1  ;;  %v688_v7 = vmul.f32 %v6482_v31, %v7115_v40 }
 0x2ef   :  { %5210 = vmatprep.subr.msk.mxu0 %vm69_vm0, %v7065_v60  ;;  %5231 = vmatprep.subr.msk.mxu1 %vm69_vm0, %v1263_v54  ;;  %v7210_v17 = vpop.permute.xlu1 %2586  ;;  %v1259_v48 = vpop.permute.xlu0 %1258 }
 0x2f1   :  { %1749 = vrot.lane.b32.xlu1 %v690_v12, %s6114_s22  ;;  %5211 = vmatpush3.xpose.msk.msra.mxu0 %vm69_vm0, %v7065_v60  ;;  %v693_v12 = vmul.f32 %v7128_v50, %v6621_v28 }
 0x2f2   :  { %1888 = vrot.lane.b32.xlu0 %v695_v33, %s6114_s22  ;;  %5232 = vmatpush3.xpose.msk.msra.mxu1 %vm69_vm0, %v1263_v54  ;;  %v686_v33 = vmul.f32 %v6491_v49, %v7115_v40 }
 0x2f3   :  { %5212 = vmatprep.subr.msk.mxu0 %vm69_vm0, %v1086_v5  ;;  %5233 = vmatprep.subr.msk.mxu1 %vm69_vm0, %v7057_v57  ;;  %v7224_v1 = vpop.permute.xlu1 %2582  ;;  %v1255_v59 = vpop.permute.xlu0 %1254 }
 0x2f5   :  { %1745 = vrot.lane.b32.xlu1 %v688_v7, %s6114_s22  ;;  %5213 = vmatpush3.xpose.msk.msra.mxu0 %vm69_vm0, %v1086_v5  ;;  %v706_v7 = vmul.f32 %v6447_v3, %v7230_v61 }
 0x2f6   :  { %1884 = vrot.lane.b32.xlu0 %v693_v12, %s6114_s22  ;;  %5234 = vmatpush3.xpose.msk.msra.mxu1 %vm69_vm0, %v7057_v57  ;;  %v684_v12 = vmul.f32 %v6495_v53, %v7115_v40 }
 0x2f7   :  { %5214 = vmatprep.subr.msk.mxu0 %vm69_vm0, %v7075_v11  ;;  %5235 = vmatprep.subr.msk.mxu1 %vm69_vm0, %v1259_v48  ;;  %v7240_v60 = vpop.permute.xlu1 %2578  ;;  %v1251_v54 = vpop.permute.xlu0 %1250 }
 0x2f8   :  { %9270 = vst [vmem:[#allocation28_spill] sm:$0xff] %v7240_v60 }
 0x2f9   :  { %1741 = vrot.lane.b32.xlu1 %v686_v33, %s6114_s22  ;;  %5215 = vmatpush3.xpose.msk.msra.mxu0 %vm69_vm0, %v7075_v11  ;;  %v704_v33 = vmul.f32 %v6482_v31, %v7230_v61 }
 0x2fa   :  { %1910 = vrot.lane.b32.xlu0 %v706_v7, %s6114_s22  ;;  %5236 = vmatpush3.xpose.msk.msra.mxu1 %vm69_vm0, %v1259_v48  ;;  %v682_v7 = vmul.f32 %v6559_v36, %v7115_v40 }
 0x2fb   :  { %5216 = vmatprep.subr.msk.mxu0 %vm69_vm0, %v7168_v39  ;;  %5237 = vmatprep.subr.msk.mxu1 %vm69_vm0, %v7067_v43  ;;  %v7255_v57 = vpop.permute.xlu1 %2574  ;;  %v1247_v5 = vpop.permute.xlu0 %1246 }
 0x2fc   :  { %9271 = vst [vmem:[#allocation29_spill] sm:$0xff] %v7255_v57  ;;  %v7321_v57 = vpop.f32.mrf.mxu0 }
 0x2fd   :  { %1737 = vrot.lane.b32.xlu1 %v684_v12, %s6114_s22  ;;  %5217 = vmatpush3.xpose.msk.msra.mxu0 %vm69_vm0, %v7168_v39  ;;  %v702_v39 = vmul.f32 %v6491_v49, %v7230_v61 }
 0x2fe   :  { %1906 = vrot.lane.b32.xlu0 %v704_v33, %s6114_s22  ;;  %5238 = vmatpush3.xpose.msk.msra.mxu1 %vm69_vm0, %v7067_v43  ;;  %v680_v33 = vmul.f32 %v6579_v2, %v7115_v40  ;;  %v7363_v60 = vpop.f32.mrf.mxu0 }
 0x2ff   :  { %5218 = vmatprep.subr.msk.mxu0 %vm69_vm0, %v7085_v44  ;;  %5239 = vmatprep.subr.msk.mxu1 %vm69_vm0, %v1255_v59  ;;  %v7270_v11 = vpop.permute.xlu1 %2570  ;;  %v7272_v48 = vpop.permute.xlu0 %1242 }
 0x300   :  { %9272 = vst [vmem:[#allocation30_spill] sm:$0xff] %v7270_v11 }
 0x301   :  { %1733 = vrot.lane.b32.xlu1 %v682_v7, %s6114_s22  ;;  %5219 = vmatpush3.xpose.msk.msra.mxu0 %vm69_vm0, %v7085_v44  ;;  %v700_v7 = vmul.f32 %v6495_v53, %v7230_v61  ;;  %v519_v44 = vmul.f32 0.17677669, %v6739_v41 }
 0x302   :  { %1902 = vrot.lane.b32.xlu0 %v702_v39, %s6114_s22  ;;  %5240 = vmatpush3.xpose.msk.msra.mxu1 %vm69_vm0, %v1255_v59 }
 0x303   :  { %5220 = vmatprep.subr.msk.mxu0 %vm69_vm0, %v7181_v0  ;;  %5241 = vmatprep.subr.msk.mxu1 %vm69_vm0, %v7077_v27  ;;  %v1430_v43 = vpop.permute.xlu1 %1429  ;;  %v7287_v12 = vpop.permute.xlu0 %1238 }
 0x305   :  { %1729 = vrot.lane.b32.xlu1 %v680_v33, %s6114_s22  ;;  %5221 = vmatpush3.xpose.msk.msra.mxu0 %vm69_vm0, %v7181_v0  ;;  %v678_v33 = vmul.f32 %v6627_v13, %v7115_v40  ;;  %v522_v0 = vmul.f32 0.17677669, %v6928_v58 }
 0x306   :  { %1898 = vrot.lane.b32.xlu0 %v700_v7, %s6114_s22  ;;  %5242 = vmatpush3.xpose.msk.msra.mxu1 %vm69_vm0, %v7077_v27  ;;  %v698_v27 = vmul.f32 %v6559_v36, %v7230_v61 }
 0x307   :  { %5243 = vmatprep.subr.msk.mxu1 %vm69_vm0, %v1251_v54  ;;  %5260 = vmatprep.subr.msk.mxu0 %vm69_vm0, %v1430_v43  ;;  %v7302_v59 = vpop.permute.xlu1 %1425  ;;  %v7304_v39 = vpop.permute.xlu0 %2590 }
 0x308   :  { %5223 = vmatmul.mubr.msk.f32.vlgmr.msra.gmra.mxu0 %vm69_vm0, %v519_v44  ;;  %v676_v44 = vmul.f32 %v6647_v16, %v7115_v40 }
 0x309   :  { %1725 = vrot.lane.b32.xlu1 %v678_v33, %s6114_s22  ;;  %5261 = vmatpush3.xpose.msk.msra.mxu0 %vm69_vm0, %v1430_v43  ;;  %v696_v43 = vmul.f32 %v6579_v2, %v7230_v61 }
 0x30a   :  { %5292 = vmatprep.mubr.msk.f32.mxu0 %vm69_vm0, %v522_v0  ;;  %1894 = vrot.lane.b32.xlu0 %v698_v27, %s6114_s22  ;;  %v723_v0 = vmul.f32 %v7321_v57, %v6455_v20  ;;  %v694_v27 = vmul.f32 %v6627_v13, %v7230_v61  ;;  %v692_v20 = vmul.f32 %v6647_v16, %v7230_v61 }
 0x30b   :  { %5244 = vmatpush3.xpose.msk.msra.mxu1 %vm69_vm0, %v1251_v54  ;;  %v7317_v7 = vpop.permute.xlu1 %1421  ;;  %v1591_v11 = vpop.permute.xlu0 %1590 }
 0x30c   :  { %5245 = vmatprep.subr.msk.mxu1 %vm69_vm0, %v7087_v10 }
 0x30d   :  { %1721 = vrot.lane.b32.xlu1 %v676_v44, %s6114_s22 }
 0x30e   :  { %1890 = vrot.lane.b32.xlu0 %v696_v43, %s6114_s22  ;;  %v806_v43 = vmul.f32 %v6731_v15, %v6853_v8 }
 0x30f   :  { %5246 = vmatpush3.xpose.msk.msra.mxu1 %vm69_vm0, %v7087_v10  ;;  %v7331_v54 = vpop.permute.xlu1 %1417  ;;  %v7333_v33 = vpop.permute.xlu0 %1586 }
 0x310   :  { %5247 = vmatprep.subr.msk.mxu1 %vm69_vm0, %v1247_v5 }
 0x311   :  { %2073 = vrot.lane.b32.xlu1 %v723_v0, %s6114_s22 }
 0x312   :  { %1886 = vrot.lane.b32.xlu0 %v694_v27, %s6114_s22  ;;  %v804_v27 = vmul.f32 %v6747_v9, %v6853_v8  ;;  %v722_v8 = vmul.f32 %v6447_v3, %v7363_v60 }
 0x313   :  { %5248 = vmatpush3.xpose.msk.msra.mxu1 %vm69_vm0, %v1247_v5  ;;  %v7343_v44 = vpop.permute.xlu1 %1413  ;;  %v7345_v10 = vpop.permute.xlu0 %1582 }
 0x314   :  { %5249 = vmatprep.subr.msk.mxu1 %vm69_vm0, %v7095_v30 }
 0x315   :  { %2566 = vrot.lane.b32.xlu1 %v806_v43, %s6113_s21  ;;  %v721_v43 = vmul.f32 %v7321_v57, %v6469_v22  ;;  %v719_v22 = vmul.f32 %v7321_v57, %v6475_v26  ;;  %v717_v26 = vmul.f32 %v7321_v57, %v6488_v45  ;;  %v715_v45 = vmul.f32 %v7321_v57, %v6493_v52 }
 0x316   :  { %1882 = vrot.lane.b32.xlu0 %v692_v20, %s6114_s22 }
 0x317   :  { %5250 = vmatpush3.xpose.msk.msra.mxu1 %vm69_vm0, %v7095_v30  ;;  %v7357_v5 = vpop.permute.xlu1 %1409  ;;  %v7359_v0 = vpop.permute.xlu0 %1578 }
 0x318   :  { %5251 = vmatprep.subr.msk.mxu1 %vm69_vm0, %v7272_v48 }
 0x319   :  { %2562 = vrot.lane.b32.xlu1 %v804_v27, %s6113_s21  ;;  %v720_v27 = vmul.f32 %v6482_v31, %v7363_v60 }
 0x31a   :  { %2069 = vrot.lane.b32.xlu0 %v721_v43, %s6114_s22  ;;  %v718_v43 = vmul.f32 %v6491_v49, %v7363_v60 }
 0x31b   :  { %5252 = vmatpush3.xpose.msk.msra.mxu1 %vm69_vm0, %v7272_v48  ;;  %v7373_v30 = vpop.permute.xlu1 %1405  ;;  %v7375_v20 = vpop.permute.xlu0 %1574 }
 0x31c   :  { %5253 = vmatprep.subr.msk.mxu1 %vm69_vm0, %v7109_v37 }
 0x31d   :  { %2071 = vrot.lane.b32.xlu1 %v722_v8, %s6114_s22  ;;  %v521_v8 = vmul.f32 0.17677669, %v6771_v42 }
 0x31e   :  { %2065 = vrot.lane.b32.xlu0 %v719_v22, %s6114_s22  ;;  %v716_v22 = vmul.f32 %v6495_v53, %v7363_v60  ;;  %v714_v53 = vmul.f32 %v6559_v36, %v7363_v60  ;;  %v712_v36 = vmul.f32 %v6579_v2, %v7363_v60 }
 0x31f   :  { %5254 = vmatpush3.xpose.msk.msra.mxu1 %vm69_vm0, %v7109_v37  ;;  %v7387_v48 = vpop.permute.xlu1 %1401 }
 0x320   :  { %5255 = vmatprep.subr.msk.mxu1 %vm69_vm0, %v7287_v12  ;;  %v7393_v3 = vpop.permute.xlu0 %1570 }
 0x321   :  { %2067 = vrot.lane.b32.xlu1 %v720_v27, %s6114_s22  ;;  %v713_v27 = vmul.f32 %v7321_v57, %v6557_v35 }
 0x322   :  { %2061 = vrot.lane.b32.xlu0 %v717_v26, %s6114_s22 }
 0x323   :  { %5256 = vmatpush3.xpose.msk.msra.mxu1 %vm69_vm0, %v7287_v12  ;;  %v1428_v37 = vpop.permute.xlu1 %1427  ;;  %v524_v12 = vmul.f32 0.17677669, %v7040_v63 }
 0x324   :  { %5295 = vmatprep.subr.msk.mxu1 %vm69_vm0, %v1591_v11  ;;  %v7404_v31 = vpop.permute.xlu0 %1566  ;;  %5262 = vmatprep.subr.msk.mxu0 %vm69_vm0, %v1428_v37 }
 0x325   :  { %2063 = vrot.lane.b32.xlu1 %v718_v43, %s6114_s22  ;;  %5263 = vmatpush3.xpose.msk.msra.mxu0 %vm69_vm0, %v1428_v37  ;;  %v711_v37 = vmul.f32 %v7321_v57, %v6577_v4  ;;  %v710_v43 = vmul.f32 %v6627_v13, %v7363_v60  ;;  %v708_v13 = vmul.f32 %v6647_v16, %v7363_v60 }
 0x326   :  { %5258 = vmatmul.mubr.msk.f32.vlgmr.msra.gmra.mxu1 %vm69_vm0, %v521_v8  ;;  %2057 = vrot.lane.b32.xlu0 %v715_v45, %s6114_s22  ;;  %v805_v45 = vmul.f32 %v6771_v42, %v6745_v14 }
 0x327   :  { %5296 = vmatpush3.xpose.msk.msra.mxu1 %vm69_vm0, %v1591_v11  ;;  %5327 = vmatprep.mubr.msk.f32.mxu1 %vm69_vm0, %v524_v12  ;;  %v1424_v49 = vpop.permute.xlu1 %1423  ;;  %v848_v12 = vmul.f32 %v6669_v25, %v7040_v63 }
 0x328   :  { %5264 = vmatprep.subr.msk.mxu0 %vm69_vm0, %v7302_v59  ;;  %v7421_v52 = vpop.permute.xlu0 %1562 }
 0x329   :  { %2059 = vrot.lane.b32.xlu1 %v716_v22, %s6114_s22  ;;  %5265 = vmatpush3.xpose.msk.msra.mxu0 %vm69_vm0, %v7302_v59  ;;  %v709_v59 = vmul.f32 %v7321_v57, %v6621_v28  ;;  %v807_v28 = vmul.f32 %v6771_v42, %v6729_v21 }
 0x32a   :  { %2053 = vrot.lane.b32.xlu0 %v713_v27, %s6114_s22  ;;  %5266 = vmatprep.subr.msk.mxu0 %vm69_vm0, %v1424_v49  ;;  %v850_v27 = vmul.f32 %v6657_v6, %v7040_v63 }
 0x32b   :  { %v1420_v11 = vpop.permute.xlu1 %1419 }
 0x32c   :  { %v1589_v26 = vpop.permute.xlu0 %1588 }
 0x32d   :  { %5297 = vmatprep.subr.msk.mxu1 %vm69_vm0, %v1589_v26  ;;  %2055 = vrot.lane.b32.xlu1 %v714_v53, %s6114_s22  ;;  %v846_v53 = vmul.f32 %v6679_v24, %v7040_v63 }
 0x32e   :  { %5267 = vmatpush3.xpose.msk.msra.mxu0 %vm69_vm0, %v1424_v49  ;;  %2049 = vrot.lane.b32.xlu0 %v711_v37, %s6114_s22  ;;  %v851_v49 = vmul.f32 %v6942_v18, %v6623_v46  ;;  %v849_v37 = vmul.f32 %v6942_v18, %v6625_v55 }
 0x32f   :  { %5298 = vmatpush3.xpose.msk.msra.mxu1 %vm69_vm0, %v1589_v26  ;;  %5268 = vmatprep.subr.msk.mxu0 %vm69_vm0, %v7317_v7  ;;  %v1416_v35 = vpop.permute.xlu1 %1415 }
 0x330   :  { %5299 = vmatprep.subr.msk.mxu1 %vm69_vm0, %v7333_v33  ;;  %v1585_v4 = vpop.permute.xlu0 %1584 }
 0x331   :  { %2051 = vrot.lane.b32.xlu1 %v712_v36, %s6114_s22  ;;  %v845_v36 = vmul.f32 %v6942_v18, %v6691_v29 }
 0x332   :  { %5269 = vmatpush3.xpose.msk.msra.mxu0 %vm69_vm0, %v7317_v7  ;;  %2045 = vrot.lane.b32.xlu0 %v709_v59, %s6114_s22  ;;  %v843_v59 = vmul.f32 %v6942_v18, %v6703_v56 }
 0x333   :  { %5300 = vmatpush3.xpose.msk.msra.mxu1 %vm69_vm0, %v7333_v33  ;;  %5270 = vmatprep.subr.msk.mxu0 %vm69_vm0, %v1420_v11  ;;  %v1412_v2 = vpop.permute.xlu1 %1411 }
 0x334   :  { %5301 = vmatprep.subr.msk.mxu1 %vm69_vm0, %v1585_v4  ;;  %v1581_v8 = vpop.permute.xlu0 %1580 }
 0x335   :  { %2047 = vrot.lane.b32.xlu1 %v710_v43, %s6114_s22  ;;  %v803_v43 = vmul.f32 %v6739_v41, %v6623_v46 }
 0x336   :  { %5271 = vmatpush3.xpose.msk.msra.mxu0 %vm69_vm0, %v1420_v11  ;;  %2568 = vrot.lane.b32.xlu0 %v807_v28, %s6113_s21  ;;  %v801_v28 = vmul.f32 %v6739_v41, %v6625_v55 }
 0x337   :  { %5302 = vmatpush3.xpose.msk.msra.mxu1 %vm69_vm0, %v1585_v4  ;;  %5272 = vmatprep.subr.msk.mxu0 %vm69_vm0, %v7331_v54  ;;  %v1408_v7 = vpop.permute.xlu1 %1407 }
 0x338   :  { %5303 = vmatprep.subr.msk.mxu1 %vm69_vm0, %v7345_v10  ;;  %v1577_v33 = vpop.permute.xlu0 %1576 }
 0x339   :  { %2043 = vrot.lane.b32.xlu1 %v708_v13, %s6114_s22  ;;  %v842_v13 = vmul.f32 %v6705_v38, %v7040_v63 }
 0x33a   :  { %5273 = vmatpush3.xpose.msk.msra.mxu0 %vm69_vm0, %v7331_v54  ;;  %2564 = vrot.lane.b32.xlu0 %v805_v45, %s6113_s21  ;;  %v841_v45 = vmul.f32 %v6942_v18, %v6717_v47 }
 0x33b   :  { %5304 = vmatpush3.xpose.msk.msra.mxu1 %vm69_vm0, %v7345_v10  ;;  %5274 = vmatprep.subr.msk.mxu0 %vm69_vm0, %v1416_v35  ;;  %v7478_v16 = vpop.permute.xlu1 %1403  ;;  %v847_v10 = vmul.f32 %v6942_v18, %v6629_v23 }
 0x33c   :  { %5305 = vmatprep.subr.msk.mxu1 %vm69_vm0, %v1581_v8  ;;  %v1573_v42 = vpop.permute.xlu0 %1572 }
 0x33d   :  { %2864 = vrot.lane.b32.xlu1 %v848_v12, %s6113_s21 }
 0x33e   :  { %5275 = vmatpush3.xpose.msk.msra.mxu0 %vm69_vm0, %v1416_v35  ;;  %2870 = vrot.lane.b32.xlu0 %v851_v49, %s6113_s21  ;;  %v839_v49 = vmul.f32 %v6942_v18, %v6729_v21 }
 0x33f   :  { %5306 = vmatpush3.xpose.msk.msra.mxu1 %vm69_vm0, %v1581_v8  ;;  %5276 = vmatprep.subr.msk.mxu0 %vm69_vm0, %v7343_v44  ;;  %v7491_v54 = vpop.permute.xlu1 %1399 }
 0x340   :  { %5307 = vmatprep.subr.msk.mxu1 %vm69_vm0, %v7359_v0  ;;  %v1569_v22 = vpop.permute.xlu0 %1568 }
 0x341   :  { %2862 = vrot.lane.b32.xlu1 %v847_v10, %s6113_s21 }
 0x342   :  { %5277 = vmatpush3.xpose.msk.msra.mxu0 %vm69_vm0, %v7343_v44  ;;  %2868 = vrot.lane.b32.xlu0 %v850_v27, %s6113_s21  ;;  %v838_v27 = vmul.f32 %v6731_v15, %v7040_v63 }
 0x343   :  { %5308 = vmatpush3.xpose.msk.msra.mxu1 %vm69_vm0, %v7359_v0  ;;  %5278 = vmatprep.subr.msk.mxu0 %vm69_vm0, %v1412_v2  ;;  %v7506_v11 = vpop.permute.xlu1 %1751  ;;  %v844_v0 = vmul.f32 %v6693_v32, %v7040_v63 }
 0x344   :  { %5309 = vmatprep.subr.msk.mxu1 %vm69_vm0, %v1577_v33  ;;  %v7511_v26 = vpop.permute.xlu0 %1564 }
 0x345   :  { %2860 = vrot.lane.b32.xlu1 %v846_v53, %s6113_s21 }
 0x346   :  { %5279 = vmatpush3.xpose.msk.msra.mxu0 %vm69_vm0, %v1412_v2  ;;  %2866 = vrot.lane.b32.xlu0 %v849_v37, %s6113_s21 }
 0x347   :  { %5310 = vmatpush3.xpose.msk.msra.mxu1 %vm69_vm0, %v1577_v33  ;;  %5280 = vmatprep.subr.msk.mxu0 %vm69_vm0, %v7357_v5  ;;  %v7521_v44 = vpop.permute.xlu1 %1747 }
 0x348   :  { %5311 = vmatprep.subr.msk.mxu1 %vm69_vm0, %v7375_v20  ;;  %v7527_v35 = vpop.permute.xlu0 %1560 }
 0x349   :  { %2856 = vrot.lane.b32.xlu1 %v844_v0, %s6113_s21  ;;  %v837_v0 = vmul.f32 %v6942_v18, %v6745_v14 }
 0x34a   :  { %5281 = vmatpush3.xpose.msk.msra.mxu0 %vm69_vm0, %v7357_v5  ;;  %2858 = vrot.lane.b32.xlu0 %v845_v36, %s6113_s21 }
 0x34b   :  { %5312 = vmatpush3.xpose.msk.msra.mxu1 %vm69_vm0, %v7375_v20  ;;  %5282 = vmatprep.subr.msk.mxu0 %vm69_vm0, %v1408_v7  ;;  %v7538_v4 = vpop.permute.xlu1 %1743  ;;  %v802_v20 = vmul.f32 %v6657_v6, %v6749_v19 }
 0x34c   :  { %5313 = vmatprep.subr.msk.mxu1 %vm69_vm0, %v1573_v42  ;;  %v7543_v2 = vpop.permute.xlu0 %1912 }
 0x34d   :  { %2854 = vrot.lane.b32.xlu1 %v843_v59, %s6113_s21  ;;  %v836_v59 = vmul.f32 %v6747_v9, %v7040_v63 }
 0x34e   :  { %5283 = vmatpush3.xpose.msk.msra.mxu0 %vm69_vm0, %v1408_v7  ;;  %2453 = vrot.lane.b32.xlu0 %v803_v43, %s6113_s21 }
 0x34f   :  { %5314 = vmatpush3.xpose.msk.msra.mxu1 %vm69_vm0, %v1573_v42  ;;  %5284 = vmatprep.subr.msk.mxu0 %vm69_vm0, %v7373_v30  ;;  %v7553_v5 = vpop.permute.xlu1 %1739 }
 0x350   :  { %5315 = vmatprep.subr.msk.mxu1 %vm69_vm0, %v7393_v3  ;;  %v7559_v8 = vpop.permute.xlu0 %1908 }
 0x351   :  { %2451 = vrot.lane.b32.xlu1 %v802_v20, %s6113_s21  ;;  %v525_v20 = vmul.f32 0.17677669, %v6942_v18  ;;  %v883_v18 = vmul.f32 %v7128_v50, %v6623_v46 }
 0x352   :  { %5285 = vmatpush3.xpose.msk.msra.mxu0 %vm69_vm0, %v7373_v30  ;;  %2449 = vrot.lane.b32.xlu0 %v801_v28, %s6113_s21  ;;  %v800_v30 = vmul.f32 %v6669_v25, %v6749_v19  ;;  %v796_v28 = vmul.f32 %v6693_v32, %v6749_v19 }
 0x353   :  { %5316 = vmatpush3.xpose.msk.msra.mxu1 %vm69_vm0, %v7393_v3  ;;  %5286 = vmatprep.subr.msk.mxu0 %vm69_vm0, %v7478_v16  ;;  %v7571_v7 = vpop.permute.xlu1 %1735 }
 0x354   :  { %5317 = vmatprep.subr.msk.mxu1 %vm69_vm0, %v1569_v22  ;;  %v7576_v33 = vpop.permute.xlu0 %1904 }
 0x355   :  { %2852 = vrot.lane.b32.xlu1 %v842_v13, %s6113_s21 }
 0x356   :  { %5287 = vmatpush3.xpose.msk.msra.mxu0 %vm69_vm0, %v7478_v16  ;;  %2447 = vrot.lane.b32.xlu0 %v800_v30, %s6113_s21  ;;  %v840_v16 = vmul.f32 %v6719_v51, %v7040_v63  ;;  %v528_v63 = vmul.f32 0.17677669, %v7230_v61  ;;  %v794_v30 = vmul.f32 %v6705_v38, %v6749_v19 }
 0x357   :  { %5318 = vmatpush3.xpose.msk.msra.mxu1 %vm69_vm0, %v1569_v22  ;;  %5288 = vmatprep.subr.msk.mxu0 %vm69_vm0, %v7387_v48  ;;  %v7587_v3 = vpop.permute.xlu1 %1731  ;;  %v523_v22 = vmul.f32 0.17677669, %v6914_v34 }
 0x358   :  { %5319 = vmatprep.subr.msk.mxu1 %vm69_vm0, %v7404_v31  ;;  %v7593_v12 = vpop.permute.xlu0 %1900 }
 0x359   :  { %2850 = vrot.lane.b32.xlu1 %v841_v45, %s6113_s21 }
 0x35a   :  { %5289 = vmatpush3.xpose.msk.msra.mxu0 %vm69_vm0, %v7387_v48  ;;  %2848 = vrot.lane.b32.xlu0 %v840_v16, %s6113_s21  ;;  %v799_v48 = vmul.f32 %v6739_v41, %v6629_v23  ;;  %v793_v16 = vmul.f32 %v6739_v41, %v6717_v47 }
 0x35b   :  { %5320 = vmatpush3.xpose.msk.msra.mxu1 %vm69_vm0, %v7404_v31  ;;  %5290 = vmatprep.subr.msk.mxu0 %vm69_vm0, %v7491_v54  ;;  %v7605_v42 = vpop.permute.xlu1 %1727 }
 0x35c   :  { %5321 = vmatprep.subr.msk.mxu1 %vm69_vm0, %v7511_v26  ;;  %v7611_v10 = vpop.permute.xlu0 %1896 }
 0x35d   :  { %2846 = vrot.lane.b32.xlu1 %v839_v49, %s6113_s21 }
 0x35e   :  { %5291 = vmatpush3.xpose.msk.msra.mxu0 %vm69_vm0, %v7491_v54  ;;  %2445 = vrot.lane.b32.xlu0 %v799_v48, %s6113_s21  ;;  %v526_v54 = vmul.f32 0.17677669, %v7115_v40  ;;  %v882_v48 = vmul.f32 %v6657_v6, %v7230_v61 }
 0x35f   :  { %5322 = vmatpush3.xpose.msk.msra.mxu1 %vm69_vm0, %v7511_v26  ;;  %5330 = vmatprep.subr.msk.mxu0 %vm69_vm0, %v7506_v11  ;;  %v7623_v31 = vpop.permute.xlu1 %1723  ;;  %v798_v26 = vmul.f32 %v6679_v24, %v6749_v19 }
 0x360   :  { %5323 = vmatprep.subr.msk.mxu1 %vm69_vm0, %v7421_v52  ;;  %v7630_v53 = vpop.permute.xlu0 %1892 }
 0x361   :  { %5293 = vmatmul.mubr.msk.f32.vlgmr.msra.gmra.mxu0 %vm69_vm0, %v523_v22  ;;  %2844 = vrot.lane.b32.xlu1 %v838_v27, %s6113_s21  ;;  %v792_v27 = vmul.f32 %v6719_v51, %v6749_v19 }
 0x362   :  { %5331 = vmatpush3.xpose.msk.msra.mxu0 %vm69_vm0, %v7506_v11  ;;  %5362 = vmatprep.mubr.msk.f32.mxu0 %vm69_vm0, %v526_v54  ;;  %v797_v11 = vmul.f32 %v6739_v41, %v6691_v29 }
 0x363   :  { %2443 = vrot.lane.b32.xlu0 %v798_v26, %s6113_s21  ;;  %5324 = vmatpush3.xpose.msk.msra.mxu1 %vm69_vm0, %v7421_v52  ;;  %v1750_v37 = vpop.permute.xlu1 %1749  ;;  %v880_v26 = vmul.f32 %v6669_v25, %v7230_v61 }
 0x364   :  { %5325 = vmatprep.subr.msk.mxu1 %vm69_vm0, %v7527_v35  ;;  %v7647_v36 = vpop.permute.xlu0 %1888  ;;  %5332 = vmatprep.subr.msk.mxu0 %vm69_vm0, %v1750_v37 }
 0x365   :  { %2842 = vrot.lane.b32.xlu1 %v837_v0, %s6113_s21  ;;  %v879_v0 = vmul.f32 %v7128_v50, %v6629_v23 }
 0x366   :  { %5333 = vmatpush3.xpose.msk.msra.mxu0 %vm69_vm0, %v1750_v37 }
 0x367   :  { %2441 = vrot.lane.b32.xlu0 %v797_v11, %s6113_s21  ;;  %5326 = vmatpush3.xpose.msk.msra.mxu1 %vm69_vm0, %v7527_v35  ;;  %v1746_v52 = vpop.permute.xlu1 %1745 }
 0x368   :  { %5334 = vmatprep.subr.msk.mxu0 %vm69_vm0, %v7521_v44  ;;  %5365 = vmatprep.subr.msk.mxu1 %vm69_vm0, %v7543_v2  ;;  %v7663_v43 = vpop.permute.xlu0 %1884 }
 0x369   :  { %2840 = vrot.lane.b32.xlu1 %v836_v59, %s6113_s21 }
 0x36a   :  { %5328 = vmatmul.mubr.msk.f32.vlgmr.msra.gmra.mxu1 %vm69_vm0, %v525_v20  ;;  %5335 = vmatpush3.xpose.msk.msra.mxu0 %vm69_vm0, %v7521_v44  ;;  %v795_v44 = vmul.f32 %v6739_v41, %v6703_v56  ;;  %v790_v20 = vmul.f32 %v6731_v15, %v6749_v19 }
 0x36b   :  { %2439 = vrot.lane.b32.xlu0 %v796_v28, %s6113_s21  ;;  %5366 = vmatpush3.xpose.msk.msra.mxu1 %vm69_vm0, %v7543_v2  ;;  %v1742_v35 = vpop.permute.xlu1 %1741 }
 0x36c   :  { %5397 = vmatprep.mubr.msk.f32.mxu1 %vm69_vm0, %v528_v63  ;;  %5336 = vmatprep.subr.msk.mxu0 %vm69_vm0, %v1746_v52  ;;  %v1911_v13 = vpop.permute.xlu0 %1910  ;;  %v877_v63 = vmul.f32 %v7128_v50, %v6691_v29 }
 0x36d   :  { %5367 = vmatprep.subr.msk.mxu1 %vm69_vm0, %v1911_v13  ;;  %3148 = vrot.lane.b32.xlu1 %v883_v18, %s6113_s21  ;;  %v876_v18 = vmul.f32 %v6693_v32, %v7230_v61 }
 0x36e   :  { %5337 = vmatpush3.xpose.msk.msra.mxu0 %vm69_vm0, %v1746_v52  ;;  %v878_v52 = vmul.f32 %v6679_v24, %v7230_v61 }
 0x36f   :  { %2437 = vrot.lane.b32.xlu0 %v795_v44, %s6113_s21  ;;  %5368 = vmatpush3.xpose.msk.msra.mxu1 %vm69_vm0, %v1911_v13  ;;  %v1738_v2 = vpop.permute.xlu1 %1737 }
 0x370   :  { %5338 = vmatprep.subr.msk.mxu0 %vm69_vm0, %v7538_v4  ;;  %5369 = vmatprep.subr.msk.mxu1 %vm69_vm0, %v7559_v8  ;;  %v1907_v45 = vpop.permute.xlu0 %1906 }
 0x371   :  { %2435 = vrot.lane.b32.xlu1 %v794_v30, %s6113_s21 }
 0x372   :  { %5339 = vmatpush3.xpose.msk.msra.mxu0 %vm69_vm0, %v7538_v4 }
 0x373   :  { %2433 = vrot.lane.b32.xlu0 %v793_v16, %s6113_s21  ;;  %5370 = vmatpush3.xpose.msk.msra.mxu1 %vm69_vm0, %v7559_v8  ;;  %v1734_v49 = vpop.permute.xlu1 %1733  ;;  %v881_v8 = vmul.f32 %v7128_v50, %v6625_v55  ;;  %v833_v16 = vmul.f32 %v6914_v34, %v6625_v55 }
 0x374   :  { %5340 = vmatprep.subr.msk.mxu0 %vm69_vm0, %v1742_v35  ;;  %5371 = vmatprep.subr.msk.mxu1 %vm69_vm0, %v1907_v45  ;;  %v1903_v22 = vpop.permute.xlu0 %1902 }
 0x375   :  { %3146 = vrot.lane.b32.xlu1 %v882_v48, %s6113_s21  ;;  %v874_v48 = vmul.f32 %v6705_v38, %v7230_v61 }
 0x376   :  { %5341 = vmatpush3.xpose.msk.msra.mxu0 %vm69_vm0, %v1742_v35 }
 0x377   :  { %2431 = vrot.lane.b32.xlu0 %v792_v27, %s6113_s21  ;;  %5372 = vmatpush3.xpose.msk.msra.mxu1 %vm69_vm0, %v1907_v45  ;;  %v1730_v4 = vpop.permute.xlu1 %1729  ;;  %v873_v27 = vmul.f32 %v7128_v50, %v6717_v47 }
 0x378   :  { %5342 = vmatprep.subr.msk.mxu0 %vm69_vm0, %v7553_v5  ;;  %5373 = vmatprep.subr.msk.mxu1 %vm69_vm0, %v7576_v33  ;;  %v1899_v54 = vpop.permute.xlu0 %1898 }
 0x379   :  { %3144 = vrot.lane.b32.xlu1 %v881_v8, %s6113_s21  ;;  %v872_v8 = vmul.f32 %v6719_v51, %v7230_v61 }
 0x37a   :  { %5343 = vmatpush3.xpose.msk.msra.mxu0 %vm69_vm0, %v7553_v5  ;;  %v791_v5 = vmul.f32 %v6739_v41, %v6729_v21 }
 0x37b   :  { %3142 = vrot.lane.b32.xlu0 %v880_v26, %s6113_s21  ;;  %5374 = vmatpush3.xpose.msk.msra.mxu1 %vm69_vm0, %v7576_v33  ;;  %v7725_v37 = vpop.permute.xlu1 %1725  ;;  %v871_v26 = vmul.f32 %v7128_v50, %v6729_v21 }
 0x37c   :  { %5344 = vmatprep.subr.msk.mxu0 %vm69_vm0, %v1738_v2  ;;  %5375 = vmatprep.subr.msk.mxu1 %vm69_vm0, %v1903_v22  ;;  %v1895_v11 = vpop.permute.xlu0 %1894 }
 0x37d   :  { %3140 = vrot.lane.b32.xlu1 %v879_v0, %s6113_s21  ;;  %v527_v0 = vmul.f32 0.17677669, %v7099_v62 }
 0x37e   :  { %5345 = vmatpush3.xpose.msk.msra.mxu0 %vm69_vm0, %v1738_v2  ;;  %v875_v2 = vmul.f32 %v7128_v50, %v6703_v56 }
 0x37f   :  { %2429 = vrot.lane.b32.xlu0 %v791_v5, %s6113_s21  ;;  %5376 = vmatpush3.xpose.msk.msra.mxu1 %vm69_vm0, %v1903_v22  ;;  %v7737_v33 = vpop.permute.xlu1 %1721 }
 0x380   :  { %5346 = vmatprep.subr.msk.mxu0 %vm69_vm0, %v7571_v7  ;;  %5377 = vmatprep.subr.msk.mxu1 %vm69_vm0, %v7593_v12  ;;  %v1891_v59 = vpop.permute.xlu0 %1890 }
 0x381   :  { %3138 = vrot.lane.b32.xlu1 %v878_v52, %s6113_s21  ;;  %v830_v52 = vmul.f32 %v6679_v24, %v6928_v58 }
 0x382   :  { %5347 = vmatpush3.xpose.msk.msra.mxu0 %vm69_vm0, %v7571_v7  ;;  %v789_v7 = vmul.f32 %v6739_v41, %v6745_v14  ;;  %v788_v41 = vmul.f32 %v6747_v9, %v6749_v19  ;;  %v835_v19 = vmul.f32 %v6914_v34, %v6623_v46 }
 0x383   :  { %2427 = vrot.lane.b32.xlu0 %v790_v20, %s6113_s21  ;;  %5378 = vmatpush3.xpose.msk.msra.mxu1 %vm69_vm0, %v7593_v12  ;;  %v7753_v28 = vpop.permute.xlu1 %2073  ;;  %v869_v20 = vmul.f32 %v7128_v50, %v6745_v14 }
 0x384   :  { %5348 = vmatprep.subr.msk.mxu0 %vm69_vm0, %v1734_v49  ;;  %5379 = vmatprep.subr.msk.mxu1 %vm69_vm0, %v1899_v54  ;;  %v7759_v35 = vpop.permute.xlu0 %1886 }
 0x385   :  { %3136 = vrot.lane.b32.xlu1 %v877_v63, %s6113_s21 }
 0x386   :  { %5349 = vmatpush3.xpose.msk.msra.mxu0 %vm69_vm0, %v1734_v49 }
 0x387   :  { %2425 = vrot.lane.b32.xlu0 %v789_v7, %s6113_s21  ;;  %5380 = vmatpush3.xpose.msk.msra.mxu1 %vm69_vm0, %v1899_v54  ;;  %v7767_v12 = vpop.permute.xlu1 %2566  ;;  %v9273_v7 = vld [vmem:[#allocation8_spill] sm:$0xff] }
 0x388   :  { %5350 = vmatprep.subr.msk.mxu0 %vm69_vm0, %v7587_v3  ;;  %5381 = vmatprep.subr.msk.mxu1 %vm69_vm0, %v7611_v10  ;;  %v7775_v13 = vpop.permute.xlu0 %1882 }
 0x389   :  { %3134 = vrot.lane.b32.xlu1 %v876_v18, %s6113_s21 }
 0x38a   :  { %5351 = vmatpush3.xpose.msk.msra.mxu0 %vm69_vm0, %v7587_v3 }
 0x38b   :  { %2423 = vrot.lane.b32.xlu0 %v788_v41, %s6113_s21  ;;  %5382 = vmatpush3.xpose.msk.msra.mxu1 %vm69_vm0, %v7611_v10  ;;  %v7785_v44 = vpop.permute.xlu1 %2562  ;;  %v834_v10 = vmul.f32 %v6657_v6, %v6928_v58  ;;  %v529_v41 = vmul.f32 0.17677669, %v7128_v50  ;;  %v9274_v50 = vld [vmem:[#allocation21_spill] sm:$0xff] }
 0x38c   :  { %5352 = vmatprep.subr.msk.mxu0 %vm69_vm0, %v1730_v4  ;;  %5383 = vmatprep.subr.msk.mxu1 %vm69_vm0, %v1895_v11  ;;  %v7791_v30 = vpop.permute.xlu0 %2069 }
 0x38d   :  { %3132 = vrot.lane.b32.xlu1 %v875_v2, %s6113_s21  ;;  %v828_v2 = vmul.f32 %v6693_v32, %v6928_v58 }
 0x38e   :  { %5353 = vmatpush3.xpose.msk.msra.mxu0 %vm69_vm0, %v1730_v4 }
 0x38f   :  { %2731 = vrot.lane.b32.xlu0 %v835_v19, %s6113_s21  ;;  %5384 = vmatpush3.xpose.msk.msra.mxu1 %vm69_vm0, %v1895_v11  ;;  %v2072_v3 = vpop.permute.xlu1 %2071  ;;  %v870_v11 = vmul.f32 %v6731_v15, %v7230_v61 }
 0x390   :  { %5354 = vmatprep.subr.msk.mxu0 %vm69_vm0, %v7605_v42  ;;  %5385 = vmatprep.subr.msk.mxu1 %vm69_vm0, %v7630_v53  ;;  %v7805_v45 = vpop.permute.xlu0 %2065 }
 0x391   :  { %2729 = vrot.lane.b32.xlu1 %v834_v10, %s6113_s21 }
 0x392   :  { %5355 = vmatpush3.xpose.msk.msra.mxu0 %vm69_vm0, %v7605_v42  ;;  %v832_v42 = vmul.f32 %v6669_v25, %v6928_v58 }
 0x393   :  { %2727 = vrot.lane.b32.xlu0 %v833_v16, %s6113_s21  ;;  %5386 = vmatpush3.xpose.msk.msra.mxu1 %vm69_vm0, %v7630_v53  ;;  %v7815_v49 = vpop.permute.xlu1 %2067  ;;  %v824_v16 = vmul.f32 %v6719_v51, %v6928_v58 }
 0x394   :  { %5356 = vmatprep.subr.msk.mxu0 %vm69_vm0, %v7725_v37  ;;  %5387 = vmatprep.subr.msk.mxu1 %vm69_vm0, %v1891_v59  ;;  %v7822_v22 = vpop.permute.xlu0 %2061 }
 0x395   :  { %3130 = vrot.lane.b32.xlu1 %v874_v48, %s6113_s21  ;;  %v9276_v48 = vld [vmem:[#allocation7_spill] sm:$0xff] }
 0x396   :  { %5357 = vmatpush3.xpose.msk.msra.mxu0 %vm69_vm0, %v7725_v37 }
 0x397   :  { %2725 = vrot.lane.b32.xlu0 %v832_v42, %s6113_s21  ;;  %5388 = vmatpush3.xpose.msk.msra.mxu1 %vm69_vm0, %v1891_v59  ;;  %v7831_v53 = vpop.permute.xlu1 %2063 }
 0x398   :  { %5358 = vmatprep.subr.msk.mxu0 %vm69_vm0, %v7623_v31  ;;  %5389 = vmatprep.subr.msk.mxu1 %vm69_vm0, %v7647_v36  ;;  %v7839_v4 = vpop.permute.xlu0 %2057 }
 0x399   :  { %3128 = vrot.lane.b32.xlu1 %v873_v27, %s6113_s21  ;;  %v9277_v27 = vld [vmem:[#allocation6_spill] sm:$0xff] }
 0x39a   :  { %5359 = vmatpush3.xpose.msk.msra.mxu0 %vm69_vm0, %v7623_v31  ;;  %v831_v31 = vmul.f32 %v6914_v34, %v6629_v23 }
 0x39b   :  { %3126 = vrot.lane.b32.xlu0 %v872_v8, %s6113_s21  ;;  %5390 = vmatpush3.xpose.msk.msra.mxu1 %vm69_vm0, %v7647_v36  ;;  %v7849_v54 = vpop.permute.xlu1 %2059 }
 0x39c   :  { %5360 = vmatprep.subr.msk.mxu0 %vm69_vm0, %v7737_v33  ;;  %5391 = vmatprep.subr.msk.mxu1 %vm69_vm0, %v7759_v35  ;;  %v7857_v37 = vpop.permute.xlu0 %2053 }
 0x39d   :  { %3124 = vrot.lane.b32.xlu1 %v871_v26, %s6113_s21  ;;  %v822_v26 = vmul.f32 %v6731_v15, %v6928_v58 }
 0x39e   :  { %5361 = vmatpush3.xpose.msk.msra.mxu0 %vm69_vm0, %v7737_v33  ;;  %v530_v33 = vmul.f32 0.17677669, %v7363_v60 }
 0x39f   :  { %2723 = vrot.lane.b32.xlu0 %v831_v31, %s6113_s21  ;;  %5392 = vmatpush3.xpose.msk.msra.mxu1 %vm69_vm0, %v7759_v35  ;;  %v7867_v36 = vpop.permute.xlu1 %2055  ;;  %v868_v35 = vmul.f32 %v6747_v9, %v7230_v61  ;;  %v9278_v31 = vld [vmem:[#allocation9_spill] sm:$0xff] }
 0x3a0   :  { %5393 = vmatprep.subr.msk.mxu1 %vm69_vm0, %v7663_v43  ;;  %5400 = vmatprep.subr.msk.mxu0 %vm69_vm0, %v7753_v28  ;;  %v7876_v5 = vpop.permute.xlu0 %2049 }
 0x3a1   :  { %5363 = vmatmul.mubr.msk.f32.vlgmr.msra.gmra.mxu0 %vm69_vm0, %v527_v0  ;;  %3122 = vrot.lane.b32.xlu1 %v870_v11, %s6113_s21  ;;  %v9279_v11 = vld [vmem:[#allocation12_spill] sm:$0xff] }
 0x3a2   :  { %5401 = vmatpush3.xpose.msk.msra.mxu0 %vm69_vm0, %v7753_v28  ;;  %5432 = vmatprep.mubr.msk.f32.mxu0 %vm69_vm0, %v530_v33  ;;  %v829_v28 = vmul.f32 %v6914_v34, %v6691_v29 }
 0x3a3   :  { %2721 = vrot.lane.b32.xlu0 %v830_v52, %s6113_s21  ;;  %5394 = vmatpush3.xpose.msk.msra.mxu1 %vm69_vm0, %v7663_v43  ;;  %v7889_v59 = vpop.permute.xlu1 %2051  ;;  %v820_v52 = vmul.f32 %v6747_v9, %v6928_v58 }
 0x3a4   :  { %5395 = vmatprep.subr.msk.mxu1 %vm69_vm0, %v7775_v13  ;;  %5402 = vmatprep.subr.msk.mxu0 %vm69_vm0, %v2072_v3  ;;  %v7896_v63 = vpop.permute.xlu0 %2045 }
 0x3a5   :  { %3120 = vrot.lane.b32.xlu1 %v869_v20, %s6113_s21  ;;  %v9280_v20 = vld [vmem:[#allocation11_spill] sm:$0xff] }
 0x3a6   :  { %5403 = vmatpush3.xpose.msk.msra.mxu0 %vm69_vm0, %v2072_v3  ;;  %v9275_v3 = vld [vmem:[#allocation10_spill] sm:$0xff] }
 0x3a7   :  { %2719 = vrot.lane.b32.xlu0 %v829_v28, %s6113_s21  ;;  %5396 = vmatpush3.xpose.msk.msra.mxu1 %vm69_vm0, %v7775_v13  ;;  %v7905_v43 = vpop.permute.xlu1 %2047  ;;  %v826_v13 = vmul.f32 %v6705_v38, %v6928_v58 }
 0x3a8   :  { %5404 = vmatprep.subr.msk.mxu0 %vm69_vm0, %v7791_v30  ;;  %5435 = vmatprep.subr.mxu1 %v9273_v7  ;;  %v7912_v18 = vpop.permute.xlu0 %2568 }
 0x3a9   :  { %3118 = vrot.lane.b32.xlu1 %v868_v35, %s6113_s21  ;;  %v9281_v35 = vld [vmem:[#allocation14_spill] sm:$0xff] }
 0x3aa   :  { %5398 = vmatmul.mubr.msk.f32.vlgmr.msra.gmra.mxu1 %vm69_vm0, %v529_v41  ;;  %5405 = vmatpush3.xpose.msk.msra.mxu0 %vm69_vm0, %v7791_v30  ;;  %v827_v30 = vmul.f32 %v6914_v34, %v6703_v56  ;;  %v9283_v41 = vld [vmem:[#allocation13_spill] sm:$0xff] }
 0x3ab   :  { %2717 = vrot.lane.b32.xlu0 %v828_v2, %s6113_s21  ;;  %5436 = vmatpush3.msra.mxu1 %v9273_v7  ;;  %v7923_v61 = vpop.permute.xlu1 %2043  ;;  %v864_v7 = vmul.f32 %v6669_v25, %v7115_v40  ;;  %v9285_v2 = vld [vmem:[#allocation16_spill] sm:$0xff] }
 0x3ac   :  { %5406 = vmatprep.subr.msk.mxu0 %vm69_vm0, %v7815_v49  ;;  %5437 = vmatprep.subr.mxu1 %v9274_v50  ;;  %v7930_v19 = vpop.permute.xlu0 %2564 }
 0x3ad   :  { %5438 = vmatpush3.msra.mxu1 %v9274_v50  ;;  %2713 = vrot.lane.b32.xlu1 %v826_v13, %s6113_s21  ;;  %v863_v50 = vmul.f32 %v7099_v62, %v6629_v23 }
 0x3ae   :  { %5439 = vmatprep.subr.mxu1 %v9275_v3  ;;  %5407 = vmatpush3.xpose.msk.msra.mxu0 %vm69_vm0, %v7815_v49  ;;  %v825_v49 = vmul.f32 %v6914_v34, %v6717_v47 }
 0x3af   :  { %2715 = vrot.lane.b32.xlu0 %v827_v30, %s6113_s21  ;;  %5440 = vmatpush3.msra.mxu1 %v9275_v3  ;;  %v7941_v10 = vpop.permute.xlu1 %2864  ;;  %v9287_v30 = vld [vmem:[#allocation15_spill] sm:$0xff] }
 0x3b0   :  { %5408 = vmatprep.subr.msk.mxu0 %vm69_vm0, %v7805_v45  ;;  %5441 = vmatprep.subr.mxu1 %v9276_v48  ;;  %v7948_v42 = vpop.permute.xlu0 %2870 }
 0x3b1   :  { %5442 = vmatpush3.msra.mxu1 %v9276_v48  ;;  %2709 = vrot.lane.b32.xlu1 %v824_v16, %s6113_s21  ;;  %v9288_v16 = vld [vmem:[#allocation18_spill] sm:$0xff] }
 0x3b2   :  { %5443 = vmatprep.subr.mxu1 %v9277_v27  ;;  %5409 = vmatpush3.xpose.msk.msra.mxu0 %vm69_vm0, %v7805_v45  ;;  %v823_v45 = vmul.f32 %v6914_v34, %v6729_v21 }
 0x3b3   :  { %2711 = vrot.lane.b32.xlu0 %v825_v49, %s6113_s21  ;;  %5444 = vmatpush3.msra.mxu1 %v9277_v27  ;;  %v7959_v8 = vpop.permute.xlu1 %2862  ;;  %v862_v49 = vmul.f32 %v6679_v24, %v7115_v40  ;;  %v9289_v27 = vld [vmem:[#allocation17_spill] sm:$0xff] }
 0x3b4   :  { %5410 = vmatprep.subr.msk.mxu0 %vm69_vm0, %v7831_v53  ;;  %5445 = vmatprep.subr.mxu1 %v9278_v31  ;;  %v7966_v0 = vpop.permute.xlu0 %2868 }
 0x3b5   :  { %5446 = vmatpush3.msra.mxu1 %v9278_v31  ;;  %2705 = vrot.lane.b32.xlu1 %v822_v26, %s6113_s21  ;;  %v9290_v31 = vld [vmem:[#allocation20_spill] sm:$0xff] }
 0x3b6   :  { %5447 = vmatprep.subr.mxu1 %v9279_v11  ;;  %5411 = vmatpush3.xpose.msk.msra.mxu0 %vm69_vm0, %v7831_v53  ;;  %v821_v53 = vmul.f32 %v6914_v34, %v6745_v14 }
 0x3b7   :  { %2707 = vrot.lane.b32.xlu0 %v823_v45, %s6113_s21  ;;  %5448 = vmatpush3.msra.mxu1 %v9279_v11  ;;  %v7977_v33 = vpop.permute.xlu1 %2860  ;;  %v859_v11 = vmul.f32 %v7099_v62, %v6703_v56 }
 0x3b8   :  { %5412 = vmatprep.subr.msk.mxu0 %vm69_vm0, %v7822_v22  ;;  %5449 = vmatprep.subr.mxu1 %v9280_v20  ;;  %v7984_v28 = vpop.permute.xlu0 %2866 }
 0x3b9   :  { %5450 = vmatpush3.msra.mxu1 %v9280_v20  ;;  %2701 = vrot.lane.b32.xlu1 %v820_v52, %s6113_s21  ;;  %v9292_v52 = vld [vmem:[#allocation19_spill] sm:$0xff] }
 0x3ba   :  { %5451 = vmatprep.subr.mxu1 %v9281_v35  ;;  %5413 = vmatpush3.xpose.msk.msra.mxu0 %vm69_vm0, %v7822_v22  ;;  %v867_v22 = vmul.f32 %v7099_v62, %v6623_v46 }
 0x3bb   :  { %2703 = vrot.lane.b32.xlu0 %v821_v53, %s6113_s21  ;;  %5452 = vmatpush3.msra.mxu1 %v9281_v35  ;;  %v7995_v58 = vpop.permute.xlu1 %2856  ;;  %v9293_v53 = vld [vmem:[#allocation22_spill] sm:$0xff] }
 0x3bc   :  { %9282 = vst [vmem:[#allocation8_spill] sm:$0xff] %v7995_v58  ;;  %5414 = vmatprep.subr.msk.mxu0 %vm69_vm0, %v7849_v54  ;;  %5453 = vmatprep.subr.mxu1 %v9283_v41  ;;  %v8002_v34 = vpop.permute.xlu0 %2858 }
 0x3bd   :  { %9284 = vst [vmem:[#allocation21_spill] sm:$0xff] %v8002_v34  ;;  %5454 = vmatpush3.msra.mxu1 %v9283_v41  ;;  %3003 = vrot.lane.b32.xlu1 %v864_v7, %s6113_s21  ;;  %v858_v7 = vmul.f32 %v6705_v38, %v7115_v40 }
 0x3be   :  { %5455 = vmatprep.subr.mxu1 %v9285_v2  ;;  %5415 = vmatpush3.xpose.msk.msra.mxu0 %vm69_vm0, %v7849_v54  ;;  %v866_v54 = vmul.f32 %v6657_v6, %v7115_v40 }
 0x3bf   :  { %3009 = vrot.lane.b32.xlu0 %v867_v22, %s6113_s21  ;;  %5456 = vmatpush3.msra.mxu1 %v9285_v2  ;;  %v8013_v13 = vpop.permute.xlu1 %2854  ;;  %v860_v22 = vmul.f32 %v6693_v32, %v7115_v40  ;;  %v856_v2 = vmul.f32 %v6719_v51, %v7115_v40 }
 0x3c0   :  { %9286 = vst [vmem:[#allocation10_spill] sm:$0xff] %v8013_v13  ;;  %5416 = vmatprep.subr.msk.mxu0 %vm69_vm0, %v7839_v4  ;;  %5457 = vmatprep.subr.mxu1 %v9287_v30  ;;  %v8020_v3 = vpop.permute.xlu0 %2453 }
 0x3c1   :  { %5458 = vmatpush3.msra.mxu1 %v9287_v30  ;;  %3001 = vrot.lane.b32.xlu1 %v863_v50, %s6113_s21  ;;  %v857_v30 = vmul.f32 %v7099_v62, %v6717_v47 }
 0x3c2   :  { %5459 = vmatprep.subr.mxu1 %v9288_v16  ;;  %5417 = vmatpush3.xpose.msk.msra.mxu0 %vm69_vm0, %v7839_v4  ;;  %v865_v4 = vmul.f32 %v7099_v62, %v6625_v55 }
 0x3c3   :  { %3007 = vrot.lane.b32.xlu0 %v866_v54, %s6113_s21  ;;  %5460 = vmatpush3.msra.mxu1 %v9288_v16  ;;  %v2452_v48 = vpop.permute.xlu1 %2451 }
 0x3c4   :  { %5418 = vmatprep.subr.msk.mxu0 %vm69_vm0, %v7867_v36  ;;  %5461 = vmatprep.subr.mxu1 %v9289_v27  ;;  %v2450_v26 = vpop.permute.xlu0 %2449 }
 0x3c5   :  { %5462 = vmatpush3.msra.mxu1 %v9289_v27  ;;  %2999 = vrot.lane.b32.xlu1 %v862_v49, %s6113_s21 }
 0x3c6   :  { %5463 = vmatprep.subr.mxu1 %v9290_v31  ;;  %5419 = vmatpush3.xpose.msk.msra.mxu0 %vm69_vm0, %v7867_v36  ;;  %v861_v36 = vmul.f32 %v7099_v62, %v6691_v29 }
 0x3c7   :  { %3005 = vrot.lane.b32.xlu0 %v865_v4, %s6113_s21  ;;  %5464 = vmatpush3.msra.mxu1 %v9290_v31  ;;  %v8045_v45 = vpop.permute.xlu1 %2852 }
 0x3c8   :  { %9291 = vst [vmem:[#allocation7_spill] sm:$0xff] %v8045_v45  ;;  %5420 = vmatprep.subr.msk.mxu0 %vm69_vm0, %v7857_v37  ;;  %5465 = vmatprep.subr.mxu1 %v9292_v52  ;;  %v2448_v20 = vpop.permute.xlu0 %2447 }
 0x3c9   :  { %5466 = vmatpush3.msra.mxu1 %v9292_v52  ;;  %2993 = vrot.lane.b32.xlu1 %v859_v11, %s6113_s21  ;;  %v5189_v52 = vpop.f32.mrf.mxu1 }
 0x3ca   :  { %5505 = vmatprep.subr.mxu1 %v9293_v53  ;;  %5421 = vmatpush3.xpose.msk.msra.mxu0 %vm69_vm0, %v7857_v37 }
 0x3cb   :  { %2997 = vrot.lane.b32.xlu0 %v861_v36, %s6113_s21  ;;  %5422 = vmatprep.subr.msk.mxu0 %vm69_vm0, %v7889_v59  ;;  %v8062_v35 = vpop.permute.xlu1 %2850 }
 0x3cc   :  { %9294 = vst [vmem:[#allocation6_spill] sm:$0xff] %v8062_v35  ;;  %v8066_v41 = vpop.permute.xlu0 %2848  ;;  %v852_v35 = vmul.f32 %v6747_v9, %v7115_v40 }
 0x3cd   :  { %9295 = vst [vmem:[#allocation9_spill] sm:$0xff] %v8066_v41  ;;  %2991 = vrot.lane.b32.xlu1 %v858_v7, %s6113_s21 }
 0x3ce   :  { %5423 = vmatpush3.xpose.msk.msra.mxu0 %vm69_vm0, %v7889_v59 }
 0x3cf   :  { %2995 = vrot.lane.b32.xlu0 %v860_v22, %s6113_s21  ;;  %5424 = vmatprep.subr.msk.mxu0 %vm69_vm0, %v7876_v5  ;;  %v8076_v37 = vpop.permute.xlu1 %2846 }
 0x3d0   :  { %9296 = vst [vmem:[#allocation12_spill] sm:$0xff] %v8076_v37  ;;  %v2446_v50 = vpop.permute.xlu0 %2445 }
 0x3d1   :  { %2987 = vrot.lane.b32.xlu1 %v856_v2, %s6113_s21 }
 0x3d2   :  { %5425 = vmatpush3.xpose.msk.msra.mxu0 %vm69_vm0, %v7876_v5 }
 0x3d3   :  { %2989 = vrot.lane.b32.xlu0 %v857_v30, %s6113_s21  ;;  %5426 = vmatprep.subr.msk.mxu0 %vm69_vm0, %v7905_v43  ;;  %v8088_v59 = vpop.permute.xlu1 %2844 }
 0x3d4   :  { %9297 = vst [vmem:[#allocation11_spill] sm:$0xff] %v8088_v59 }
 0x3d5   :  { %v2444_v54 = vpop.permute.xlu0 %2443 }
 0x3d6   :  { %5427 = vmatpush3.xpose.msk.msra.mxu0 %vm69_vm0, %v7905_v43  ;;  %v531_v43 = vmul.f32 0.17677669, %v7321_v57 }
 0x3d7   :  { %5428 = vmatprep.subr.msk.mxu0 %vm69_vm0, %v7896_v63  ;;  %v8094_v16 = vpop.permute.xlu1 %2842 }
 0x3d8   :  { %9298 = vst [vmem:[#allocation14_spill] sm:$0xff] %v8094_v16 }
 0x3d9   :  { %v2442_v49 = vpop.permute.xlu0 %2441 }
 0x3da   :  { %5429 = vmatpush3.xpose.msk.msra.mxu0 %vm69_vm0, %v7896_v63 }
 0x3db   :  { %5430 = vmatprep.subr.msk.mxu0 %vm69_vm0, %v7923_v61  ;;  %v8100_v27 = vpop.permute.xlu1 %2840 }
 0x3dc   :  { %9299 = vst [vmem:[#allocation13_spill] sm:$0xff] %v8100_v27 }
 0x3dd   :  { %v2440_v5 = vpop.permute.xlu0 %2439 }
 0x3de   :  { %5431 = vmatpush3.xpose.msk.msra.mxu0 %vm69_vm0, %v7923_v61 }
 0x3df   :  { %5470 = vmatprep.subr.mxu0 %v8020_v3  ;;  %v8108_v63 = vpop.permute.xlu1 %3148 }
 0x3e0   :  { %9300 = vst [vmem:[#allocation16_spill] sm:$0xff] %v8108_v63 }
 0x3e1   :  { %v2438_v4 = vpop.permute.xlu0 %2437  ;;  %5433 = vmatmul.mubr.msk.f32.vlgmr.msra.gmra.mxu0 %vm69_vm0, %v531_v43 }
 0x3e2   :  { %5471 = vmatpush3.msra.mxu0 %v8020_v3  ;;  %v8113_v3 = vld [vmem:[%s9169_s8 + $0x8] sm:$0xff] }
 0x3e3   :  { %5472 = vmatprep.subr.mxu0 %v2452_v48  ;;  %v2436_v61 = vpop.permute.xlu1 %2435 }
 0x3e4   :  { %5473 = vmatpush3.msra.mxu0 %v2452_v48  ;;  %v8118_v48 = vadd.f32 %v5189_v52, %v8113_v3 }
 0x3e5   :  { %v2434_v31 = vpop.permute.xlu0 %2433  ;;  %5474 = vmatprep.subr.mxu0 %v2450_v26 }
 0x3e6   :  { %5475 = vmatpush3.msra.mxu0 %v2450_v26  ;;  %v1052_v26 = vpop.f32.mrf.mxu1 }
 0x3e7   :  { %5476 = vmatprep.subr.mxu0 %v2448_v20  ;;  %v8125_v7 = vpop.permute.xlu1 %3146 }
 0x3e8   :  { %5477 = vmatpush3.msra.mxu0 %v2448_v20  ;;  %v8123_v20 = vld [vmem:[%s9169_s8] sm:$0xff]  ;;  %9302 = vst [vmem:[#allocation18_spill] sm:$0xff] %v8125_v7 }
 0x3e9   :  { %v2432_v11 = vpop.permute.xlu0 %2431  ;;  %5478 = vmatprep.subr.mxu0 %v2446_v50  ;;  %v8129_v2 = vadd.f32 %v1052_v26, %v8123_v20 }
 0x3ea   :  { %5479 = vmatpush3.msra.mxu0 %v2446_v50 }
 0x3eb   :  { %5480 = vmatprep.subr.mxu0 %v2444_v54  ;;  %v8132_v30 = vpop.permute.xlu1 %3144 }
 0x3ec   :  { %5481 = vmatpush3.msra.mxu0 %v2444_v54  ;;  %9303 = vst [vmem:[#allocation17_spill] sm:$0xff] %v8132_v30 }
 0x3ed   :  { %v8115_v36 = vpop.permute.xlu0 %3142  ;;  %5482 = vmatprep.subr.mxu0 %v2442_v49 }
 0x3ee   :  { %9301 = vst [vmem:[#allocation15_spill] sm:$0xff] %v8115_v36  ;;  %5483 = vmatpush3.msra.mxu0 %v2442_v49 }
 0x3ef   :  { %5484 = vmatprep.subr.mxu0 %v2440_v5  ;;  %v8134_v49 = vpop.permute.xlu1 %3140 }
 0x3f0   :  { %5485 = vmatpush3.msra.mxu0 %v2440_v5  ;;  %9304 = vst [vmem:[#allocation20_spill] sm:$0xff] %v8134_v49 }
 0x3f1   :  { %v2430_v22 = vpop.permute.xlu0 %2429  ;;  %5486 = vmatprep.subr.mxu0 %v2438_v4 }
 0x3f2   :  { %2190 = vmax.xlane.f32.xlu0 %v8118_v48  ;;  %5487 = vmatpush3.msra.mxu0 %v2438_v4 }
 0x3f3   :  { %5488 = vmatprep.subr.mxu0 %v2436_v61  ;;  %v8138_v4 = vpop.permute.xlu1 %3138 }
 0x3f4   :  { %5489 = vmatpush3.msra.mxu0 %v2436_v61  ;;  %9305 = vst [vmem:[#allocation19_spill] sm:$0xff] %v8138_v4 }
 0x3f5   :  { %v2428_v50 = vpop.permute.xlu0 %2427  ;;  %5490 = vmatprep.subr.mxu0 %v2434_v31  ;;  %2188 = vmax.xlane.f32.xlu1 %v8129_v2 }
 0x3f6   :  { %5491 = vmatpush3.msra.mxu0 %v2434_v31  ;;  %v854_v31 = vmul.f32 %v6731_v15, %v7115_v40 }
 0x3f7   :  { %5492 = vmatprep.subr.mxu0 %v2432_v11  ;;  %v8146_v61 = vpop.permute.xlu1 %3136 }
 0x3f8   :  { %5493 = vmatpush3.msra.mxu0 %v2432_v11  ;;  %v855_v11 = vmul.f32 %v7099_v62, %v6729_v21  ;;  %9306 = vst [vmem:[#allocation22_spill] sm:$0xff] %v8146_v61 }
 0x3f9   :  { %v2426_v54 = vpop.permute.xlu0 %2425  ;;  %5494 = vmatprep.subr.mxu0 %v2430_v22 }
 0x3fa   :  { %5495 = vmatpush3.msra.mxu0 %v2430_v22 }
 0x3fb   :  { %5496 = vmatprep.subr.mxu0 %v2428_v50  ;;  %v8149_v52 = vpop.permute.xlu1 %3134 }
 0x3fc   :  { %5497 = vmatpush3.msra.mxu0 %v2428_v50  ;;  %9307 = vst [vmem:[#allocation31_spill] sm:$0xff] %v8149_v52 }
 0x3fd   :  { %v2424_v5 = vpop.permute.xlu0 %2423  ;;  %5498 = vmatprep.subr.mxu0 %v2426_v54 }
 0x3fe   :  { %5499 = vmatpush3.msra.mxu0 %v2426_v54 }
 0x3ff   :  { %5500 = vmatprep.subr.mxu0 %v2424_v5  ;;  %v8151_v26 = vpop.permute.xlu1 %3132 }
 0x400   :  { %5501 = vmatpush3.msra.mxu0 %v2424_v5  ;;  %9308 = vst [vmem:[#allocation32_spill] sm:$0xff] %v8151_v26  ;;  %v5224_v5 = vpop.f32.mrf.mxu0 }
 0x401   :  { %v8136_v43 = vpop.permute.xlu0 %2731  ;;  %v8170_v26 = vadd.f32 %v5224_v5, %v8113_v3 }
 0x402   :  { %5540 = vmatprep.subr.mxu0 %v8136_v43 }
 0x403   :  { %v8155_v50 = vpop.permute.xlu1 %2729 }
 0x405   :  { %v8153_v22 = vpop.permute.xlu0 %2727 }
 0x406   :  { %2983 = vrot.lane.b32.xlu1 %v854_v31, %s6113_s21  ;;  %v1213_v31 = vpop.f32.mrf.mxu0 }
 0x407   :  { %v8159_v4 = vpop.permute.xlu1 %3130  ;;  %v8164_v61 = vadd.f32 %v1213_v31, %v8123_v20 }
 0x408   :  { %2985 = vrot.lane.b32.xlu0 %v855_v11, %s6113_s21  ;;  %9309 = vst [vmem:[#allocation33_spill] sm:$0xff] %v8159_v4  ;;  %v5259_v11 = vpop.f32.mrf.mxu1 }
 0x409   :  { %v8157_v54 = vpop.permute.xlu0 %2725  ;;  %v8173_v30 = vadd.f32 %v5259_v11, %v8113_v3 }
 0x40a   :  { %v1374_v7 = vpop.f32.mrf.mxu1 }
 0x40b   :  { %v8166_v36 = vpop.permute.xlu1 %3128  ;;  %v8180_v31 = vadd.f32 %v1374_v7, %v8123_v20 }
 0x40c   :  { %9311 = vst [vmem:[#allocation35_spill] sm:$0xff] %v8166_v36 }
 0x40d   :  { %v8161_v49 = vpop.permute.xlu0 %3126 }
 0x40e   :  { %9310 = vst [vmem:[#allocation34_spill] sm:$0xff] %v8161_v49 }
 0x40f   :  { %v8182_v49 = vpop.permute.xlu1 %3124 }
 0x410   :  { %9312 = vst [vmem:[#allocation36_spill] sm:$0xff] %v8182_v49 }
 0x411   :  { %v8175_v4 = vpop.permute.xlu0 %2723 }
 0x413   :  { %v8197_v59 = vpop.permute.xlu1 %3122 }
 0x414   :  { %9313 = vst [vmem:[#allocation37_spill] sm:$0xff] %v8197_v59 }
 0x415   :  { %v8188_v11 = vpop.permute.xlu0 %2721 }
 0x417   :  { %v8207_v37 = vpop.permute.xlu1 %3120 }
 0x418   :  { %9314 = vst [vmem:[#allocation38_spill] sm:$0xff] %v8207_v37 }
 0x419   :  { %v8204_v49 = vpop.permute.xlu0 %2719 }
 0x421   :  { %v5294_v52 = vpop.f32.mrf.mxu0 }
 0x422   :  { %v8192_v27 = vadd.f32 %v5294_v52, %v8113_v3  ;;  %v8209_v52 = vpop.permute.xlu0 %2717 }
 0x423   :  { %v1535_v63 = vpop.f32.mrf.mxu0 }
 0x424   :  { %v8185_v36 = vadd.f32 %v1535_v63, %v8123_v20 }
 0x426   :  { %v8213_v41 = vpop.permute.xlu0 %2715 }
 0x427   :  { %2192 = vmax.xlane.f32.xlu0 %v8164_v61 }
 0x42a   :  { %2194 = vmax.xlane.f32.xlu1 %v8170_v26  ;;  %v5329_v5 = vpop.f32.mrf.mxu1  ;;  %v8219_v45 = vpop.permute.xlu0 %2711 }
 0x42b   :  { %2198 = vmax.xlane.f32.xlu0 %v8173_v30  ;;  %v8195_v16 = vadd.f32 %v5329_v5, %v8113_v3  ;;  %v8211_v5 = vpop.permute.xlu1 %3118  ;;  %9317 = vst [vmem:[#allocation41_spill] sm:$0xff] %v8219_v45 }
 0x42c   :  { %v1696_v7 = vpop.f32.mrf.mxu1  ;;  %9315 = vst [vmem:[#allocation39_spill] sm:$0xff] %v8211_v5 }
 0x42d   :  { %v8202_v63 = vadd.f32 %v1696_v7, %v8123_v20  ;;  %v853_v7 = vmul.f32 %v7099_v62, %v6745_v14 }
 0x42e   :  { %2196 = vmax.xlane.f32.xlu1 %v8180_v31  ;;  %v8227_v13 = vpop.permute.xlu0 %2707 }
 0x42f   :  { %2200 = vmax.xlane.f32.xlu0 %v8185_v36  ;;  %v8215_v59 = vpop.permute.xlu1 %2713  ;;  %9319 = vst [vmem:[#allocation43_spill] sm:$0xff] %v8227_v13 }
 0x430   :  { %9316 = vst [vmem:[#allocation40_spill] sm:$0xff] %v8215_v59 }
 0x432   :  { %2202 = vmax.xlane.f32.xlu1 %v8192_v27  ;;  %v8231_v58 = vpop.permute.xlu0 %2703 }
 0x433   :  { %2206 = vmax.xlane.f32.xlu0 %v8195_v16  ;;  %v8225_v37 = vpop.permute.xlu1 %2709  ;;  %9321 = vst [vmem:[#allocation45_spill] sm:$0xff] %v8231_v58 }
 0x434   :  { %9318 = vst [vmem:[#allocation42_spill] sm:$0xff] %v8225_v37 }
 0x436   :  { %2204 = vmax.xlane.f32.xlu1 %v8202_v63  ;;  %v8235_v40 = vpop.permute.xlu0 %3009 }
 0x437   :  { %v8229_v5 = vpop.permute.xlu1 %2705  ;;  %9323 = vst [vmem:[#allocation47_spill] sm:$0xff] %v8235_v40 }
 0x438   :  { %9320 = vst [vmem:[#allocation44_spill] sm:$0xff] %v8229_v5 }
 0x43b   :  { %v8233_v59 = vpop.permute.xlu1 %2701 }
 0x43c   :  { %9322 = vst [vmem:[#allocation46_spill] sm:$0xff] %v8233_v59 }
 0x43f   :  { %v8237_v45 = vpop.permute.xlu1 %3003 }
 0x440   :  { %9324 = vst [vmem:[#allocation48_spill] sm:$0xff] %v8237_v45 }
 0x443   :  { %v8241_v34 = vpop.permute.xlu1 %3001 }
 0x444   :  { %9326 = vst [vmem:[#allocation50_spill] sm:$0xff] %v8241_v34 }
 0x447   :  { %2979 = vrot.lane.b32.xlu1 %v852_v35, %s6113_s21  ;;  %v8239_v35 = vpop.permute.xlu0 %3007  ;;  %v8248_v5 = vpop.permute.xlu1 %2999 }
 0x448   :  { %9325 = vst [vmem:[#allocation49_spill] sm:$0xff] %v8239_v35  ;;  %9329 = vst [vmem:[#allocation53_spill] sm:$0xff] %v8248_v5 }
 0x449   :  { %2981 = vrot.lane.b32.xlu0 %v853_v7, %s6113_s21 }
 0x44b   :  { %v8243_v7 = vpop.permute.xlu0 %3005 }
 0x44c   :  { %9327 = vst [vmem:[#allocation51_spill] sm:$0xff] %v8243_v7  ;;  %v8263_v7 = vpop.permute.xlu1 %2993 }
 0x44d   :  { %9334 = vst [vmem:[#allocation58_spill] sm:$0xff] %v8263_v7 }
 0x44f   :  { %v8254_v45 = vpop.permute.xlu0 %2997 }
 0x450   :  { %9331 = vst [vmem:[#allocation55_spill] sm:$0xff] %v8254_v45 }
 0x461   :  { %v5364_v62 = vpop.f32.mrf.mxu0 }
 0x462   :  { %v8246_v37 = vadd.f32 %v5364_v62, %v8113_v3 }
 0x463   :  { %v1857_v13 = vpop.f32.mrf.mxu0 }
 0x464   :  { %9328 = vst [vmem:[#allocation52_spill] sm:$0xff] %v8246_v37  ;;  %v8252_v59 = vadd.f32 %v1857_v13, %v8123_v20  ;;  %v8267_v13 = vpop.permute.xlu0 %2995 }
 0x466   :  { %9330 = vst [vmem:[#allocation54_spill] sm:$0xff] %v8252_v59 }
 0x468   :  { %2210 = vmax.xlane.f32.xlu0 %v8246_v37  ;;  %v8269_v37 = vpop.permute.xlu1 %2991  ;;  %v8271_v45 = vpop.permute.xlu0 %2989 }
 0x469   :  { %9335 = vst [vmem:[#allocation59_spill] sm:$0xff] %v8269_v37  ;;  %v896_v37 = vmul.f32 %v6669_v25, %v7363_v60  ;;  %v895_v25 = vmul.f32 %v7321_v57, %v6629_v23  ;;  %v9338_v23 = vld [vmem:[#allocation27_spill] sm:$0xff] }
 0x46a   :  { %v5399_v40 = vpop.f32.mrf.mxu1 }
 0x46b   :  { %2208 = vmax.xlane.f32.xlu1 %v8252_v59  ;;  %v8258_v35 = vadd.f32 %v5399_v40, %v8113_v3 }
 0x46c   :  { %v2018_v34 = vpop.f32.mrf.mxu1  ;;  %v8273_v59 = vpop.permute.xlu1 %2987 }
 0x46d   :  { %9332 = vst [vmem:[#allocation56_spill] sm:$0xff] %v8258_v35  ;;  %v8261_v62 = vadd.f32 %v2018_v34, %v8123_v20  ;;  %9336 = vst [vmem:[#allocation60_spill] sm:$0xff] %v8273_v59  ;;  %v898_v34 = vmul.f32 %v6657_v6, %v7363_v60  ;;  %v899_v59 = vmul.f32 %v7321_v57, %v6623_v46 }
 0x46e   :  { %v894_v6 = vmul.f32 %v6679_v24, %v7363_v60  ;;  %v9339_v24 = vld [vmem:[#allocation24_spill] sm:$0xff] }
 0x46f   :  { %9333 = vst [vmem:[#allocation57_spill] sm:$0xff] %v8261_v62  ;;  %2212 = vmax.xlane.f32.xlu0 %v8261_v62  ;;  %2214 = vmax.xlane.f32.xlu1 %v8258_v35 }
 0x47b   :  { %v2191_v5 = vpop.xlane.xlu0 %2190 }
 0x47c   :  { %v2221_v40 = vsub.f32 %v8118_v48, %v2191_v5  ;;  %v9343_v48 = vld [vmem:[#allocation26_spill] sm:$0xff] }
 0x47e   :  { %v2189_v58 = vpop.xlane.xlu1 %2188  ;;  %v2238_v62 = vmul.f32 1.442695, %v2221_v40 }
 0x47f   :  { %v2220_v7 = vsub.f32 %v8129_v2, %v2189_v58  ;;  %v897_v58 = vmul.f32 %v7321_v57, %v6625_v55  ;;  %v9337_v55 = vld [vmem:[#allocation23_spill] sm:$0xff]  ;;  %v9344_v2 = vld [vmem:[#allocation30_spill] sm:$0xff] }
 0x480   :  { %3285 = vrot.lane.b32.xlu1 %v898_v34, %s6113_s21 }
 0x481   :  { %v2236_v35 = vmul.f32 1.442695, %v2220_v7  ;;  %v8332_v7 = vpop.permute.xlu0 %2985 }
 0x483   :  { %5961 = vpow2.f32 %v2236_v35 }
 0x484   :  { %5963 = vpow2.f32 %v2238_v62  ;;  %3281 = vrot.lane.b32.xlu1 %v896_v37, %s6113_s21 }
 0x485   :  { %3287 = vrot.lane.b32.xlu0 %v899_v59, %s6113_s21  ;;  %v9342_v59 = vld [vmem:[#allocation29_spill] sm:$0xff] }
 0x488   :  { %3277 = vrot.lane.b32.xlu1 %v894_v6, %s6113_s21 }
 0x489   :  { %3283 = vrot.lane.b32.xlu0 %v897_v58, %s6113_s21 }
 0x48d   :  { %3279 = vrot.lane.b32.xlu0 %v895_v25, %s6113_s21 }
 0x490   :  { %v8295_v46 = vpop.eup %5961 }
 0x491   :  { %v8297_v37 = vpop.eup %5963  ;;  %5467 = vmatprep.mubr.f32.mxu1 %v8295_v46 }
 0x492   :  { %5468 = vmatmul.mubr.f32.vlgmr.msra.gmra.mxu1 %v8297_v37 }
 0x493   :  { %5506 = vmatpush3.msra.mxu1 %v9293_v53  ;;  %v9341_v53 = vld [vmem:[#allocation25_spill] sm:$0xff] }
 0x494   :  { %5507 = vmatprep.subr.mxu1 %v7304_v39 }
 0x495   :  { %5508 = vmatpush3.msra.mxu1 %v7304_v39  ;;  %v9340_v39 = vld [vmem:[#allocation28_spill] sm:$0xff] }
 0x496   :  { %5509 = vmatprep.subr.mxu1 %v9337_v55 }
 0x497   :  { %5510 = vmatpush3.msra.mxu1 %v9337_v55 }
 0x498   :  { %5511 = vmatprep.subr.mxu1 %v7210_v17 }
 0x499   :  { %5512 = vmatpush3.msra.mxu1 %v7210_v17 }
 0x49a   :  { %5513 = vmatprep.subr.mxu1 %v9338_v23 }
 0x49b   :  { %5514 = vmatpush3.msra.mxu1 %v9338_v23 }
 0x49c   :  { %5515 = vmatprep.subr.mxu1 %v7224_v1 }
 0x49d   :  { %5516 = vmatpush3.msra.mxu1 %v7224_v1 }
 0x49e   :  { %5517 = vmatprep.subr.mxu1 %v9339_v24 }
 0x49f   :  { %5518 = vmatpush3.msra.mxu1 %v9339_v24 }
 0x4a0   :  { %5519 = vmatprep.subr.mxu1 %v9340_v39 }
 0x4a1   :  { %5520 = vmatpush3.msra.mxu1 %v9340_v39  ;;  %v5434_v17 = vpop.f32.mrf.mxu0 }
 0x4a2   :  { %5521 = vmatprep.subr.mxu1 %v9341_v53  ;;  %v8325_v5 = vadd.f32 %v5434_v17, %v8113_v3  ;;  %v8339_v3 = vpop.permute.xlu1 %2983 }
 0x4a3   :  { %5522 = vmatpush3.msra.mxu1 %v9341_v53  ;;  %v2179_v1 = vpop.f32.mrf.mxu0 }
 0x4a4   :  { %5523 = vmatprep.subr.mxu1 %v9342_v59  ;;  %v8329_v35 = vadd.f32 %v2179_v1, %v8123_v20 }
 0x4a5   :  { %5524 = vmatpush3.msra.mxu1 %v9342_v59  ;;  %v891_v59 = vmul.f32 %v7321_v57, %v6703_v56  ;;  %v886_v56 = vmul.f32 %v6731_v15, %v7363_v60  ;;  %v884_v15 = vmul.f32 %v6747_v9, %v7363_v60 }
 0x4a6   :  { %5525 = vmatprep.subr.mxu1 %v9343_v48 }
 0x4a7   :  { %5526 = vmatpush3.msra.mxu1 %v9343_v48 }
 0x4a8   :  { %5527 = vmatprep.subr.mxu1 %v9344_v2 }
 0x4a9   :  { %5528 = vmatpush3.msra.mxu1 %v9344_v2  ;;  %v9359_v2 = vld [vmem:[#allocation11_spill] sm:$0xff] }
 0x4aa   :  { %5529 = vmatprep.subr.mxu1 %v7912_v18 }
 0x4ab   :  { %5530 = vmatpush3.msra.mxu1 %v7912_v18 }
 0x4ac   :  { %2218 = vmax.xlane.f32.xlu0 %v8325_v5  ;;  %5531 = vmatprep.subr.mxu1 %v7767_v12 }
 0x4ad   :  { %2216 = vmax.xlane.f32.xlu1 %v8329_v35  ;;  %5532 = vmatpush3.msra.mxu1 %v7767_v12 }
 0x4ae   :  { %5533 = vmatprep.subr.mxu1 %v7930_v19 }
 0x4af   :  { %5534 = vmatpush3.msra.mxu1 %v7930_v19 }
 0x4b0   :  { %v2193_v20 = vpop.xlane.xlu0 %2192  ;;  %5535 = vmatprep.subr.mxu1 %v7785_v44 }
 0x4b1   :  { %v2222_v18 = vsub.f32 %v8164_v61, %v2193_v20  ;;  %5536 = vmatpush3.msra.mxu1 %v7785_v44  ;;  %v9360_v20 = vld [vmem:[#allocation47_spill] sm:$0xff] }
 0x4b2   :  { %5575 = vmatprep.subr.mxu1 %v7948_v42 }
 0x4b3   :  { %v2240_v62 = vmul.f32 1.442695, %v2222_v18  ;;  %v2195_v40 = vpop.xlane.xlu1 %2194  ;;  %v9361_v18 = vld [vmem:[#allocation14_spill] sm:$0xff] }
 0x4b4   :  { %v2199_v34 = vpop.xlane.xlu0 %2198  ;;  %v2223_v12 = vsub.f32 %v8170_v26, %v2195_v40  ;;  %v892_v26 = vmul.f32 %v6693_v32, %v7363_v60  ;;  %v9363_v40 = vld [vmem:[#allocation13_spill] sm:$0xff] }
 0x4b5   :  { %5965 = vpow2.f32 %v2240_v62  ;;  %v2225_v58 = vsub.f32 %v8173_v30, %v2199_v34  ;;  %v9362_v62 = vld [vmem:[#allocation49_spill] sm:$0xff] }
 0x4b6   :  { %v2242_v6 = vmul.f32 1.442695, %v2223_v12 }
 0x4b7   :  { %v2197_v25 = vpop.xlane.xlu1 %2196  ;;  %v2246_v44 = vmul.f32 1.442695, %v2225_v58 }
 0x4b8   :  { %5967 = vpow2.f32 %v2242_v6  ;;  %v2201_v19 = vpop.xlane.xlu0 %2200  ;;  %v2224_v55 = vsub.f32 %v8180_v31, %v2197_v25  ;;  %v893_v31 = vmul.f32 %v7321_v57, %v6691_v29  ;;  %v889_v29 = vmul.f32 %v7321_v57, %v6717_v47  ;;  %v9364_v6 = vld [vmem:[#allocation51_spill] sm:$0xff]  ;;  %v9365_v25 = vld [vmem:[#allocation16_spill] sm:$0xff] }
 0x4b9   :  { %v2226_v61 = vsub.f32 %v8185_v36, %v2201_v19  ;;  %v890_v36 = vmul.f32 %v6705_v38, %v7363_v60  ;;  %v887_v47 = vmul.f32 %v7321_v57, %v6729_v21  ;;  %v885_v21 = vmul.f32 %v7321_v57, %v6745_v14  ;;  %v9366_v19 = vld [vmem:[#allocation48_spill] sm:$0xff] }
 0x4ba   :  { %v2244_v23 = vmul.f32 1.442695, %v2224_v55  ;;  %v9367_v55 = vld [vmem:[#allocation18_spill] sm:$0xff] }
 0x4bb   :  { %v2248_v24 = vmul.f32 1.442695, %v2226_v61  ;;  %v8350_v39 = vpop.xlane.xlu1 %2202  ;;  %v9368_v61 = vld [vmem:[#allocation50_spill] sm:$0xff] }
 0x4bc   :  { %5969 = vpow2.f32 %v2244_v23 }
 0x4bd   :  { %5971 = vpow2.f32 %v2248_v24 }
 0x4be   :  { %3273 = vrot.lane.b32.xlu1 %v892_v26, %s6113_s21  ;;  %5973 = vpow2.f32 %v2246_v44  ;;  %v9369_v44 = vld [vmem:[#allocation17_spill] sm:$0xff]  ;;  %v9371_v26 = vld [vmem:[#allocation54_spill] sm:$0xff] }
 0x4bf   :  { %v2205_v30 = vpop.xlane.xlu1 %2204 }
 0x4c0   :  { %v2228_v53 = vsub.f32 %v8202_v63, %v2205_v30  ;;  %v888_v63 = vmul.f32 %v6719_v51, %v7363_v60  ;;  %v2227_v60 = vsub.f32 %v8192_v27, %v8350_v39  ;;  %v9351_v27 = vld [vmem:[#allocation7_spill] sm:$0xff]  ;;  %v9370_v39 = vld [vmem:[#allocation53_spill] sm:$0xff] }
 0x4c2   :  { %v8360_v17 = vpop.eup %5965  ;;  %3275 = vrot.lane.b32.xlu0 %v893_v31, %s6113_s21  ;;  %3269 = vrot.lane.b32.xlu1 %v890_v36, %s6113_s21  ;;  %v2252_v32 = vmul.f32 1.442695, %v2228_v53  ;;  %v2250_v14 = vmul.f32 1.442695, %v2227_v60  ;;  %v9372_v53 = vld [vmem:[#allocation52_spill] sm:$0xff]  ;;  %v9373_v36 = vld [vmem:[#allocation15_spill] sm:$0xff] }
 0x4c3   :  { %5502 = vmatprep.mubr.f32.mxu0 %v8360_v17  ;;  %v8479_v58 = vpop.permute.xlu1 %2979 }
 0x4c4   :  { %5975 = vpow2.f32 %v2252_v32  ;;  %v9374_v32 = vld [vmem:[#allocation55_spill] sm:$0xff] }
 0x4c5   :  { %v8369_v48 = vpop.eup %5967  ;;  %5977 = vpow2.f32 %v2250_v14  ;;  %v9378_v14 = vld [vmem:[#allocation19_spill] sm:$0xff] }
 0x4c6   :  { %3271 = vrot.lane.b32.xlu0 %v891_v59, %s6113_s21  ;;  %3265 = vrot.lane.b32.xlu1 %v888_v63, %s6113_s21  ;;  %v9375_v59 = vld [vmem:[#allocation20_spill] sm:$0xff] }
 0x4c7   :  { %5503 = vmatmul.mubr.f32.vlgmr.msra.gmra.mxu0 %v8369_v48 }
 0x4c8   :  { %5541 = vmatpush3.msra.mxu0 %v8136_v43 }
 0x4c9   :  { %v8377_v38 = vpop.eup %5969  ;;  %5542 = vmatprep.subr.mxu0 %v8155_v50 }
 0x4ca   :  { %v8382_v51 = vpop.eup %5971  ;;  %3267 = vrot.lane.b32.xlu0 %v889_v29, %s6113_s21  ;;  %5543 = vmatpush3.msra.mxu0 %v8155_v50  ;;  %v9355_v50 = vld [vmem:[#allocation9_spill] sm:$0xff] }
 0x4cb   :  { %3261 = vrot.lane.b32.xlu1 %v886_v56, %s6113_s21  ;;  %5544 = vmatprep.subr.mxu0 %v8153_v22  ;;  %v8388_v43 = vpop.eup %5973 }
 0x4cc   :  { %5572 = vmatprep.mubr.f32.mxu0 %v8382_v51  ;;  %5537 = vmatprep.mubr.f32.mxu1 %v8377_v38 }
 0x4cd   :  { %5545 = vmatpush3.msra.mxu0 %v8153_v22  ;;  %5538 = vmatmul.mubr.f32.vlgmr.msra.gmra.mxu1 %v8388_v43  ;;  %v9354_v22 = vld [vmem:[#allocation44_spill] sm:$0xff] }
 0x4ce   :  { %5546 = vmatprep.subr.mxu0 %v8157_v54  ;;  %5576 = vmatpush3.msra.mxu1 %v7948_v42  ;;  %v2207_v42 = vpop.xlane.xlu0 %2206 }
 0x4cf   :  { %3263 = vrot.lane.b32.xlu0 %v887_v47, %s6113_s21  ;;  %5547 = vmatpush3.msra.mxu0 %v8157_v54  ;;  %v2229_v57 = vsub.f32 %v8195_v16, %v2207_v42  ;;  %v9348_v16 = vld [vmem:[#allocation41_spill] sm:$0xff] }
 0x4d0   :  { %5577 = vmatprep.subr.mxu1 %v7966_v0  ;;  %3257 = vrot.lane.b32.xlu1 %v884_v15, %s6113_s21  ;;  %v9356_v54 = vld [vmem:[#allocation45_spill] sm:$0xff] }
 0x4d1   :  { %5548 = vmatprep.subr.mxu0 %v8175_v4  ;;  %5578 = vmatpush3.msra.mxu1 %v7966_v0  ;;  %v8412_v9 = vpop.eup %5975  ;;  %v9346_v0 = vld [vmem:[#allocation40_spill] sm:$0xff]  ;;  %v9376_v47 = vld [vmem:[#allocation57_spill] sm:$0xff] }
 0x4d2   :  { %5549 = vmatpush3.msra.mxu0 %v8175_v4  ;;  %5579 = vmatprep.subr.mxu1 %v7984_v28  ;;  %v9353_v4 = vld [vmem:[#allocation6_spill] sm:$0xff]  ;;  %v8459_v1 = vpop.eup %5977  ;;  %v8475_v12 = vpop.permute.xlu0 %2981 }
 0x4d3   :  { %5550 = vmatprep.subr.mxu0 %v8188_v11  ;;  %5580 = vmatpush3.msra.mxu1 %v7984_v28  ;;  %v9347_v28 = vld [vmem:[#allocation8_spill] sm:$0xff] }
 0x4d4   :  { %3259 = vrot.lane.b32.xlu0 %v885_v21, %s6113_s21  ;;  %5551 = vmatpush3.msra.mxu0 %v8188_v11  ;;  %v9357_v11 = vld [vmem:[#allocation12_spill] sm:$0xff] }
 0x4d5   :  { %5581 = vmatprep.subr.mxu1 %v7941_v10  ;;  %5552 = vmatprep.subr.mxu0 %v8204_v49  ;;  %v9377_v21 = vld [vmem:[#allocation56_spill] sm:$0xff] }
 0x4d6   :  { %5582 = vmatpush3.msra.mxu1 %v7941_v10  ;;  %5553 = vmatpush3.msra.mxu0 %v8204_v49  ;;  %v9345_v10 = vld [vmem:[#allocation21_spill] sm:$0xff]  ;;  %v9352_v49 = vld [vmem:[#allocation43_spill] sm:$0xff] }
 0x4d7   :  { %5583 = vmatprep.subr.mxu1 %v7959_v8  ;;  %5607 = vmatprep.mubr.f32.mxu1 %v8412_v9 }
 0x4d8   :  { %5554 = vmatprep.subr.mxu0 %v8209_v52  ;;  %5584 = vmatpush3.msra.mxu1 %v7959_v8  ;;  %v2254_v8 = vmul.f32 1.442695, %v2229_v57  ;;  %v9379_v57 = vld [vmem:[#allocation58_spill] sm:$0xff] }
 0x4d9   :  { %5555 = vmatpush3.msra.mxu0 %v8209_v52  ;;  %5585 = vmatprep.subr.mxu1 %v7977_v33  ;;  %v9358_v52 = vld [vmem:[#allocation46_spill] sm:$0xff] }
 0x4da   :  { %5556 = vmatprep.subr.mxu0 %v8213_v41  ;;  %5586 = vmatpush3.msra.mxu1 %v7977_v33  ;;  %v9349_v33 = vld [vmem:[#allocation10_spill] sm:$0xff]  ;;  %5979 = vpow2.f32 %v2254_v8  ;;  %v9381_v8 = vld [vmem:[#allocation59_spill] sm:$0xff] }
 0x4db   :  { %5557 = vmatpush3.msra.mxu0 %v8213_v41  ;;  %5587 = vmatprep.subr.mxu1 %v9345_v10  ;;  %v9350_v41 = vld [vmem:[#allocation42_spill] sm:$0xff] }
 0x4dc   :  { %5558 = vmatprep.subr.mxu0 %v9346_v0  ;;  %5588 = vmatpush3.msra.mxu1 %v9345_v10 }
 0x4dd   :  { %5559 = vmatpush3.msra.mxu0 %v9346_v0  ;;  %5589 = vmatprep.subr.mxu1 %v9347_v28  ;;  %v9380_v0 = vld [vmem:[#allocation22_spill] sm:$0xff] }
 0x4de   :  { %5560 = vmatprep.subr.mxu0 %v9348_v16  ;;  %5590 = vmatpush3.msra.mxu1 %v9347_v28 }
 0x4df   :  { %5561 = vmatpush3.msra.mxu0 %v9348_v16  ;;  %5591 = vmatprep.subr.mxu1 %v9349_v33  ;;  %v9383_v16 = vld [vmem:[#allocation32_spill] sm:$0xff] }
 0x4e0   :  { %5562 = vmatprep.subr.mxu0 %v9350_v41  ;;  %5592 = vmatpush3.msra.mxu1 %v9349_v33  ;;  %v9384_v33 = vld [vmem:[#allocation60_spill] sm:$0xff] }
 0x4e1   :  { %5563 = vmatpush3.msra.mxu0 %v9350_v41  ;;  %5593 = vmatprep.subr.mxu1 %v9351_v27  ;;  %v9385_v41 = vld [vmem:[#allocation33_spill] sm:$0xff] }
 0x4e2   :  { %5564 = vmatprep.subr.mxu0 %v9352_v49  ;;  %5594 = vmatpush3.msra.mxu1 %v9351_v27  ;;  %v9386_v27 = vld [vmem:[#allocation35_spill] sm:$0xff] }
 0x4e3   :  { %5565 = vmatpush3.msra.mxu0 %v9352_v49  ;;  %5595 = vmatprep.subr.mxu1 %v9353_v4  ;;  %v9388_v49 = vld [vmem:[#allocation36_spill] sm:$0xff] }
 0x4e4   :  { %5566 = vmatprep.subr.mxu0 %v9354_v22  ;;  %5596 = vmatpush3.msra.mxu1 %v9353_v4 }
 0x4e5   :  { %5567 = vmatpush3.msra.mxu0 %v9354_v22  ;;  %5597 = vmatprep.subr.mxu1 %v9355_v50 }
 0x4e6   :  { %5568 = vmatprep.subr.mxu0 %v9356_v54  ;;  %5598 = vmatpush3.msra.mxu1 %v9355_v50 }
 0x4e7   :  { %5569 = vmatpush3.msra.mxu0 %v9356_v54  ;;  %5599 = vmatprep.subr.mxu1 %v9357_v11  ;;  %v8471_v34 = vpop.eup %5979 }
 0x4e8   :  { %5570 = vmatprep.subr.mxu0 %v9358_v52  ;;  %5600 = vmatpush3.msra.mxu1 %v9357_v11  ;;  %v9390_v11 = vld [vmem:[#allocation38_spill] sm:$0xff] }
 0x4e9   :  { %5571 = vmatpush3.msra.mxu0 %v9358_v52  ;;  %5601 = vmatprep.subr.mxu1 %v9359_v2 }
 0x4ea   :  { %5573 = vmatmul.mubr.f32.vlgmr.msra.gmra.mxu0 %v8459_v1  ;;  %5602 = vmatpush3.msra.mxu1 %v9359_v2  ;;  %v9391_v2 = vld [vmem:[#allocation39_spill] sm:$0xff] }
 0x4eb   :  { %5610 = vmatprep.subr.mxu0 %v9360_v20  ;;  %5603 = vmatprep.subr.mxu1 %v9361_v18 }
 0x4ec   :  { %5611 = vmatpush3.msra.mxu0 %v9360_v20  ;;  %5604 = vmatpush3.msra.mxu1 %v9361_v18  ;;  %v6057_v18 = vld [vmem:[%s9168_s7 + $0x78] sm:$0xff] }
 0x4ed   :  { %5612 = vmatprep.subr.mxu0 %v9362_v62  ;;  %5605 = vmatprep.subr.mxu1 %v9363_v40 }
 0x4ee   :  { %5613 = vmatpush3.msra.mxu0 %v9362_v62  ;;  %5606 = vmatpush3.msra.mxu1 %v9363_v40  ;;  %v6058_v40 = vld [vmem:[%s9168_s7 + $0x70] sm:$0xff] }
 0x4ef   :  { %5614 = vmatprep.subr.mxu0 %v9364_v6  ;;  %5608 = vmatmul.mubr.f32.vlgmr.msra.gmra.mxu1 %v8471_v34 }
 0x4f0   :  { %5615 = vmatpush3.msra.mxu0 %v9364_v6  ;;  %5645 = vmatprep.subr.mxu1 %v9365_v25  ;;  %v6059_v6 = vld [vmem:[%s9168_s7 + $0x68] sm:$0xff] }
 0x4f1   :  { %5616 = vmatprep.subr.mxu0 %v9366_v19  ;;  %5646 = vmatpush3.msra.mxu1 %v9365_v25  ;;  %v2211_v23 = vpop.xlane.xlu0 %2210  ;;  %v6060_v25 = vld [vmem:[%s9168_s7 + $0x60] sm:$0xff] }
 0x4f2   :  { %5617 = vmatpush3.msra.mxu0 %v9366_v19  ;;  %5647 = vmatprep.subr.mxu1 %v9367_v55  ;;  %v2231_v31 = vsub.f32 %v9372_v53, %v2211_v23  ;;  %v6062_v19 = vld [vmem:[%s9168_s7 + $0x50] sm:$0xff]  ;;  %v6065_v23 = vld [vmem:[%s9168_s7 + $0x38] sm:$0xff]  ;;  %v6071_v53 = vld [vmem:[%s9168_s7 + $0x8] sm:$0xff] }
 0x4f3   :  { %5618 = vmatprep.subr.mxu0 %v9368_v61  ;;  %5648 = vmatpush3.msra.mxu1 %v9367_v55  ;;  %v6063_v55 = vld [vmem:[%s9168_s7 + $0x48] sm:$0xff] }
 0x4f4   :  { %5619 = vmatpush3.msra.mxu0 %v9368_v61  ;;  %5649 = vmatprep.subr.mxu1 %v9369_v44  ;;  %v2209_v24 = vpop.xlane.xlu1 %2208  ;;  %v2258_v42 = vmul.f32 1.442695, %v2231_v31  ;;  %v6064_v61 = vld [vmem:[%s9168_s7 + $0x40] sm:$0xff] }
 0x4f5   :  { %5620 = vmatprep.subr.mxu0 %v9370_v39  ;;  %5650 = vmatpush3.msra.mxu1 %v9369_v44  ;;  %v2230_v30 = vsub.f32 %v9371_v26, %v2209_v24  ;;  %v6066_v44 = vld [vmem:[%s9168_s7 + $0x30] sm:$0xff]  ;;  %v6067_v24 = vld [vmem:[%s9168_s7 + $0x28] sm:$0xff]  ;;  %v6069_v26 = vld [vmem:[%s9168_s7 + $0x18] sm:$0xff] }
 0x4f6   :  { %5621 = vmatpush3.msra.mxu0 %v9370_v39  ;;  %5651 = vmatprep.subr.mxu1 %v9373_v36  ;;  %v6068_v39 = vld [vmem:[%s9168_s7 + $0x20] sm:$0xff] }
 0x4f7   :  { %5622 = vmatprep.subr.mxu0 %v9374_v32  ;;  %5652 = vmatpush3.msra.mxu1 %v9373_v36  ;;  %v2256_v63 = vmul.f32 1.442695, %v2230_v30  ;;  %v6070_v30 = vld [vmem:[%s9168_s7 + $0x10] sm:$0xff]  ;;  %v6072_v31 = vld [vmem:[%s9168_s7] sm:$0xff] }
 0x4f8   :  { %5623 = vmatpush3.msra.mxu0 %v9374_v32  ;;  %5653 = vmatprep.subr.mxu1 %v9375_v59  ;;  %v2213_v29 = vpop.xlane.xlu0 %2212  ;;  %v2215_v56 = vpop.xlane.xlu1 %2214 }
 0x4f9   :  { %5624 = vmatprep.subr.mxu0 %v8267_v13  ;;  %5654 = vmatpush3.msra.mxu1 %v9375_v59  ;;  %v2232_v15 = vsub.f32 %v9376_v47, %v2213_v29  ;;  %v2233_v60 = vsub.f32 %v9377_v21, %v2215_v56  ;;  %5981 = vpow2.f32 %v2256_v63  ;;  %v3607_v21 = vld [vmem:[%s9163_s2 + $0x10] sm:$0xff] }
 0x4fa   :  { %5625 = vmatpush3.msra.mxu0 %v8267_v13  ;;  %5655 = vmatprep.subr.mxu1 %v9378_v14  ;;  %5983 = vpow2.f32 %v2258_v42  ;;  %v9382_v13 = vld [vmem:[#allocation31_spill] sm:$0xff]  ;;  %v3605_v42 = vld [vmem:[%s9163_s2] sm:$0xff] }
 0x4fb   :  { %5626 = vmatprep.subr.mxu0 %v9379_v57  ;;  %5656 = vmatpush3.msra.mxu1 %v9378_v14  ;;  %v2260_v10 = vmul.f32 1.442695, %v2232_v15  ;;  %v2262_v28 = vmul.f32 1.442695, %v2233_v60  ;;  %v3608_v15 = vld [vmem:[%s9163_s2 + $0x18] sm:$0xff]  ;;  %v3606_v60 = vld [vmem:[%s9163_s2 + $0x8] sm:$0xff] }
 0x4fc   :  { %5627 = vmatpush3.msra.mxu0 %v9379_v57  ;;  %5657 = vmatprep.subr.mxu1 %v9380_v0  ;;  %v3286_v50 = vpop.permute.xlu1 %3285 }
 0x4fd   :  { %5628 = vmatprep.subr.mxu0 %v9381_v8  ;;  %5658 = vmatpush3.msra.mxu1 %v9380_v0  ;;  %5985 = vpow2.f32 %v2260_v10 }
 0x4fe   :  { %5629 = vmatpush3.msra.mxu0 %v9381_v8  ;;  %5659 = vmatprep.subr.mxu1 %v9382_v13  ;;  %5987 = vpow2.f32 %v2262_v28 }
 0x4ff   :  { %5630 = vmatprep.subr.mxu0 %v8271_v45  ;;  %5660 = vmatpush3.msra.mxu1 %v9382_v13 }
 0x500   :  { %5631 = vmatpush3.msra.mxu0 %v8271_v45  ;;  %5661 = vmatprep.subr.mxu1 %v9383_v16  ;;  %v9387_v45 = vld [vmem:[#allocation34_spill] sm:$0xff]  ;;  %v3282_v62 = vpop.permute.xlu1 %3281 }
 0x501   :  { %5632 = vmatprep.subr.mxu0 %v9384_v33  ;;  %5662 = vmatpush3.msra.mxu1 %v9383_v16 }
 0x502   :  { %5633 = vmatpush3.msra.mxu0 %v9384_v33  ;;  %5663 = vmatprep.subr.mxu1 %v9385_v41 }
 0x503   :  { %5634 = vmatprep.subr.mxu0 %v8332_v7  ;;  %5664 = vmatpush3.msra.mxu1 %v9385_v41 }
 0x504   :  { %5635 = vmatpush3.msra.mxu0 %v8332_v7  ;;  %5665 = vmatprep.subr.mxu1 %v9386_v27  ;;  %v3288_v7 = vpop.permute.xlu0 %3287 }
 0x505   :  { %5636 = vmatprep.subr.mxu0 %v8339_v3  ;;  %5666 = vmatpush3.msra.mxu1 %v9386_v27 }
 0x506   :  { %5637 = vmatpush3.msra.mxu0 %v8339_v3  ;;  %5667 = vmatprep.subr.mxu1 %v9387_v45  ;;  %v8535_v4 = vpop.eup %5981  ;;  %v9389_v3 = vld [vmem:[#allocation37_spill] sm:$0xff] }
 0x507   :  { %5638 = vmatprep.subr.mxu0 %v8475_v12  ;;  %5668 = vmatpush3.msra.mxu1 %v9387_v45  ;;  %v8541_v22 = vpop.eup %5983 }
 0x508   :  { %5639 = vmatpush3.msra.mxu0 %v8475_v12  ;;  %5669 = vmatprep.subr.mxu1 %v9388_v49  ;;  %v3284_v20 = vpop.permute.xlu0 %3283 }
 0x509   :  { %5640 = vmatprep.subr.mxu0 %v8479_v58  ;;  %5670 = vmatpush3.msra.mxu1 %v9388_v49 }
 0x50a   :  { %5641 = vmatpush3.msra.mxu0 %v8479_v58  ;;  %5671 = vmatprep.subr.mxu1 %v9389_v3  ;;  %v8544_v54 = vpop.eup %5985  ;;  %v3278_v58 = vpop.permute.xlu1 %3277 }
 0x50b   :  { %5672 = vmatpush3.msra.mxu1 %v9389_v3  ;;  %5680 = vmatprep.subr.mxu0 %v3288_v7  ;;  %v8550_v52 = vpop.eup %5987 }
 0x50c   :  { %5673 = vmatprep.subr.mxu1 %v9390_v11  ;;  %5642 = vmatprep.mubr.f32.mxu0 %v8535_v4  ;;  %v3280_v12 = vpop.permute.xlu0 %3279 }
 0x50d   :  { %5674 = vmatpush3.msra.mxu1 %v9390_v11  ;;  %5643 = vmatmul.mubr.f32.vlgmr.msra.gmra.mxu0 %v8541_v22 }
 0x50e   :  { %5675 = vmatprep.subr.mxu1 %v9391_v2  ;;  %5681 = vmatpush3.msra.mxu0 %v3288_v7 }
 0x50f   :  { %5676 = vmatpush3.msra.mxu1 %v9391_v2  ;;  %5677 = vmatprep.mubr.f32.mxu1 %v8544_v54 }
 0x510   :  { %5682 = vmatprep.subr.mxu0 %v3286_v50  ;;  %5715 = vmatprep.subr.mxu1 %v6057_v18 }
 0x511   :  { %5683 = vmatpush3.msra.mxu0 %v3286_v50  ;;  %5678 = vmatmul.mubr.f32.vlgmr.msra.gmra.mxu1 %v8550_v52 }
 0x512   :  { %5684 = vmatprep.subr.mxu0 %v3284_v20  ;;  %5716 = vmatpush3.msra.mxu1 %v6057_v18 }
 0x513   :  { %5685 = vmatpush3.msra.mxu0 %v3284_v20  ;;  %5717 = vmatprep.subr.mxu1 %v6058_v40 }
 0x514   :  { %5747 = vmatprep.mubr.f32.mxu1 %v8295_v46  ;;  %5686 = vmatprep.subr.mxu0 %v3282_v62  ;;  %v6061_v46 = vld [vmem:[%s9168_s7 + $0x58] sm:$0xff] }
 0x515   :  { %5718 = vmatpush3.msra.mxu1 %v6058_v40  ;;  %5687 = vmatpush3.msra.mxu0 %v3282_v62 }
 0x516   :  { %5719 = vmatprep.subr.mxu1 %v6059_v6  ;;  %5688 = vmatprep.subr.mxu0 %v3280_v12 }
 0x517   :  { %5720 = vmatpush3.msra.mxu1 %v6059_v6  ;;  %5689 = vmatpush3.msra.mxu0 %v3280_v12 }
 0x518   :  { %5721 = vmatprep.subr.mxu1 %v6060_v25  ;;  %5690 = vmatprep.subr.mxu0 %v3278_v58 }
 0x519   :  { %5722 = vmatpush3.msra.mxu1 %v6060_v25  ;;  %5691 = vmatpush3.msra.mxu0 %v3278_v58 }
 0x51a   :  { %5723 = vmatprep.subr.mxu1 %v6061_v46 }
 0x51b   :  { %5724 = vmatpush3.msra.mxu1 %v6061_v46 }
 0x51c   :  { %5725 = vmatprep.subr.mxu1 %v6062_v19 }
 0x51d   :  { %5726 = vmatpush3.msra.mxu1 %v6062_v19 }
 0x51e   :  { %5727 = vmatprep.subr.mxu1 %v6063_v55 }
 0x51f   :  { %5728 = vmatpush3.msra.mxu1 %v6063_v55 }
 0x520   :  { %5729 = vmatprep.subr.mxu1 %v6064_v61 }
 0x521   :  { %5730 = vmatpush3.msra.mxu1 %v6064_v61 }
 0x522   :  { %5731 = vmatprep.subr.mxu1 %v6065_v23 }
 0x523   :  { %5732 = vmatpush3.msra.mxu1 %v6065_v23 }
 0x524   :  { %5733 = vmatprep.subr.mxu1 %v6066_v44 }
 0x525   :  { %5734 = vmatpush3.msra.mxu1 %v6066_v44 }
 0x526   :  { %5735 = vmatprep.subr.mxu1 %v6067_v24 }
 0x527   :  { %5736 = vmatpush3.msra.mxu1 %v6067_v24 }
 0x528   :  { %5737 = vmatprep.subr.mxu1 %v6068_v39 }
 0x529   :  { %5738 = vmatpush3.msra.mxu1 %v6068_v39 }
 0x52a   :  { %5739 = vmatprep.subr.mxu1 %v6069_v26 }
 0x52b   :  { %5740 = vmatpush3.msra.mxu1 %v6069_v26 }
 0x52c   :  { %5741 = vmatprep.subr.mxu1 %v6070_v30 }
 0x52d   :  { %5742 = vmatpush3.msra.mxu1 %v6070_v30 }
 0x52e   :  { %5743 = vmatprep.subr.mxu1 %v6071_v53 }
 0x52f   :  { %5744 = vmatpush3.msra.mxu1 %v6071_v53 }
 0x530   :  { %5745 = vmatprep.subr.mxu1 %v6072_v31 }
 0x531   :  { %5746 = vmatpush3.msra.mxu1 %v6072_v31 }
 0x532   :  { %5748 = vmatmul.mubr.f32.vlgmr.msra.gmra.mxu1 %v8297_v37 }
 0x533   :  { %5750 = vmatprep.mubr.f32.mxu1 %v8360_v17 }
 0x535   :  { %v2219_v36 = vpop.xlane.xlu0 %2218 }
 0x536   :  { %5751 = vmatmul.mubr.f32.gmra.mxu1 %v8369_v48  ;;  %v2217_v32 = vpop.xlane.xlu1 %2216  ;;  %v2235_v63 = vsub.f32 %v8325_v5, %v2219_v36 }
 0x537   :  { %5753 = vmatprep.mubr.f32.mxu1 %v8377_v38  ;;  %v2234_v59 = vsub.f32 %v8329_v35, %v2217_v32 }
 0x538   :  { %v2266_v37 = vmul.f32 1.442695, %v2235_v63 }
 0x539   :  { %v2264_v29 = vmul.f32 1.442695, %v2234_v59  ;;  %v3276_v56 = vpop.permute.xlu0 %3275 }
 0x53a   :  { %5754 = vmatmul.mubr.f32.gmra.mxu1 %v8388_v43  ;;  %5692 = vmatprep.subr.mxu0 %v3276_v56  ;;  %v3274_v47 = vpop.permute.xlu1 %3273 }
 0x53b   :  { %5756 = vmatprep.mubr.f32.mxu1 %v8382_v51  ;;  %5989 = vpow2.f32 %v2264_v29  ;;  %5693 = vmatpush3.msra.mxu0 %v3276_v56 }
 0x53c   :  { %5694 = vmatprep.subr.mxu0 %v3274_v47  ;;  %5991 = vpow2.f32 %v2266_v37 }
 0x53d   :  { %5695 = vmatpush3.msra.mxu0 %v3274_v47  ;;  %v3272_v17 = vpop.permute.xlu0 %3271 }
 0x53e   :  { %5757 = vmatmul.mubr.f32.gmra.mxu1 %v8459_v1  ;;  %5696 = vmatprep.subr.mxu0 %v3272_v17  ;;  %v3270_v35 = vpop.permute.xlu1 %3269 }
 0x53f   :  { %5759 = vmatprep.mubr.f32.mxu1 %v8412_v9  ;;  %5697 = vmatpush3.msra.mxu0 %v3272_v17 }
 0x540   :  { %5698 = vmatprep.subr.mxu0 %v3270_v35 }
 0x541   :  { %5699 = vmatpush3.msra.mxu0 %v3270_v35  ;;  %v3268_v5 = vpop.permute.xlu0 %3267 }
 0x542   :  { %5760 = vmatmul.mubr.f32.gmra.mxu1 %v8471_v34  ;;  %5700 = vmatprep.subr.mxu0 %v3268_v5  ;;  %v3266_v48 = vpop.permute.xlu1 %3265 }
 0x543   :  { %5762 = vmatprep.mubr.f32.mxu1 %v8535_v4  ;;  %5701 = vmatpush3.msra.mxu0 %v3268_v5 }
 0x544   :  { %5702 = vmatprep.subr.mxu0 %v3266_v48 }
 0x545   :  { %5703 = vmatpush3.msra.mxu0 %v3266_v48  ;;  %v3264_v38 = vpop.permute.xlu0 %3263 }
 0x546   :  { %5763 = vmatmul.mubr.f32.gmra.mxu1 %v8541_v22  ;;  %5704 = vmatprep.subr.mxu0 %v3264_v38  ;;  %v3262_v51 = vpop.permute.xlu1 %3261 }
 0x547   :  { %5765 = vmatprep.mubr.f32.mxu1 %v8544_v54  ;;  %5705 = vmatpush3.msra.mxu0 %v3264_v38 }
 0x548   :  { %v5990_v43 = vpop.eup %5989  ;;  %5706 = vmatprep.subr.mxu0 %v3262_v51 }
 0x549   :  { %5707 = vmatpush3.msra.mxu0 %v3262_v51  ;;  %v3260_v9 = vpop.permute.xlu0 %3259  ;;  %5712 = vmatprep.mubr.f32.mxu0 %v5990_v43  ;;  %v5992_v34 = vpop.eup %5991 }
 0x54a   :  { %5766 = vmatmul.mubr.f32.gmra.mxu1 %v8550_v52  ;;  %5708 = vmatprep.subr.mxu0 %v3260_v9  ;;  %v3258_v1 = vpop.permute.xlu1 %3257 }
 0x54b   :  { %5768 = vmatprep.mubr.f32.mxu1 %v5990_v43  ;;  %5709 = vmatpush3.msra.mxu0 %v3260_v9 }
 0x54c   :  { %5710 = vmatprep.subr.mxu0 %v3258_v1 }
 0x54d   :  { %5711 = vmatpush3.msra.mxu0 %v3258_v1 }
 0x54e   :  { %5769 = vmatmul.mubr.f32.gmra.mxu1 %v5992_v34  ;;  %5713 = vmatmul.mubr.f32.vlgmr.msra.gmra.mxu0 %v5992_v34 }
 0x54f   :  { %5771 = vmatprep.subr.mxu0 %v3608_v15 }
 0x550   :  { %5772 = vmatpush3.msra.mxu0 %v3608_v15 }
 0x551   :  { %5773 = vmatprep.subr.mxu0 %v3607_v21 }
 0x552   :  { %5774 = vmatpush3.msra.mxu0 %v3607_v21  ;;  %v5469_v14 = vpop.f32.mrf.mxu1 }
 0x553   :  { %5775 = vmatprep.subr.mxu0 %v3606_v60 }
 0x554   :  { %5776 = vmatpush3.msra.mxu0 %v3606_v60  ;;  %v2398_v57 = vpop.f32.mrf.mxu1 }
 0x555   :  { %5777 = vmatprep.subr.mxu0 %v3605_v42 }
 0x556   :  { %5778 = vmatpush3.msra.mxu0 %v3605_v42 }
 0x587   :  { %v5504_v61 = vpop.f32.mrf.mxu0 }
 0x589   :  { %v2537_v29 = vpop.f32.mrf.mxu0 }
 0x58d   :  { %v8632_v10 = vpop.f32.mrf.mxu1 }
 0x58f   :  { %v8634_v0 = vpop.f32.mrf.mxu1 }
 0x5aa   :  { %v5574_v34 = vpop.f32.mrf.mxu0 }
 0x5af   :  { %v8636_v8 = vpop.f32.mrf.mxu1 }
 0x5b1   :  { %v8638_v28 = vpop.f32.mrf.mxu1 }
 0x5d1   :  { %v8640_v13 = vpop.f32.mrf.mxu1 }
 0x5d3   :  { %v8642_v16 = vpop.f32.mrf.mxu1 }
 0x5f2   :  { %v5749_v33 = vpop.f32.mrf.mxu1 }
 0x5f3   :  { %5993 = vrcp.f32 %v5749_v33 }
 0x5f4   :  { %v3446_v41 = vpop.f32.mrf.mxu1 }
 0x5f5   :  { %5995 = vrcp.f32 %v3446_v41 }
 0x5f6   :  { %v5752_v27 = vpop.f32.mrf.mxu1 }
 0x5f7   :  { %5997 = vrcp.f32 %v5752_v27 }
 0x5f8   :  { %v3456_v45 = vpop.f32.mrf.mxu1 }
 0x5f9   :  { %5999 = vrcp.f32 %v3456_v45 }
 0x5fa   :  { %v5755_v49 = vpop.f32.mrf.mxu1 }
 0x5fb   :  { %6001 = vrcp.f32 %v5755_v49 }
 0x5fc   :  { %v3466_v4 = vpop.f32.mrf.mxu1 }
 0x5fd   :  { %6003 = vrcp.f32 %v3466_v4 }
 0x5fe   :  { %v5758_v7 = vpop.f32.mrf.mxu1 }
 0x5ff   :  { %6005 = vrcp.f32 %v5758_v7 }
 0x600   :  { %v5994_v3 = vpop.eup %5993  ;;  %v3476_v22 = vpop.f32.mrf.mxu1 }
 0x601   :  { %v3542_v50 = vmul.f32 %v5994_v3, %v5749_v33  ;;  %6007 = vrcp.f32 %v3476_v22 }
 0x602   :  { %v5996_v54 = vpop.eup %5995  ;;  %v5761_v11 = vpop.f32.mrf.mxu1 }
 0x603   :  { %v3558_v52 = vsub.f32 2.0, %v3542_v50  ;;  %v3541_v2 = vmul.f32 %v5996_v54, %v3446_v41  ;;  %6009 = vrcp.f32 %v5761_v11 }
 0x604   :  { %v5998_v20 = vpop.eup %5997  ;;  %v3486_v18 = vpop.f32.mrf.mxu1 }
 0x605   :  { %v3557_v62 = vsub.f32 2.0, %v3541_v2  ;;  %v3544_v40 = vmul.f32 %v5998_v20, %v5752_v27  ;;  %6011 = vrcp.f32 %v3486_v18  ;;  %v3574_v6 = vmul.f32 %v5994_v3, %v3558_v52 }
 0x606   :  { %v6000_v12 = vpop.eup %5999  ;;  %v5764_v58 = vpop.f32.mrf.mxu1 }
 0x607   :  { %v3573_v25 = vmul.f32 %v5996_v54, %v3557_v62  ;;  %v3560_v46 = vsub.f32 2.0, %v3544_v40  ;;  %v3543_v19 = vmul.f32 %v6000_v12, %v3456_v45  ;;  %6013 = vrcp.f32 %v5764_v58 }
 0x608   :  { %v6002_v55 = vpop.eup %6001  ;;  %v3496_v23 = vpop.f32.mrf.mxu1  ;;  %v3590_v30 = vmul.f32 %v5469_v14, %v3574_v6 }
 0x609   :  { %v3589_v44 = vmul.f32 %v3573_v25, %v2398_v57  ;;  %v3559_v24 = vsub.f32 2.0, %v3543_v19  ;;  %v3546_v39 = vmul.f32 %v6002_v55, %v5755_v49  ;;  %v3576_v53 = vmul.f32 %v5998_v20, %v3560_v46  ;;  %v2815_v49 = vpop.f32.mrf.mxu0 }
 0x60a   :  { %v6004_v26 = vpop.eup %6003  ;;  %6015 = vrcp.f32 %v3496_v23  ;;  %v5767_v31 = vpop.f32.mrf.mxu1 }
 0x60b   :  { %v3575_v36 = vmul.f32 %v6000_v12, %v3559_v24  ;;  %v3562_v32 = vsub.f32 2.0, %v3546_v39  ;;  %v3545_v59 = vmul.f32 %v6004_v26, %v3466_v4  ;;  %5779 = vmatprep.mubr.msk.f32.mxu0 %vm69_vm0, %v3589_v44  ;;  %6017 = vrcp.f32 %v5767_v31  ;;  %v5644_v20 = vpop.f32.mrf.mxu0 }
 0x60c   :  { %v6006_v63 = vpop.eup %6005  ;;  %v3506_v56 = vpop.f32.mrf.mxu1  ;;  %5780 = vmatmul.mubr.msk.f32.vlgmr.msra.gmra.mxu0 %vm69_vm0, %v3590_v30  ;;  %v3592_v5 = vmul.f32 %v5504_v61, %v3576_v53 }
 0x60d   :  { %v3591_v47 = vmul.f32 %v3575_v36, %v2537_v29  ;;  %v3561_v37 = vsub.f32 2.0, %v3545_v59  ;;  %v3548_v17 = vmul.f32 %v6006_v63, %v5758_v7  ;;  %v3578_v48 = vmul.f32 %v6002_v55, %v3562_v32  ;;  %v3093_v61 = vpop.f32.mrf.mxu0 }
 0x60e   :  { %v6008_v35 = vpop.eup %6007  ;;  %6019 = vrcp.f32 %v3506_v56  ;;  %v5770_v38 = vpop.f32.mrf.mxu1 }
 0x60f   :  { %v3577_v51 = vmul.f32 %v6004_v26, %v3561_v37  ;;  %v3564_v43 = vsub.f32 2.0, %v3548_v17  ;;  %v3547_v9 = vmul.f32 %v6008_v35, %v3476_v22  ;;  %5782 = vmatprep.mubr.msk.f32.mxu0 %vm69_vm0, %v3591_v47  ;;  %6021 = vrcp.f32 %v5770_v38  ;;  %v9392_v17 = vld [vmem:[#allocation5_spill] sm:$0xff] }
 0x610   :  { %v6010_v1 = vpop.eup %6009  ;;  %5783 = vmatmul.mubr.msk.f32.gmra.mxu0 %vm69_vm0, %v3592_v5  ;;  %v3516_v15 = vpop.f32.mrf.mxu1  ;;  %v3594_v57 = vmul.f32 %v8632_v10, %v3578_v48  ;;  %v6074_v48 = vld [vmem:[%s9161_s0 + $0x8] sm:$0xff] }
 0x611   :  { %v3593_v21 = vmul.f32 %v3577_v51, %v8634_v0  ;;  %v3563_v60 = vsub.f32 2.0, %v3547_v9  ;;  %v3550_v42 = vmul.f32 %v6010_v1, %v5761_v11  ;;  %v3580_v33 = vmul.f32 %v6006_v63, %v3564_v43  ;;  %v6075_v9 = vld [vmem:[%s9161_s0] sm:$0xff] }
 0x612   :  { %v6012_v14 = vpop.eup %6011  ;;  %6023 = vrcp.f32 %v3516_v15 }
 0x613   :  { %v3579_v41 = vmul.f32 %v6008_v35, %v3563_v60  ;;  %v3566_v27 = vsub.f32 2.0, %v3550_v42  ;;  %v3549_v45 = vmul.f32 %v6012_v14, %v3486_v18  ;;  %5785 = vmatprep.mubr.msk.f32.mxu0 %vm69_vm0, %v3593_v21  ;;  %v3596_v22 = vmul.f32 %v5574_v34, %v3580_v33  ;;  %v6076_v21 = vld [vmem:[%s9161_s0 + $0x18] sm:$0xff]  ;;  %v6077_v33 = vld [vmem:[%s9161_s0 + $0x10] sm:$0xff] }
 0x614   :  { %5786 = vmatmul.mubr.msk.f32.gmra.mxu0 %vm69_vm0, %v3594_v57  ;;  %v6014_v4 = vpop.eup %6013  ;;  %v3820_v35 = vsub.s32 0, %v9392_v17 }
 0x615   :  { %v3595_v7 = vmul.f32 %v3579_v41, %v2815_v49  ;;  %v3565_v3 = vsub.f32 2.0, %v3549_v45  ;;  %v3582_v0 = vmul.f32 %v6010_v1, %v3566_v27  ;;  %v3552_v50 = vmul.f32 %v6014_v4, %v5764_v58  ;;  %v6078_v49 = vld [vmem:[%s9161_s0 + $0x28] sm:$0xff] }
 0x617   :  { %v6016_v54 = vpop.eup %6015  ;;  %v3581_v11 = vmul.f32 %v6012_v14, %v3565_v3  ;;  %5788 = vmatprep.mubr.msk.f32.mxu0 %vm69_vm0, %v3595_v7  ;;  %v3568_v10 = vsub.f32 2.0, %v3552_v50  ;;  %v3598_v62 = vmul.f32 %v8636_v8, %v3582_v0  ;;  %v6079_v0 = vld [vmem:[%s9161_s0 + $0x20] sm:$0xff] }
 0x618   :  { %v3551_v52 = vmul.f32 %v6016_v54, %v3496_v23  ;;  %5789 = vmatmul.mubr.msk.f32.gmra.mxu0 %vm69_vm0, %v3596_v22  ;;  %v6018_v2 = vpop.eup %6017 }
 0x619   :  { %v3597_v18 = vmul.f32 %v3581_v11, %v8638_v28  ;;  %v3554_v12 = vmul.f32 %v6018_v2, %v5767_v31  ;;  %v3584_v25 = vmul.f32 %v6014_v4, %v3568_v10  ;;  %v5714_v31 = vpop.f32.mrf.mxu0  ;;  %v6080_v10 = vld [vmem:[%s9161_s0 + $0x38] sm:$0xff] }
 0x61a   :  { %v3567_v40 = vsub.f32 2.0, %v3551_v52 }
 0x61b   :  { %v6020_v6 = vpop.eup %6019  ;;  %5791 = vmatprep.mubr.msk.f32.mxu0 %vm69_vm0, %v3597_v18  ;;  %v3570_v46 = vsub.f32 2.0, %v3554_v12  ;;  %v3600_v28 = vmul.f32 %v5644_v20, %v3584_v25 }
 0x61c   :  { %v3583_v58 = vmul.f32 %v6016_v54, %v3567_v40  ;;  %v3553_v19 = vmul.f32 %v6020_v6, %v3506_v56  ;;  %5792 = vmatmul.mubr.msk.f32.gmra.mxu0 %vm69_vm0, %v3598_v62  ;;  %v6022_v55 = vpop.eup %6021  ;;  %v3371_v56 = vpop.f32.mrf.mxu0  ;;  %v6081_v40 = vld [vmem:[%s9161_s0 + $0x30] sm:$0xff] }
 0x61d   :  { %v3556_v24 = vmul.f32 %v6022_v55, %v5770_v38  ;;  %v3586_v26 = vmul.f32 %v6018_v2, %v3570_v46 }
 0x61e   :  { %v3599_v23 = vmul.f32 %v3583_v58, %v3093_v61  ;;  %v3569_v44 = vsub.f32 2.0, %v3553_v19  ;;  %v6082_v58 = vld [vmem:[%s9161_s0 + $0x48] sm:$0xff] }
 0x61f   :  { %v6024_v39 = vpop.eup %6023  ;;  %v3572_v30 = vsub.f32 2.0, %v3556_v24  ;;  %v3602_v59 = vmul.f32 %v8640_v13, %v3586_v26 }
 0x620   :  { %v3585_v8 = vmul.f32 %v6020_v6, %v3569_v44  ;;  %v3555_v53 = vmul.f32 %v6024_v39, %v3516_v15  ;;  %5794 = vmatprep.mubr.msk.f32.mxu0 %vm69_vm0, %v3599_v23  ;;  %v6083_v44 = vld [vmem:[%s9161_s0 + $0x40] sm:$0xff] }
 0x621   :  { %5795 = vmatmul.mubr.msk.f32.gmra.mxu0 %vm69_vm0, %v3600_v28  ;;  %v3588_v63 = vmul.f32 %v6022_v55, %v3572_v30 }
 0x622   :  { %v3601_v36 = vmul.f32 %v3585_v8, %v8642_v16  ;;  %v3571_v32 = vsub.f32 2.0, %v3555_v53  ;;  %v8670_v16 = vld [vmem:[%s9166_s5] sm:$0x3f]  ;;  %v6084_v8 = vld [vmem:[%s9161_s0 + $0x58] sm:$0xff] }
 0x623   :  { %v3604_v37 = vmul.f32 %v5714_v31, %v3588_v63  ;;  %v8673_v13 = vrot.slane %v8670_v16, %v3820_v35 }
 0x624   :  { %v3587_v29 = vmul.f32 %v6024_v39, %v3571_v32  ;;  %5797 = vmatprep.mubr.msk.f32.mxu0 %vm69_vm0, %v3601_v36 }
 0x625   :  { %5798 = vmatmul.mubr.msk.f32.gmra.mxu0 %vm69_vm0, %v3602_v59  ;;  %v6085_v59 = vld [vmem:[%s9161_s0 + $0x50] sm:$0xff] }
 0x626   :  { %v3603_v47 = vmul.f32 %v3587_v29, %v3371_v56  ;;  %v6086_v56 = vld [vmem:[%s9161_s0 + $0x68] sm:$0xff] }
 0x628   :  { %5800 = vmatprep.mubr.msk.f32.mxu0 %vm69_vm0, %v3603_v47 }
 0x629   :  { %5801 = vmatmul.mubr.msk.f32.gmra.mxu0 %vm69_vm0, %v3604_v37 }
 0x6cc   :  { %v5781_v5 = vpop.f32.mrf.mxu0 }
 0x6cd   :  { %v3803_v38 = vadd.f32 %v6074_v48, %v5781_v5 }
 0x6ce   :  { %v3723_v51 = vpop.f32.mrf.mxu0 }
 0x6cf   :  { %v8679_v43 = vadd.f32 %v8673_v13, %v3803_v38  ;;  %v3802_v1 = vadd.f32 %v6075_v9, %v3723_v51  ;;  %v6087_v51 = vld [vmem:[%s9161_s0 + $0x60] sm:$0xff] }
 0x6d0   :  { %v5784_v34 = vpop.f32.mrf.mxu0 }
 0x6d1   :  { %v8685_v15 = vadd.f32 %v8673_v13, %v3802_v1  ;;  %v3805_v60 = vadd.f32 %v6076_v21, %v5784_v34  ;;  %v3841_v42 = vsel %vm69_vm0, %v8679_v43, 0.0  ;;  %v6088_v21 = vld [vmem:[%s9161_s0 + $0x78] sm:$0xff] }
 0x6d2   :  { %3842 = vadd.xlane.f32.xlu1 %v3841_v42  ;;  %v3733_v14 = vpop.f32.mrf.mxu0 }
 0x6d3   :  { %v8693_v57 = vadd.f32 %v8673_v13, %v3805_v60  ;;  %v3804_v41 = vadd.f32 %v6077_v33, %v3733_v14  ;;  %v3838_v27 = vsel %vm69_vm0, %v8685_v15, 0.0 }
 0x6d4   :  { %3839 = vadd.xlane.f32.xlu0 %v3838_v27  ;;  %v5787_v45 = vpop.f32.mrf.mxu0  ;;  %v6089_v27 = vld [vmem:[%s9161_s0 + $0x70] sm:$0xff] }
 0x6d5   :  { %v3807_v4 = vadd.f32 %v6078_v49, %v5787_v45  ;;  %v8704_v3 = vadd.f32 %v8673_v13, %v3804_v41  ;;  %v3847_v54 = vsel %vm69_vm0, %v8693_v57, 0.0 }
 0x6d6   :  { %v3743_v7 = vpop.f32.mrf.mxu0 }
 0x6d7   :  { %v8707_v22 = vadd.f32 %v8673_v13, %v3807_v4  ;;  %v3806_v50 = vadd.f32 %v6079_v0, %v3743_v7  ;;  %v3844_v6 = vsel %vm69_vm0, %v8704_v3, 0.0 }
 0x6d8   :  { %3848 = vadd.xlane.f32.xlu0 %v3847_v54  ;;  %v5790_v11 = vpop.f32.mrf.mxu0 }
 0x6d9   :  { %v3809_v52 = vadd.f32 %v6080_v10, %v5790_v11  ;;  %v3853_v2 = vsel %vm69_vm0, %v8707_v22, 0.0  ;;  %v8720_v18 = vadd.f32 %v8673_v13, %v3806_v50  ;;  %v4089_v50 = vld [vmem:[%s9164_s3 + $0x18] sm:$0xff] }
 0x6da   :  { %3854 = vadd.xlane.f32.xlu1 %v3853_v2  ;;  %v3753_v20 = vpop.f32.mrf.mxu0  ;;  %5803 = vmatprep.subr.mxu0 %v4089_v50 }
 0x6db   :  { %v8723_v62 = vadd.f32 %v8673_v13, %v3809_v52  ;;  %v3808_v12 = vadd.f32 %v6081_v40, %v3753_v20  ;;  %v3850_v39 = vsel %vm69_vm0, %v8720_v18, 0.0  ;;  %5804 = vmatpush3.msra.mxu0 %v4089_v50 }
 0x6dc   :  { %3845 = vadd.xlane.f32.xlu0 %v3844_v6  ;;  %v5793_v25 = vpop.f32.mrf.mxu0 }
 0x6dd   :  { %v3811_v46 = vadd.f32 %v6082_v58, %v5793_v25  ;;  %v3859_v19 = vsel %vm69_vm0, %v8723_v62, 0.0  ;;  %v8736_v61 = vadd.f32 %v8673_v13, %v3808_v12 }
 0x6de   :  { %3860 = vadd.xlane.f32.xlu1 %v3859_v19  ;;  %v3763_v55 = vpop.f32.mrf.mxu0 }
 0x6df   :  { %v8739_v23 = vadd.f32 %v8673_v13, %v3811_v46  ;;  %v3810_v24 = vadd.f32 %v6083_v44, %v3763_v55  ;;  %v3856_v36 = vsel %vm69_vm0, %v8736_v61, 0.0 }
 0x6e0   :  { %3851 = vadd.xlane.f32.xlu0 %v3850_v39 }
 0x6e1   :  { %v5796_v28 = vpop.f32.mrf.mxu0  ;;  %v3865_v26 = vsel %vm69_vm0, %v8739_v23, 0.0  ;;  %v8752_v53 = vadd.f32 %v8673_v13, %v3810_v24 }
 0x6e2   :  { %v3813_v30 = vadd.f32 %v6084_v8, %v5796_v28  ;;  %3866 = vadd.xlane.f32.xlu1 %v3865_v26 }
 0x6e3   :  { %v3773_v31 = vpop.f32.mrf.mxu0  ;;  %v3862_v48 = vsel %vm69_vm0, %v8752_v53, 0.0 }
 0x6e4   :  { %v8757_v32 = vadd.f32 %v8673_v13, %v3813_v30  ;;  %v3812_v63 = vadd.f32 %v6085_v59, %v3773_v31  ;;  %3857 = vadd.xlane.f32.xlu0 %v3856_v36 }
 0x6e5   :  { %v5799_v29 = vpop.f32.mrf.mxu0 }
 0x6e6   :  { %v3815_v47 = vadd.f32 %v6086_v56, %v5799_v29  ;;  %v3871_v37 = vsel %vm69_vm0, %v8757_v32, 0.0  ;;  %v8768_v35 = vadd.f32 %v8673_v13, %v3812_v63 }
 0x6e7   :  { %3872 = vadd.xlane.f32.xlu1 %v3871_v37  ;;  %v3783_v5 = vpop.f32.mrf.mxu0 }
 0x6e8   :  { %v8773_v38 = vadd.f32 %v8673_v13, %v3815_v47  ;;  %v3814_v9 = vadd.f32 %v6087_v51, %v3783_v5  ;;  %3863 = vadd.xlane.f32.xlu0 %v3862_v48  ;;  %v3868_v14 = vsel %vm69_vm0, %v8768_v35, 0.0 }
 0x6e9   :  { %v5802_v1 = vpop.f32.mrf.mxu0 }
 0x6ea   :  { %v3877_v34 = vsel %vm69_vm0, %v8773_v38, 0.0  ;;  %v3817_v60 = vadd.f32 %v6088_v21, %v5802_v1  ;;  %v8784_v42 = vadd.f32 %v8673_v13, %v3814_v9 }
 0x6eb   :  { %3878 = vadd.xlane.f32.xlu1 %v3877_v34  ;;  %v3793_v33 = vpop.f32.mrf.mxu0 }
 0x6ec   :  { %v8789_v41 = vadd.f32 %v8673_v13, %v3817_v60  ;;  %3869 = vadd.xlane.f32.xlu0 %v3868_v14  ;;  %v3816_v45 = vadd.f32 %v6089_v27, %v3793_v33  ;;  %v3874_v7 = vsel %vm69_vm0, %v8784_v42, 0.0 }
 0x6ee   :  { %9393 = vst [vmem:[#allocation23_spill] sm:$0xff] %v8789_v41  ;;  %v8795_v49 = vadd.f32 %v8673_v13, %v3816_v45  ;;  %v3883_v4 = vsel %vm69_vm0, %v8789_v41, 0.0 }
 0x6ef   :  { %3884 = vadd.xlane.f32.xlu1 %v3883_v4 }
 0x6f0   :  { %9394 = vst [vmem:[#allocation27_spill] sm:$0xff] %v8795_v49  ;;  %3875 = vadd.xlane.f32.xlu0 %v3874_v7  ;;  %v3880_v0 = vsel %vm69_vm0, %v8795_v49, 0.0 }
 0x6f4   :  { %3881 = vadd.xlane.f32.xlu0 %v3880_v0 }
 0x75b   :  { %v3843_v13 = vpop.xlane.xlu1 %3842 }
 0x75c   :  { %v3887_v54 = vmul.f32 0.03125, %v3843_v13 }
 0x75d   :  { %v3840_v11 = vpop.xlane.xlu0 %3839 }
 0x75e   :  { %v8807_v10 = vsub.f32 %v8679_v43, %v3887_v54  ;;  %v3886_v52 = vmul.f32 0.03125, %v3840_v11 }
 0x760   :  { %v8810_v2 = vsub.f32 %v8685_v15, %v3886_v52  ;;  %v3919_v20 = vmul.f32 %v8807_v10, %v8807_v10 }
 0x761   :  { %v3849_v40 = vpop.xlane.xlu0 %3848 }
 0x762   :  { %v3889_v12 = vmul.f32 0.03125, %v3849_v40  ;;  %v3937_v6 = vsel %vm69_vm0, %v3919_v20, 0.0  ;;  %v3918_v25 = vmul.f32 %v8810_v2, %v8810_v2 }
 0x763   :  { %v3855_v58 = vpop.xlane.xlu1 %3854  ;;  %3938 = vadd.xlane.f32.xlu1 %v3937_v6 }
 0x764   :  { %v8818_v46 = vsub.f32 %v8693_v57, %v3889_v12  ;;  %v3891_v19 = vmul.f32 0.03125, %v3855_v58  ;;  %v3934_v55 = vsel %vm69_vm0, %v3918_v25, 0.0 }
 0x765   :  { %v3846_v44 = vpop.xlane.xlu0 %3845  ;;  %3935 = vadd.xlane.f32.xlu0 %v3934_v55 }
 0x766   :  { %v8822_v24 = vsub.f32 %v8707_v22, %v3891_v19  ;;  %v3888_v39 = vmul.f32 0.03125, %v3846_v44  ;;  %v3921_v28 = vmul.f32 %v8818_v46, %v8818_v46 }
 0x767   :  { %v3861_v26 = vpop.xlane.xlu1 %3860 }
 0x768   :  { %v8827_v8 = vsub.f32 %v8704_v3, %v3888_v39  ;;  %v3893_v30 = vmul.f32 0.03125, %v3861_v26  ;;  %v3943_v31 = vsel %vm69_vm0, %v3921_v28, 0.0  ;;  %v3923_v36 = vmul.f32 %v8822_v24, %v8822_v24 }
 0x769   :  { %v3852_v59 = vpop.xlane.xlu0 %3851  ;;  %3944 = vadd.xlane.f32.xlu1 %v3943_v31 }
 0x76a   :  { %v8833_v63 = vsub.f32 %v8723_v62, %v3893_v30  ;;  %v3890_v29 = vmul.f32 0.03125, %v3852_v59  ;;  %v3920_v56 = vmul.f32 %v8827_v8, %v8827_v8  ;;  %v3949_v37 = vsel %vm69_vm0, %v3923_v36, 0.0 }
 0x76b   :  { %v3867_v47 = vpop.xlane.xlu1 %3866 }
 0x76c   :  { %v8839_v5 = vsub.f32 %v8720_v18, %v3890_v29  ;;  %v3895_v48 = vmul.f32 0.03125, %v3867_v47  ;;  %v3940_v51 = vsel %vm69_vm0, %v3920_v56, 0.0  ;;  %v3925_v9 = vmul.f32 %v8833_v63, %v8833_v63 }
 0x76d   :  { %v3858_v1 = vpop.xlane.xlu0 %3857  ;;  %3950 = vadd.xlane.f32.xlu1 %v3949_v37  ;;  %3941 = vadd.xlane.f32.xlu0 %v3940_v51 }
 0x76e   :  { %v8845_v34 = vsub.f32 %v8739_v23, %v3895_v48  ;;  %v3892_v21 = vmul.f32 0.03125, %v3858_v1  ;;  %v3922_v60 = vmul.f32 %v8839_v5, %v8839_v5  ;;  %v3955_v27 = vsel %vm69_vm0, %v3925_v9, 0.0 }
 0x770   :  { %v8850_v14 = vsub.f32 %v8736_v61, %v3892_v21  ;;  %v3873_v33 = vpop.xlane.xlu1 %3872  ;;  %v3946_v45 = vsel %vm69_vm0, %v3922_v60, 0.0  ;;  %v3927_v4 = vmul.f32 %v8845_v34, %v8845_v34 }
 0x771   :  { %v3897_v7 = vmul.f32 0.03125, %v3873_v33  ;;  %v3864_v0 = vpop.xlane.xlu0 %3863  ;;  %3956 = vadd.xlane.f32.xlu1 %v3955_v27  ;;  %3947 = vadd.xlane.f32.xlu0 %v3946_v45  ;;  %v4088_v45 = vld [vmem:[%s9164_s3 + $0x10] sm:$0xff] }
 0x772   :  { %v3894_v50 = vmul.f32 0.03125, %v3864_v0  ;;  %v3924_v13 = vmul.f32 %v8850_v14, %v8850_v14  ;;  %v3961_v20 = vsel %vm69_vm0, %v3927_v4, 0.0  ;;  %v4087_v4 = vld [vmem:[%s9164_s3 + $0x8] sm:$0xff]  ;;  %5805 = vmatprep.subr.mxu0 %v4088_v45 }
 0x773   :  { %v8859_v54 = vsub.f32 %v8757_v32, %v3897_v7  ;;  %5806 = vmatpush3.msra.mxu0 %v4088_v45 }
 0x774   :  { %v8862_v11 = vsub.f32 %v8752_v53, %v3894_v50  ;;  %v3879_v52 = vpop.xlane.xlu1 %3878  ;;  %v3952_v40 = vsel %vm69_vm0, %v3924_v13, 0.0  ;;  %5807 = vmatprep.subr.mxu0 %v4087_v4  ;;  %v4086_v50 = vld [vmem:[%s9164_s3] sm:$0xff]  ;;  %v8914_v13 = vld [vmem:[%s9165_s4 + $0x78] sm:$0xff] }
 0x775   :  { %v3899_v12 = vmul.f32 0.03125, %v3879_v52  ;;  %v3870_v6 = vpop.xlane.xlu0 %3869  ;;  %3962 = vadd.xlane.f32.xlu1 %v3961_v20  ;;  %3953 = vadd.xlane.f32.xlu0 %v3952_v40  ;;  %v3929_v25 = vmul.f32 %v8859_v54, %v8859_v54  ;;  %v8921_v52 = vld [vmem:[%s9165_s4 + $0x70] sm:$0xff]  ;;  %v8928_v20 = vld [vmem:[%s9165_s4 + $0x68] sm:$0xff]  ;;  %v8935_v40 = vld [vmem:[%s9165_s4 + $0x60] sm:$0xff] }
 0x776   :  { %v3896_v58 = vmul.f32 0.03125, %v3870_v6  ;;  %v3926_v19 = vmul.f32 %v8862_v11, %v8862_v11  ;;  %5808 = vmatpush3.msra.mxu0 %v4087_v4  ;;  %5891 = vmatprep.subr.mxu1 %v8914_v13  ;;  %v8949_v6 = vld [vmem:[%s9165_s4 + $0x50] sm:$0xff] }
 0x777   :  { %v8871_v55 = vsub.f32 %v8773_v38, %v3899_v12  ;;  %v3967_v39 = vsel %vm69_vm0, %v3929_v25, 0.0  ;;  %5809 = vmatprep.subr.mxu0 %v4086_v50  ;;  %5907 = vmatpush3.msra.mxu1 %v8914_v13  ;;  %v8942_v12 = vld [vmem:[%s9165_s4 + $0x58] sm:$0xff]  ;;  %v8956_v25 = vld [vmem:[%s9165_s4 + $0x48] sm:$0xff] }
 0x778   :  { %v8874_v44 = vsub.f32 %v8768_v35, %v3896_v58  ;;  %v3958_v28 = vsel %vm69_vm0, %v3926_v19, 0.0  ;;  %v3885_v26 = vpop.xlane.xlu1 %3884  ;;  %5810 = vmatpush3.msra.mxu0 %v4086_v50  ;;  %5892 = vmatprep.subr.mxu1 %v8921_v52  ;;  %v8963_v58 = vld [vmem:[%s9165_s4 + $0x40] sm:$0xff]  ;;  %v8970_v19 = vld [vmem:[%s9165_s4 + $0x38] sm:$0xff] }
 0x779   :  { %v3876_v30 = vpop.xlane.xlu0 %3875  ;;  %3968 = vadd.xlane.f32.xlu1 %v3967_v39  ;;  %3959 = vadd.xlane.f32.xlu0 %v3958_v28  ;;  %v3901_v31 = vmul.f32 0.03125, %v3885_v26  ;;  %v3931_v36 = vmul.f32 %v8871_v55, %v8871_v55  ;;  %v8977_v39 = vld [vmem:[%s9165_s4 + $0x30] sm:$0xff]  ;;  %v8984_v28 = vld [vmem:[%s9165_s4 + $0x28] sm:$0xff]  ;;  %v8991_v26 = vld [vmem:[%s9165_s4 + $0x20] sm:$0xff] }
 0x77a   :  { %v3898_v59 = vmul.f32 0.03125, %v3876_v30  ;;  %v3928_v29 = vmul.f32 %v8874_v44, %v8874_v44  ;;  %5835 = vmatprep.subr.mxu0 %v8914_v13  ;;  %5908 = vmatpush3.msra.mxu1 %v8921_v52 }
 0x77b   :  { %v8883_v56 = vsub.f32 %v8789_v41, %v3901_v31  ;;  %v3973_v37 = vsel %vm69_vm0, %v3931_v36, 0.0  ;;  %5893 = vmatprep.subr.mxu1 %v8928_v20 }
 0x77c   :  { %v8886_v47 = vsub.f32 %v8784_v42, %v3898_v59  ;;  %v3964_v48 = vsel %vm69_vm0, %v3928_v29, 0.0  ;;  %5909 = vmatpush3.msra.mxu1 %v8928_v20 }
 0x77d   :  { %3974 = vadd.xlane.f32.xlu1 %v3973_v37  ;;  %3965 = vadd.xlane.f32.xlu0 %v3964_v48  ;;  %v3882_v51 = vpop.xlane.xlu0 %3881  ;;  %v3933_v9 = vmul.f32 %v8883_v56, %v8883_v56 }
 0x77e   :  { %v3900_v1 = vmul.f32 0.03125, %v3882_v51  ;;  %v3930_v21 = vmul.f32 %v8886_v47, %v8886_v47  ;;  %5894 = vmatprep.subr.mxu1 %v8935_v40 }
 0x77f   :  { %v3979_v60 = vsel %vm69_vm0, %v3933_v9, 0.0  ;;  %5910 = vmatpush3.msra.mxu1 %v8935_v40 }
 0x780   :  { %v8896_v33 = vsub.f32 %v8795_v49, %v3900_v1  ;;  %v3970_v27 = vsel %vm69_vm0, %v3930_v21, 0.0  ;;  %5895 = vmatprep.subr.mxu1 %v8942_v12 }
 0x781   :  { %3971 = vadd.xlane.f32.xlu0 %v3970_v27  ;;  %3980 = vadd.xlane.f32.xlu1 %v3979_v60 }
 0x782   :  { %v3932_v7 = vmul.f32 %v8896_v33, %v8896_v33  ;;  %5911 = vmatpush3.msra.mxu1 %v8942_v12 }
 0x783   :  { %5896 = vmatprep.subr.mxu1 %v8949_v6 }
 0x784   :  { %v3976_v0 = vsel %vm69_vm0, %v3932_v7, 0.0  ;;  %5912 = vmatpush3.msra.mxu1 %v8949_v6  ;;  %v4048_v7 = vsub.s32 3, %v9392_v17 }
 0x785   :  { %3977 = vadd.xlane.f32.xlu0 %v3976_v0  ;;  %5897 = vmatprep.subr.mxu1 %v8956_v25 }
 0x786   :  { %5913 = vmatpush3.msra.mxu1 %v8956_v25 }
 0x787   :  { %5898 = vmatprep.subr.mxu1 %v8963_v58 }
 0x788   :  { %5914 = vmatpush3.msra.mxu1 %v8963_v58 }
 0x789   :  { %5899 = vmatprep.subr.mxu1 %v8970_v19 }
 0x78a   :  { %5915 = vmatpush3.msra.mxu1 %v8970_v19 }
 0x78b   :  { %5900 = vmatprep.subr.mxu1 %v8977_v39 }
 0x78c   :  { %5916 = vmatpush3.msra.mxu1 %v8977_v39 }
 0x78d   :  { %5901 = vmatprep.subr.mxu1 %v8984_v28 }
 0x78e   :  { %5917 = vmatpush3.msra.mxu1 %v8984_v28 }
 0x78f   :  { %5902 = vmatprep.subr.mxu1 %v8991_v26 }
 0x790   :  { %5918 = vmatpush3.msra.mxu1 %v8991_v26 }
 0x7ec   :  { %v3939_v30 = vpop.xlane.xlu1 %3938 }
 0x7ed   :  { %v3983_v31 = vmul.f32 0.03125, %v3939_v30 }
 0x7ee   :  { %v3936_v36 = vpop.xlane.xlu0 %3935 }
 0x7ef   :  { %v3999_v59 = vadd.f32 1e-05, %v3983_v31  ;;  %v3982_v29 = vmul.f32 0.03125, %v3936_v36 }
 0x7f1   :  { %6025 = vrsqrt.f32 %v3999_v59  ;;  %v3998_v37 = vadd.f32 1e-05, %v3982_v29 }
 0x7f2   :  { %v3945_v48 = vpop.xlane.xlu1 %3944 }
 0x7f3   :  { %6027 = vrsqrt.f32 %v3998_v37  ;;  %v3985_v51 = vmul.f32 0.03125, %v3945_v48  ;;  %v8998_v37 = vrot.slane %v8670_v16, %v4048_v7 }
 0x7f5   :  { %v4001_v9 = vadd.f32 1e-05, %v3985_v51 }
 0x7f6   :  { %v3951_v1 = vpop.xlane.xlu1 %3950  ;;  %v3942_v21 = vpop.xlane.xlu0 %3941 }
 0x7f7   :  { %6029 = vrsqrt.f32 %v4001_v9  ;;  %v3987_v60 = vmul.f32 0.03125, %v3951_v1  ;;  %v3984_v27 = vmul.f32 0.03125, %v3942_v21  ;;  %v4068_v9 = vsub.s32 4, %v9392_v17 }
 0x7f9   :  { %v4003_v45 = vadd.f32 1e-05, %v3987_v60  ;;  %v4000_v4 = vadd.f32 1e-05, %v3984_v27 }
 0x7fa   :  { %v3957_v0 = vpop.xlane.xlu1 %3956  ;;  %v3948_v50 = vpop.xlane.xlu0 %3947 }
 0x7fb   :  { %6031 = vrsqrt.f32 %v4003_v45  ;;  %v3989_v30 = vmul.f32 0.03125, %v3957_v0  ;;  %v3986_v31 = vmul.f32 0.03125, %v3948_v50 }
 0x7fc   :  { %6033 = vrsqrt.f32 %v4000_v4 }
 0x7fd   :  { %v4005_v36 = vadd.f32 1e-05, %v3989_v30  ;;  %v4002_v59 = vadd.f32 1e-05, %v3986_v31  ;;  %v9005_v31 = vrot.slane %v8670_v16, %v4068_v9 }
 0x7fe   :  { %v6026_v29 = vpop.eup %6025  ;;  %v3963_v48 = vpop.xlane.xlu1 %3962 }
 0x7ff   :  { %v3954_v51 = vpop.xlane.xlu0 %3953  ;;  %v4031_v1 = vmul.f32 %v6026_v29, %v8807_v10  ;;  %6035 = vrsqrt.f32 %v4005_v36  ;;  %v3991_v21 = vmul.f32 0.03125, %v3963_v48 }
 0x800   :  { %v3988_v60 = vmul.f32 0.03125, %v3954_v51  ;;  %v6028_v27 = vpop.eup %6027  ;;  %6037 = vrsqrt.f32 %v4002_v59 }
 0x801   :  { %v4007_v45 = vadd.f32 1e-05, %v3991_v21  ;;  %v4030_v4 = vmul.f32 %v6028_v27, %v8810_v2  ;;  %v4051_v50 = vmul.f32 %v8998_v37, %v4031_v1 }
 0x802   :  { %v4004_v0 = vadd.f32 1e-05, %v3988_v60  ;;  %v3969_v30 = vpop.xlane.xlu1 %3968 }
 0x803   :  { %v3960_v7 = vpop.xlane.xlu0 %3959  ;;  %6039 = vrsqrt.f32 %v4007_v45  ;;  %v3993_v49 = vmul.f32 0.03125, %v3969_v30  ;;  %v4050_v10 = vmul.f32 %v8998_v37, %v4030_v4  ;;  %v4071_v1 = vadd.f32 %v9005_v31, %v4051_v50 }
 0x804   :  { %v3990_v41 = vmul.f32 0.03125, %v3960_v7  ;;  %v6030_v36 = vpop.eup %6029  ;;  %6041 = vrsqrt.f32 %v4004_v0 }
 0x805   :  { %v4009_v29 = vadd.f32 1e-05, %v3993_v49  ;;  %v4070_v48 = vadd.f32 %v9005_v31, %v4050_v10  ;;  %v4033_v21 = vmul.f32 %v6030_v36, %v8818_v46 }
 0x806   :  { %v4006_v59 = vadd.f32 1e-05, %v3990_v41  ;;  %v3975_v51 = vpop.xlane.xlu1 %3974 }
 0x807   :  { %v3966_v2 = vpop.xlane.xlu0 %3965  ;;  %6043 = vrsqrt.f32 %v4009_v29  ;;  %v3995_v9 = vmul.f32 0.03125, %v3975_v51  ;;  %5811 = vmatprep.mubr.msk.f32.mxu0 %vm69_vm0, %v4070_v48  ;;  %v4053_v46 = vmul.f32 %v8998_v37, %v4033_v21 }
 0x808   :  { %v3992_v60 = vmul.f32 0.03125, %v3966_v2  ;;  %v6032_v27 = vpop.eup %6031  ;;  %6045 = vrsqrt.f32 %v4006_v59  ;;  %5812 = vmatmul.mubr.msk.f32.vlgmr.msra.gmra.mxu0 %vm69_vm0, %v4071_v1 }
 0x809   :  { %v6034_v45 = vpop.eup %6033  ;;  %v4011_v49 = vadd.f32 1e-05, %v3995_v9  ;;  %5836 = vmatpush3.msra.mxu0 %v8914_v13  ;;  %v4035_v10 = vmul.f32 %v6032_v27, %v8822_v24  ;;  %v4073_v2 = vadd.f32 %v9005_v31, %v4053_v46 }
 0x80a   :  { %v4008_v41 = vadd.f32 1e-05, %v3992_v60  ;;  %v3981_v4 = vpop.xlane.xlu1 %3980  ;;  %v4032_v50 = vmul.f32 %v6034_v45, %v8827_v8  ;;  %5837 = vmatprep.subr.mxu0 %v8921_v52 }
 0x80b   :  { %v3972_v0 = vpop.xlane.xlu0 %3971  ;;  %6047 = vrsqrt.f32 %v4011_v49  ;;  %v3997_v7 = vmul.f32 0.03125, %v3981_v4  ;;  %5838 = vmatpush3.msra.mxu0 %v8921_v52  ;;  %v4055_v1 = vmul.f32 %v8998_v37, %v4035_v10 }
 0x80c   :  { %v3994_v30 = vmul.f32 0.03125, %v3972_v0  ;;  %v6036_v36 = vpop.eup %6035  ;;  %6049 = vrsqrt.f32 %v4008_v41  ;;  %v4052_v29 = vmul.f32 %v8998_v37, %v4032_v50  ;;  %5839 = vmatprep.subr.mxu0 %v8928_v20 }
 0x80d   :  { %v6038_v13 = vpop.eup %6037  ;;  %v4013_v8 = vadd.f32 1e-05, %v3997_v7  ;;  %5840 = vmatpush3.msra.mxu0 %v8928_v20  ;;  %v4037_v21 = vmul.f32 %v6036_v36, %v8833_v63  ;;  %v4075_v63 = vadd.f32 %v9005_v31, %v4055_v1  ;;  %v4694_v1 = vld [vmem:[%s9167_s6] ss:$0 sm:$0xff] }
 0x80e   :  { %v4010_v59 = vadd.f32 1e-05, %v3994_v30  ;;  %v4072_v51 = vadd.f32 %v9005_v31, %v4052_v29  ;;  %v4034_v24 = vmul.f32 %v6038_v13, %v8839_v5  ;;  %5841 = vmatprep.subr.mxu0 %v8935_v40 }
 0x80f   :  { %v3978_v48 = vpop.xlane.xlu0 %3977  ;;  %5842 = vmatpush3.msra.mxu0 %v8935_v40  ;;  %v4057_v40 = vmul.f32 %v8998_v37, %v4037_v21 }
 0x810   :  { %6051 = vrsqrt.f32 %v4010_v59  ;;  %v3996_v52 = vmul.f32 0.03125, %v3978_v48  ;;  %v6040_v9 = vpop.eup %6039  ;;  %5814 = vmatprep.mubr.msk.f32.mxu0 %vm69_vm0, %v4072_v51  ;;  %v4054_v20 = vmul.f32 %v8998_v37, %v4034_v24  ;;  %5843 = vmatprep.subr.mxu0 %v8942_v12 }
 0x811   :  { %6053 = vrsqrt.f32 %v4013_v8  ;;  %v6042_v60 = vpop.eup %6041  ;;  %5815 = vmatmul.mubr.msk.f32.gmra.mxu0 %vm69_vm0, %v4073_v2  ;;  %v4039_v49 = vmul.f32 %v6040_v9, %v8845_v34  ;;  %v4077_v34 = vadd.f32 %v9005_v31, %v4057_v40 }
 0x812   :  { %v4012_v5 = vadd.f32 1e-05, %v3996_v52  ;;  %v4074_v27 = vadd.f32 %v9005_v31, %v4054_v20  ;;  %v4036_v45 = vmul.f32 %v6042_v60, %v8850_v14  ;;  %5844 = vmatpush3.msra.mxu0 %v8942_v12  ;;  %v4306_v52 = vld [vmem:[%s9165_s4 + $0x8] sm:$0xff] }
 0x813   :  { %5845 = vmatprep.subr.mxu0 %v8949_v6  ;;  %v4059_v50 = vmul.f32 %v8998_v37, %v4039_v49 }
 0x814   :  { %6055 = vrsqrt.f32 %v4012_v5  ;;  %v6044_v41 = vpop.eup %6043  ;;  %5817 = vmatprep.mubr.msk.f32.mxu0 %vm69_vm0, %v4074_v27  ;;  %v4056_v0 = vmul.f32 %v8998_v37, %v4036_v45  ;;  %5846 = vmatpush3.msra.mxu0 %v8949_v6 }
 0x815   :  { %v6046_v4 = vpop.eup %6045  ;;  %5818 = vmatmul.mubr.msk.f32.gmra.mxu0 %vm69_vm0, %v4075_v63  ;;  %5847 = vmatprep.subr.mxu0 %v8956_v25  ;;  %v4041_v46 = vmul.f32 %v6044_v41, %v8859_v54  ;;  %v4079_v54 = vadd.f32 %v9005_v31, %v4059_v50 }
 0x816   :  { %v4076_v14 = vadd.f32 %v9005_v31, %v4056_v0  ;;  %v4038_v12 = vmul.f32 %v6046_v4, %v8862_v11  ;;  %5848 = vmatpush3.msra.mxu0 %v8956_v25 }
 0x817   :  { %5849 = vmatprep.subr.mxu0 %v8963_v58  ;;  %v4061_v10 = vmul.f32 %v8998_v37, %v4041_v46 }
 0x818   :  { %v6048_v6 = vpop.eup %6047  ;;  %5820 = vmatprep.mubr.msk.f32.mxu0 %vm69_vm0, %v4076_v14  ;;  %v4058_v30 = vmul.f32 %v8998_v37, %v4038_v12  ;;  %5850 = vmatpush3.msra.mxu0 %v8963_v58 }
 0x819   :  { %v6050_v7 = vpop.eup %6049  ;;  %5821 = vmatmul.mubr.msk.f32.gmra.mxu0 %vm69_vm0, %v4077_v34  ;;  %5851 = vmatprep.subr.mxu0 %v8970_v19  ;;  %v4043_v36 = vmul.f32 %v6048_v6, %v8871_v55  ;;  %v4081_v55 = vadd.f32 %v9005_v31, %v4061_v10 }
 0x81a   :  { %v4078_v11 = vadd.f32 %v9005_v31, %v4058_v30  ;;  %v4040_v25 = vmul.f32 %v6050_v7, %v8874_v44  ;;  %5852 = vmatpush3.msra.mxu0 %v8970_v19 }
 0x81b   :  { %5853 = vmatprep.subr.mxu0 %v8977_v39  ;;  %v4063_v8 = vmul.f32 %v8998_v37, %v4043_v36 }
 0x81c   :  { %5823 = vmatprep.mubr.msk.f32.mxu0 %vm69_vm0, %v4078_v11  ;;  %v4060_v29 = vmul.f32 %v8998_v37, %v4040_v25  ;;  %5854 = vmatpush3.msra.mxu0 %v8977_v39 }
 0x81d   :  { %v6052_v58 = vpop.eup %6051  ;;  %5824 = vmatmul.mubr.msk.f32.gmra.mxu0 %vm69_vm0, %v4079_v54  ;;  %5855 = vmatprep.subr.mxu0 %v8984_v28  ;;  %v4083_v51 = vadd.f32 %v9005_v31, %v4063_v8 }
 0x81e   :  { %v6054_v13 = vpop.eup %6053  ;;  %v4042_v44 = vmul.f32 %v6052_v58, %v8886_v47  ;;  %v4080_v19 = vadd.f32 %v9005_v31, %v4060_v29  ;;  %5856 = vmatpush3.msra.mxu0 %v8984_v28 }
 0x81f   :  { %v4045_v48 = vmul.f32 %v6054_v13, %v8883_v56  ;;  %5857 = vmatprep.subr.mxu0 %v8991_v26 }
 0x820   :  { %v4062_v59 = vmul.f32 %v8998_v37, %v4042_v44  ;;  %5826 = vmatprep.mubr.msk.f32.mxu0 %vm69_vm0, %v4080_v19  ;;  %5858 = vmatpush3.msra.mxu0 %v8991_v26 }
 0x821   :  { %v6056_v39 = vpop.eup %6055  ;;  %5827 = vmatmul.mubr.msk.f32.gmra.mxu0 %vm69_vm0, %v4081_v55  ;;  %v4065_v56 = vmul.f32 %v8998_v37, %v4045_v48 }
 0x822   :  { %v4082_v47 = vadd.f32 %v9005_v31, %v4062_v59  ;;  %v4044_v28 = vmul.f32 %v6056_v39, %v8896_v33  ;;  %v4308_v33 = vld [vmem:[%s9165_s4 + $0x18] sm:$0xff] }
 0x823   :  { %v4085_v26 = vadd.f32 %v9005_v31, %v4065_v56  ;;  %5859 = vmatprep.subr.mxu0 %v4308_v33  ;;  %5903 = vmatprep.subr.mxu1 %v4308_v33 }
 0x824   :  { %5829 = vmatprep.mubr.msk.f32.mxu0 %vm69_vm0, %v4082_v47  ;;  %v4064_v2 = vmul.f32 %v8998_v37, %v4044_v28  ;;  %5860 = vmatpush3.msra.mxu0 %v4308_v33  ;;  %v4307_v37 = vld [vmem:[%s9165_s4 + $0x10] sm:$0xff] }
 0x825   :  { %5830 = vmatmul.mubr.msk.f32.gmra.mxu0 %vm69_vm0, %v4083_v51  ;;  %5919 = vmatpush3.msra.mxu1 %v4308_v33 }
 0x826   :  { %v4084_v24 = vadd.f32 %v9005_v31, %v4064_v2  ;;  %5861 = vmatprep.subr.mxu0 %v4307_v37  ;;  %5904 = vmatprep.subr.mxu1 %v4307_v37  ;;  %v4305_v31 = vld [vmem:[%s9165_s4] sm:$0xff]  ;;  %s6115_s4 = smov [#allocation2]  }
 0x827   :  { %5862 = vmatpush3.msra.mxu0 %v4307_v37  ;;  %5920 = vmatpush3.msra.mxu1 %v4307_v37  ;;  %s4507_s6 = sshll.u32 %s6115_s4, 4  ;;  %s4508_s6 = int_to_ptr.vmem [resolvable:$true] %s4507_s6 }
 0x828   :  { %5832 = vmatprep.mubr.msk.f32.mxu0 %vm69_vm0, %v4084_v24  ;;  %5863 = vmatprep.subr.mxu0 %v4306_v52  ;;  %s6090_s14 = scalar_lea.vmem %s4508_s6, 2048  ;;  %p6095_p1 = scmp.lt.s32.totalorder %s4508_s6, %s4508_s6 }
 0x829   :  { %5833 = vmatmul.mubr.msk.f32.gmra.mxu0 %vm69_vm0, %v4085_v26  ;;  %5905 = vmatprep.subr.mxu1 %v4306_v52  ;;  %p6091_p0 = scmp.ne.s32.totalorder %s4508_s6, %s6090_s14  ;;  %p6096_p2 = scmp.lt.s32.totalorder %s6090_s14, %s6090_s14 }
 0x82a   :  { %5864 = vmatpush3.msra.mxu0 %v4306_v52  ;;  %5921 = vmatpush3.msra.mxu1 %v4306_v52 }
 0x82b   :  { %5865 = vmatprep.subr.mxu0 %v4305_v31  ;;  %5906 = vmatprep.subr.mxu1 %v4305_v31  ;;  %p6097_p3 = por %p6096_p2, %p6095_p1 }
 0x82c   :  { %5866 = vmatpush3.msra.mxu0 %v4305_v31  ;;  %5922 = vmatpush3.msra.mxu1 %v4305_v31 }
 0x82d   :  { %p6098_p4 = pnand %p6097_p3, %p6091_p0 }
 0x8c8   :  { %v5813_v21 = vpop.f32.mrf.mxu0 }
 0x8c9   :  { %v4216_v9 = vadd.f32 %v5813_v21, %v4694_v1 }
 0x8ca   :  { %v4210_v20 = vpop.f32.mrf.mxu0 }
 0x8cb   :  { %v4211_v60 = vadd.f32 %v4694_v1, %v4210_v20  ;;  %v4290_v27 = vmax.f32 %v4216_v9, 0.0  ;;  %v4323_v9 = vsub.s32 5, %v9392_v17 }
 0x8cd   :  { %v4289_v5 = vmax.f32 %v4211_v60, 0.0  ;;  %v9108_v20 = vrot.slane %v8670_v16, %v4323_v9 }
 0x8cf   :  { %5867 = vmatprep.mubr.f32.mxu0 %v4289_v5 }
 0x8d0   :  { %5868 = vmatmul.mubr.f32.vlgmr.msra.gmra.mxu0 %v4290_v27 }
 0x8d1   :  { %v5816_v45 = vpop.f32.mrf.mxu0 }
 0x8d2   :  { %v4226_v63 = vadd.f32 %v5816_v45, %v4694_v1 }
 0x8d3   :  { %v4220_v40 = vpop.f32.mrf.mxu0 }
 0x8d4   :  { %v4221_v49 = vadd.f32 %v4694_v1, %v4220_v40  ;;  %v4292_v4 = vmax.f32 %v4226_v63, 0.0 }
 0x8d5   :  { %v5819_v41 = vpop.f32.mrf.mxu0 }
 0x8d6   :  { %v4291_v0 = vmax.f32 %v4221_v49, 0.0  ;;  %v4236_v14 = vadd.f32 %v5819_v41, %v4694_v1 }
 0x8d7   :  { %v4230_v12 = vpop.f32.mrf.mxu0 }
 0x8d8   :  { %v4231_v34 = vadd.f32 %v4694_v1, %v4230_v12  ;;  %5870 = vmatprep.mubr.f32.mxu0 %v4291_v0  ;;  %v4294_v6 = vmax.f32 %v4236_v14, 0.0 }
 0x8d9   :  { %v5822_v50 = vpop.f32.mrf.mxu0  ;;  %5871 = vmatmul.mubr.f32.gmra.mxu0 %v4292_v4 }
 0x8da   :  { %v4293_v46 = vmax.f32 %v4231_v34, 0.0  ;;  %v4246_v30 = vadd.f32 %v5822_v50, %v4694_v1 }
 0x8db   :  { %v4240_v7 = vpop.f32.mrf.mxu0 }
 0x8dc   :  { %v4241_v11 = vadd.f32 %v4694_v1, %v4240_v7  ;;  %5873 = vmatprep.mubr.f32.mxu1 %v4293_v46  ;;  %v4296_v10 = vmax.f32 %v4246_v30, 0.0 }
 0x8dd   :  { %v5825_v25 = vpop.f32.mrf.mxu0  ;;  %5874 = vmatmul.mubr.f32.vlgmr.msra.gmra.mxu1 %v4294_v6 }
 0x8de   :  { %v4295_v54 = vmax.f32 %v4241_v11, 0.0  ;;  %v4256_v36 = vadd.f32 %v5825_v25, %v4694_v1 }
 0x8df   :  { %v4250_v58 = vpop.f32.mrf.mxu0 }
 0x8e0   :  { %v4251_v29 = vadd.f32 %v4694_v1, %v4250_v58  ;;  %5876 = vmatprep.mubr.f32.mxu1 %v4295_v54  ;;  %v4298_v19 = vmax.f32 %v4256_v36, 0.0 }
 0x8e1   :  { %v5828_v13 = vpop.f32.mrf.mxu0  ;;  %5877 = vmatmul.mubr.f32.gmra.mxu1 %v4296_v10 }
 0x8e2   :  { %v4297_v44 = vmax.f32 %v4251_v29, 0.0  ;;  %v4266_v55 = vadd.f32 %v5828_v13, %v4694_v1 }
 0x8e3   :  { %v4260_v59 = vpop.f32.mrf.mxu0 }
 0x8e4   :  { %v4261_v8 = vadd.f32 %v4694_v1, %v4260_v59  ;;  %5879 = vmatprep.mubr.f32.mxu1 %v4297_v44  ;;  %v4300_v47 = vmax.f32 %v4266_v55, 0.0 }
 0x8e5   :  { %v5831_v48 = vpop.f32.mrf.mxu0  ;;  %5880 = vmatmul.mubr.f32.gmra.mxu1 %v4298_v19 }
 0x8e6   :  { %v4299_v39 = vmax.f32 %v4261_v8, 0.0  ;;  %v4276_v28 = vadd.f32 %v5831_v48, %v4694_v1 }
 0x8e7   :  { %v4270_v51 = vpop.f32.mrf.mxu0 }
 0x8e8   :  { %v4271_v2 = vadd.f32 %v4694_v1, %v4270_v51  ;;  %5882 = vmatprep.mubr.f32.mxu1 %v4299_v39  ;;  %v4302_v26 = vmax.f32 %v4276_v28, 0.0 }
 0x8e9   :  { %v5834_v56 = vpop.f32.mrf.mxu0  ;;  %5883 = vmatmul.mubr.f32.gmra.mxu1 %v4300_v47 }
 0x8ea   :  { %v4301_v24 = vmax.f32 %v4271_v2, 0.0  ;;  %v4286_v33 = vadd.f32 %v5834_v56, %v4694_v1 }
 0x8eb   :  { %v4280_v37 = vpop.f32.mrf.mxu0 }
 0x8ec   :  { %v4281_v52 = vadd.f32 %v4694_v1, %v4280_v37  ;;  %5885 = vmatprep.mubr.f32.mxu1 %v4301_v24  ;;  %v4304_v21 = vmax.f32 %v4286_v33, 0.0 }
 0x8ed   :  { %5886 = vmatmul.mubr.f32.gmra.mxu1 %v4302_v26 }
 0x8ee   :  { %v4303_v31 = vmax.f32 %v4281_v52, 0.0 }
 0x8f0   :  { %5888 = vmatprep.mubr.f32.mxu1 %v4303_v31 }
 0x8f1   :  { %5889 = vmatmul.mubr.f32.gmra.mxu1 %v4304_v21 }
 0x990   :  { %v5869_v60 = vpop.f32.mrf.mxu0 }
 0x991   :  { %v4397_v5 = vadd.f32 %v5869_v60, %v9108_v20 }
 0x992   :  { %v4391_v27 = vpop.f32.mrf.mxu0 }
 0x993   :  { %v4471_v45 = vadd.f32 %v4397_v5, %v8679_v43  ;;  %v4392_v63 = vadd.f32 %v4391_v27, %v9108_v20 }
 0x995   :  { %4487 = vst.msk [vmem:[#allocation2 + $0x8] sm:$0xff] %vm69_vm0, %v4471_v45  ;;  %v4470_v1 = vadd.f32 %v4392_v63, %v8685_v15 }
 0x997   :  { %4486 = vst.msk [vmem:[#allocation2] sm:$0xff] %vm69_vm0, %v4470_v1 }
 0x999   :  { %v5872_v40 = vpop.f32.mrf.mxu0 }
 0x99a   :  { %v4407_v17 = vadd.f32 %v5872_v40, %v9108_v20 }
 0x99b   :  { %v4401_v49 = vpop.f32.mrf.mxu0 }
 0x99c   :  { %v4473_v16 = vadd.f32 %v4407_v17, %v8693_v57  ;;  %v4402_v41 = vadd.f32 %v4401_v49, %v9108_v20 }
 0x99d   :  { %v5875_v0 = vpop.f32.mrf.mxu1 }
 0x99e   :  { %4489 = vst.msk [vmem:[#allocation2 + $0x18] sm:$0xff] %vm69_vm0, %v4473_v16  ;;  %v4472_v43 = vadd.f32 %v4402_v41, %v8704_v3  ;;  %v4417_v4 = vadd.f32 %v5875_v0, %v9108_v20 }
 0x99f   :  { %v4411_v14 = vpop.f32.mrf.mxu1 }
 0x9a0   :  { %4488 = vst.msk [vmem:[#allocation2 + $0x10] sm:$0xff] %vm69_vm0, %v4472_v43  ;;  %v4475_v15 = vadd.f32 %v4417_v4, %v8707_v22  ;;  %v4412_v12 = vadd.f32 %v4411_v14, %v9108_v20 }
 0x9a1   :  { %v5878_v34 = vpop.f32.mrf.mxu1 }
 0x9a2   :  { %4491 = vst.msk [vmem:[#allocation2 + $0x28] sm:$0xff] %vm69_vm0, %v4475_v15  ;;  %v4474_v57 = vadd.f32 %v4412_v12, %v8720_v18  ;;  %v4427_v50 = vadd.f32 %v5878_v34, %v9108_v20 }
 0x9a3   :  { %v4421_v46 = vpop.f32.mrf.mxu1 }
 0x9a4   :  { %4490 = vst.msk [vmem:[#allocation2 + $0x20] sm:$0xff] %vm69_vm0, %v4474_v57  ;;  %v4477_v3 = vadd.f32 %v4427_v50, %v8723_v62  ;;  %v4422_v6 = vadd.f32 %v4421_v46, %v9108_v20 }
 0x9a5   :  { %v5881_v30 = vpop.f32.mrf.mxu1 }
 0x9a6   :  { %4493 = vst.msk [vmem:[#allocation2 + $0x38] sm:$0xff] %vm69_vm0, %v4477_v3  ;;  %v4476_v22 = vadd.f32 %v4422_v6, %v8736_v61  ;;  %v4437_v7 = vadd.f32 %v5881_v30, %v9108_v20 }
 0x9a7   :  { %v4431_v11 = vpop.f32.mrf.mxu1 }
 0x9a8   :  { %4492 = vst.msk [vmem:[#allocation2 + $0x30] sm:$0xff] %vm69_vm0, %v4476_v22  ;;  %v4479_v18 = vadd.f32 %v4437_v7, %v8739_v23  ;;  %v4432_v25 = vadd.f32 %v4431_v11, %v9108_v20 }
 0x9a9   :  { %v5884_v54 = vpop.f32.mrf.mxu1 }
 0x9aa   :  { %4495 = vst.msk [vmem:[#allocation2 + $0x48] sm:$0xff] %vm69_vm0, %v4479_v18  ;;  %v4478_v62 = vadd.f32 %v4432_v25, %v8752_v53  ;;  %v4447_v10 = vadd.f32 %v5884_v54, %v9108_v20 }
 0x9ab   :  { %v4441_v36 = vpop.f32.mrf.mxu1 }
 0x9ac   :  { %4494 = vst.msk [vmem:[#allocation2 + $0x40] sm:$0xff] %vm69_vm0, %v4478_v62  ;;  %v4481_v61 = vadd.f32 %v4447_v10, %v8757_v32  ;;  %v4442_v58 = vadd.f32 %v4441_v36, %v9108_v20 }
 0x9ad   :  { %v5887_v29 = vpop.f32.mrf.mxu1 }
 0x9ae   :  { %4497 = vst.msk [vmem:[#allocation2 + $0x58] sm:$0xff] %vm69_vm0, %v4481_v61  ;;  %v4480_v23 = vadd.f32 %v4442_v58, %v8768_v35  ;;  %v4457_v13 = vadd.f32 %v5887_v29, %v9108_v20  ;;  %v9395_v35 = vld [vmem:[#allocation23_spill] sm:$0xff] }
 0x9af   :  { %v4451_v44 = vpop.f32.mrf.mxu1 }
 0x9b0   :  { %4496 = vst.msk [vmem:[#allocation2 + $0x50] sm:$0xff] %vm69_vm0, %v4480_v23  ;;  %v4483_v53 = vadd.f32 %v4457_v13, %v8773_v38  ;;  %v4452_v19 = vadd.f32 %v4451_v44, %v9108_v20  ;;  %v9396_v38 = vld [vmem:[#allocation27_spill] sm:$0xff] }
 0x9b1   :  { %v5890_v55 = vpop.f32.mrf.mxu1 }
 0x9b2   :  { %4499 = vst.msk [vmem:[#allocation2 + $0x68] sm:$0xff] %vm69_vm0, %v4483_v53  ;;  %v4482_v32 = vadd.f32 %v4452_v19, %v8784_v42  ;;  %v4467_v59 = vadd.f32 %v5890_v55, %v9108_v20 }
 0x9b3   :  { %v4461_v8 = vpop.f32.mrf.mxu1 }
 0x9b4   :  { %4498 = vst.msk [vmem:[#allocation2 + $0x60] sm:$0xff] %vm69_vm0, %v4482_v32  ;;  %v4485_v48 = vadd.f32 %v4467_v59, %v9395_v35  ;;  %v4462_v39 = vadd.f32 %v4461_v8, %v9108_v20 }
 0x9b6   :  { %4501 = vst.msk [vmem:[#allocation2 + $0x78] sm:$0xff] %vm69_vm0, %v4485_v48  ;;  %v4484_v47 = vadd.f32 %v4462_v39, %v9396_v38 }
 0x9b8   :  { %4500 = vst.msk [vmem:[#allocation2 + $0x70] sm:$0xff] %vm69_vm0, %v4484_v47 }
 0x9b9   :  { %6101 = shalt.err (!%p6098_p4)
}
 0x9ba   :  { %s6116_s15 = smov 128   ;;  %s6117_s16 = smov 8  }
 0x9bb   :  { %4513 = dma.vmem_to_hbm [thread:$0]  %s4508_s6, 2048, %s9170_s9, [#allocation3], %s6116_s15, %s6116_s15, %s6117_s16  }
 0x9bc   :  { %6110 = dma.done.wait [#allocation3], 2048  }
 0x9bd   :  { %6111 = vsyncadd [#allocation3], 4294965248 }
 0x9be   :  { %4517 = vsyncpa [#allocation3], 1 }

</bundles_post_ra>
